<compile_context>
chip_gen: v6e
topology: v6e:2x2x1
jax: 0.10.0
libtpu: 0.0.40
codegen_flags: <defaults>
</compile_context>

<pallas_src>
import jax
import jax.numpy as jnp
from jax.experimental import pallas as pl
from jax.experimental.pallas import tpu as pltpu

# ---------------- synthetic "BERT" config (small) ----------------
B = 2             # batch
S = 8             # sequence length
HIDDEN = 128      # hidden size (bert.config.hidden_size stand-in)
HEADS = 4
HEAD_DIM = HIDDEN // HEADS
INTER = 256       # FFN intermediate size
LAYERS = 2
VOCAB = 100
MAX_POS = 32
NUM_CLASSES = 5   # len(label_to_index)
FC1_DIM = 64
LANE = 128        # lane-dense padding width for the classifier head


# ---------------- single fused Pallas kernel ----------------
def _fused_forward_kernel(
    word_ref, pos_ref, typ_ref, mask_ref, emb_g_ref, emb_b_ref,
    wqkv_ref, bqkv_ref, wo_ref, bo_ref, ln1_g_ref, ln1_b_ref,
    wi_ref, bi_ref, wout_ref, bout_ref, ln2_g_ref, ln2_b_ref,
    pooler_w_ref, pooler_b_ref, fc1_w_ref, fc1_b_ref, fc2_w_ref, fc2_b_ref,
    o_ref, ctx_ref,
):
    def layernorm(x, g, b):
        mean = jnp.mean(x, axis=-1, keepdims=True)
        var = jnp.mean((x - mean) ** 2, axis=-1, keepdims=True)
        return (x - mean) * jax.lax.rsqrt(var + 1e-12) * g + b

    # ---- embeddings: word + pos + type, then LayerNorm (no zeros residual) ----
    word = word_ref[...]                       # (B*S, H)
    pos = pos_ref[...]                         # (S, H)
    typ = typ_ref[...]                         # (1, H)
    x = jnp.concatenate(
        [word[b * S:(b + 1) * S, :] + pos for b in range(B)], axis=0
    ) + typ                                    # (B*S, H)
    x = layernorm(x, emb_g_ref[...], emb_b_ref[...])

    # ---- attention-mask bias, computed once for all layers ----
    bias = (1.0 - mask_ref[...]) * (-10000.0)  # (B, S)
    scale = 1.0 / (HEAD_DIM ** 0.5)

    # ---- transformer layers (static unroll; all weights resident in VMEM) ----
    for l in range(LAYERS):
        # fused QKV projection: one 128x128x384 matmul instead of three 128-wide
        qkv = jnp.dot(x, wqkv_ref[l], preferred_element_type=jnp.float32) + bqkv_ref[l]
        q = qkv[:, :HIDDEN]
        k = qkv[:, HIDDEN:2 * HIDDEN]
        v = qkv[:, 2 * HIDDEN:]

        # in-kernel attention; context assembled in a VMEM scratch slab
        for b in range(B):
            rows = slice(b * S, (b + 1) * S)
            bias_b = bias[b:b + 1, :]          # (1, S)
            for h in range(HEADS):
                cols = slice(h * HEAD_DIM, (h + 1) * HEAD_DIM)
                qh = q[rows, cols]             # (S, D)
                kh = k[rows, cols]             # (S, D)
                vh = v[rows, cols]             # (S, D)
                s = jax.lax.dot_general(
                    qh, kh, (((1,), (1,)), ((), ())),
                    preferred_element_type=jnp.float32) * scale
                s = s + bias_b
                s = s - jnp.max(s, axis=-1, keepdims=True)
                p = jnp.exp(s)
                p = p / jnp.sum(p, axis=-1, keepdims=True)
                ctx_ref[rows, cols] = jnp.dot(
                    p, vh, preferred_element_type=jnp.float32)

        attn_out = jnp.dot(ctx_ref[...], wo_ref[l],
                           preferred_element_type=jnp.float32) + bo_ref[l]
        x = layernorm(x + attn_out, ln1_g_ref[l], ln1_b_ref[l])

        inter = jnp.dot(x, wi_ref[l], preferred_element_type=jnp.float32) + bi_ref[l]
        # TODO(synk): HF BERT uses exact erf GELU; tanh approximation kept here
        # (erf lowering in Mosaic unverified; numerics differ slightly).
        inter = jax.nn.gelu(inter, approximate=True)
        ffn = jnp.dot(inter, wout_ref[l],
                      preferred_element_type=jnp.float32) + bout_ref[l]
        x = layernorm(x + ffn, ln2_g_ref[l], ln2_b_ref[l])

    # ---- pooler (CLS token, tanh) + classifier head, lane-dense (padded to 128) ----
    cls = jnp.concatenate([x[b * S:b * S + 1, :] for b in range(B)], axis=0)  # (B, H)
    pooled = jnp.tanh(
        jnp.dot(cls, pooler_w_ref[...], preferred_element_type=jnp.float32)
        + pooler_b_ref[...])
    h1 = jnp.maximum(
        jnp.dot(pooled, fc1_w_ref[...], preferred_element_type=jnp.float32)
        + fc1_b_ref[...], 0.0)                                                 # (B, 128)
    logits = jnp.dot(h1, fc2_w_ref[...],
                     preferred_element_type=jnp.float32) + fc2_b_ref[...]      # (B, 128)
    # only narrow store in the whole kernel: final (B, NUM_CLASSES) logits
    o_ref[...] = logits[:, :NUM_CLASSES].astype(o_ref.dtype)


def _full_spec(shape):
    n = len(shape)
    return pl.BlockSpec(tuple(shape), lambda i, _n=n: (0,) * _n)


def classifier_forward(params, input_ids, attention_mask):
    # Glue only: embedding gather + mask cast (trace-time constants for pos/type).
    word = jnp.take(params["word_emb"], input_ids.reshape(-1), axis=0)  # (B*S, H)
    pos = params["pos_emb"][:S]                                         # (S, H)
    typ = params["type_emb"][0:1]                                       # (1, H)
    mask = attention_mask.astype(jnp.float32)                           # (B, S)

    inputs = (
        word, pos, typ, mask, params["emb_ln_g"], params["emb_ln_b"],
        params["wqkv"], params["bqkv"], params["wo"], params["bo"],
        params["ln1_g"], params["ln1_b"],
        params["wi"], params["bi"], params["wout"], params["bout"],
        params["ln2_g"], params["ln2_b"],
        params["pooler_w"], params["pooler_b"],
        params["fc1_w"], params["fc1_b"], params["fc2_w"], params["fc2_b"],
    )

    return pl.pallas_call(
        _fused_forward_kernel,
        out_shape=jax.ShapeDtypeStruct((B, NUM_CLASSES), jnp.float32),
        grid=(1,),
        in_specs=[_full_spec(x.shape) for x in inputs],
        out_specs=pl.BlockSpec((B, NUM_CLASSES), lambda i: (0, 0)),
        scratch_shapes=[pltpu.VMEM((B * S, HIDDEN), jnp.float32)],
        compiler_params=pltpu.CompilerParams(dimension_semantics=("arbitrary",)),
    )(*inputs)


# ---------------- deterministic parameter init ----------------
def init_params(key):
    keys = iter(jax.random.split(key, 32))

    def mat(shape):
        return jax.random.normal(next(keys), shape, jnp.float32) * 0.02

    def zeros(shape):
        return jnp.zeros(shape, jnp.float32)

    def ones(shape):
        return jnp.ones(shape, jnp.float32)

    fc1_w = zeros((HIDDEN, LANE)).at[:, :FC1_DIM].set(mat((HIDDEN, FC1_DIM)))
    fc2_w = zeros((LANE, LANE)).at[:FC1_DIM, :NUM_CLASSES].set(
        mat((FC1_DIM, NUM_CLASSES)))

    return dict(
        word_emb=mat((VOCAB, HIDDEN)),
        pos_emb=mat((MAX_POS, HIDDEN)),
        type_emb=mat((2, HIDDEN)),
        emb_ln_g=ones((1, HIDDEN)), emb_ln_b=zeros((1, HIDDEN)),
        # per-layer weights stacked along a leading LAYERS axis, QKV fused
        wqkv=mat((LAYERS, HIDDEN, 3 * HIDDEN)),
        bqkv=zeros((LAYERS, 1, 3 * HIDDEN)),
        wo=mat((LAYERS, HIDDEN, HIDDEN)),
        bo=zeros((LAYERS, 1, HIDDEN)),
        ln1_g=ones((LAYERS, 1, HIDDEN)), ln1_b=zeros((LAYERS, 1, HIDDEN)),
        wi=mat((LAYERS, HIDDEN, INTER)),
        bi=zeros((LAYERS, 1, INTER)),
        wout=mat((LAYERS, INTER, HIDDEN)),
        bout=zeros((LAYERS, 1, HIDDEN)),
        ln2_g=ones((LAYERS, 1, HIDDEN)), ln2_b=zeros((LAYERS, 1, HIDDEN)),
        pooler_w=mat((HIDDEN, HIDDEN)), pooler_b=zeros((1, HIDDEN)),
        # classifier head padded to 128 output lanes (zero padding is exact:
        # relu(0)=0 and padded fc2 rows/cols are zero)
        fc1_w=fc1_w, fc1_b=zeros((1, LANE)),
        fc2_w=fc2_w, fc2_b=zeros((1, LANE)),
    )


if __name__ == "__main__":
    root = jax.random.PRNGKey(0)
    k_params, k_ids = jax.random.split(root)

    params = init_params(k_params)
    input_ids = jax.random.randint(k_ids, (B, S), 0, VOCAB, dtype=jnp.int32)
    # second example has 3 padding positions masked out
    attention_mask = jnp.array(
        [[1] * S, [1] * (S - 3) + [0] * 3], dtype=jnp.int32
    )

    logits = jax.jit(classifier_forward)(params, input_ids, attention_mask)
    logits = jax.block_until_ready(logits)
    assert logits.shape == (B, NUM_CLASSES)
    assert bool(jnp.all(jnp.isfinite(logits)))
    print("KERNEL_OK")
</pallas_src>

<mosaic_0001>
module attributes {stable_mosaic.version = 11 : i64} {
  func.func @_fused_forward_kernel(%arg0: i32, %arg1: memref<16x128xf32, #tpu.memory_space<vmem>>, %arg2: memref<8x128xf32, #tpu.memory_space<vmem>>, %arg3: memref<1x128xf32, #tpu.memory_space<vmem>>, %arg4: memref<2x8xf32, #tpu.memory_space<vmem>>, %arg5: memref<1x128xf32, #tpu.memory_space<vmem>>, %arg6: memref<1x128xf32, #tpu.memory_space<vmem>>, %arg7: memref<2x128x384xf32, #tpu.memory_space<vmem>>, %arg8: memref<2x1x384xf32, #tpu.memory_space<vmem>>, %arg9: memref<2x128x128xf32, #tpu.memory_space<vmem>>, %arg10: memref<2x1x128xf32, #tpu.memory_space<vmem>>, %arg11: memref<2x1x128xf32, #tpu.memory_space<vmem>>, %arg12: memref<2x1x128xf32, #tpu.memory_space<vmem>>, %arg13: memref<2x128x256xf32, #tpu.memory_space<vmem>>, %arg14: memref<2x1x256xf32, #tpu.memory_space<vmem>>, %arg15: memref<2x256x128xf32, #tpu.memory_space<vmem>>, %arg16: memref<2x1x128xf32, #tpu.memory_space<vmem>>, %arg17: memref<2x1x128xf32, #tpu.memory_space<vmem>>, %arg18: memref<2x1x128xf32, #tpu.memory_space<vmem>>, %arg19: memref<128x128xf32, #tpu.memory_space<vmem>>, %arg20: memref<1x128xf32, #tpu.memory_space<vmem>>, %arg21: memref<128x128xf32, #tpu.memory_space<vmem>>, %arg22: memref<1x128xf32, #tpu.memory_space<vmem>>, %arg23: memref<128x128xf32, #tpu.memory_space<vmem>>, %arg24: memref<1x128xf32, #tpu.memory_space<vmem>>, %arg25: memref<2x5xf32, #tpu.memory_space<vmem>>, %arg26: memref<16x128xf32, #tpu.memory_space<vmem>>) attributes {dimension_semantics = [#tpu.dimension_semantics<arbitrary>], iteration_bounds = array<i64: 1>, scalar_prefetch = 0 : i64, scratch_operands = 1 : i64, tpu.core_type = #tpu.core_type<tc>, window_params = [{pipeline_mode = #tpu.pipeline_mode<synchronous>, transform_indices = @transform_0, window_bounds = array<i64: 16, 128>}, {pipeline_mode = #tpu.pipeline_mode<synchronous>, transform_indices = @transform_1, window_bounds = array<i64: 8, 128>}, {pipeline_mode = #tpu.pipeline_mode<synchronous>, transform_indices = @transform_2, window_bounds = array<i64: 1, 128>}, {pipeline_mode = #tpu.pipeline_mode<synchronous>, transform_indices = @transform_3, window_bounds = array<i64: 2, 8>}, {pipeline_mode = #tpu.pipeline_mode<synchronous>, transform_indices = @transform_4, window_bounds = array<i64: 1, 128>}, {pipeline_mode = #tpu.pipeline_mode<synchronous>, transform_indices = @transform_5, window_bounds = array<i64: 1, 128>}, {pipeline_mode = #tpu.pipeline_mode<synchronous>, transform_indices = @transform_6, window_bounds = array<i64: 2, 128, 384>}, {pipeline_mode = #tpu.pipeline_mode<synchronous>, transform_indices = @transform_7, window_bounds = array<i64: 2, 1, 384>}, {pipeline_mode = #tpu.pipeline_mode<synchronous>, transform_indices = @transform_8, window_bounds = array<i64: 2, 128, 128>}, {pipeline_mode = #tpu.pipeline_mode<synchronous>, transform_indices = @transform_9, window_bounds = array<i64: 2, 1, 128>}, {pipeline_mode = #tpu.pipeline_mode<synchronous>, transform_indices = @transform_10, window_bounds = array<i64: 2, 1, 128>}, {pipeline_mode = #tpu.pipeline_mode<synchronous>, transform_indices = @transform_11, window_bounds = array<i64: 2, 1, 128>}, {pipeline_mode = #tpu.pipeline_mode<synchronous>, transform_indices = @transform_12, window_bounds = array<i64: 2, 128, 256>}, {pipeline_mode = #tpu.pipeline_mode<synchronous>, transform_indices = @transform_13, window_bounds = array<i64: 2, 1, 256>}, {pipeline_mode = #tpu.pipeline_mode<synchronous>, transform_indices = @transform_14, window_bounds = array<i64: 2, 256, 128>}, {pipeline_mode = #tpu.pipeline_mode<synchronous>, transform_indices = @transform_15, window_bounds = array<i64: 2, 1, 128>}, {pipeline_mode = #tpu.pipeline_mode<synchronous>, transform_indices = @transform_16, window_bounds = array<i64: 2, 1, 128>}, {pipeline_mode = #tpu.pipeline_mode<synchronous>, transform_indices = @transform_17, window_bounds = array<i64: 2, 1, 128>}, {pipeline_mode = #tpu.pipeline_mode<synchronous>, transform_indices = @transform_18, window_bounds = array<i64: 128, 128>}, {pipeline_mode = #tpu.pipeline_mode<synchronous>, transform_indices = @transform_19, window_bounds = array<i64: 1, 128>}, {pipeline_mode = #tpu.pipeline_mode<synchronous>, transform_indices = @transform_20, window_bounds = array<i64: 128, 128>}, {pipeline_mode = #tpu.pipeline_mode<synchronous>, transform_indices = @transform_21, window_bounds = array<i64: 1, 128>}, {pipeline_mode = #tpu.pipeline_mode<synchronous>, transform_indices = @transform_22, window_bounds = array<i64: 128, 128>}, {pipeline_mode = #tpu.pipeline_mode<synchronous>, transform_indices = @transform_23, window_bounds = array<i64: 1, 128>}, {pipeline_mode = #tpu.pipeline_mode<synchronous>, transform_indices = @transform_24, window_bounds = array<i64: 2, 5>}]} {
    %c0 = arith.constant 0 : index
    %c0_0 = arith.constant 0 : index
    %0 = vector.load %arg1[%c0, %c0_0] : memref<16x128xf32, #tpu.memory_space<vmem>>, vector<16x128xf32>
    %c0_1 = arith.constant 0 : index
    %c0_2 = arith.constant 0 : index
    %1 = vector.load %arg2[%c0_1, %c0_2] : memref<8x128xf32, #tpu.memory_space<vmem>>, vector<8x128xf32>
    %c0_3 = arith.constant 0 : index
    %c0_4 = arith.constant 0 : index
    %2 = vector.load %arg3[%c0_3, %c0_4] : memref<1x128xf32, #tpu.memory_space<vmem>>, vector<1x128xf32>
    %3 = vector.extract_strided_slice %0 {offsets = [0, 0], sizes = [8, 128], strides = [1, 1]} : vector<16x128xf32> to vector<8x128xf32>
    %4 = arith.addf %3, %1 : vector<8x128xf32>
    %5 = vector.extract_strided_slice %0 {offsets = [8, 0], sizes = [8, 128], strides = [1, 1]} : vector<16x128xf32> to vector<8x128xf32>
    %6 = arith.addf %5, %1 : vector<8x128xf32>
    %7 = tpu.concatenate %4, %6 in 0 : vector<8x128xf32>, vector<8x128xf32> -> vector<16x128xf32>
    %8 = vector.broadcast %2 : vector<1x128xf32> to vector<16x128xf32>
    %9 = arith.addf %7, %8 : vector<16x128xf32>
    %c0_5 = arith.constant 0 : index
    %c0_6 = arith.constant 0 : index
    %10 = vector.load %arg5[%c0_5, %c0_6] : memref<1x128xf32, #tpu.memory_space<vmem>>, vector<1x128xf32>
    %c0_7 = arith.constant 0 : index
    %c0_8 = arith.constant 0 : index
    %11 = vector.load %arg6[%c0_7, %c0_8] : memref<1x128xf32, #tpu.memory_space<vmem>>, vector<1x128xf32>
    %cst = arith.constant dense<0.000000e+00> : vector<16xf32>
    %12 = vector.multi_reduction <add>, %9, %cst [1] : vector<16x128xf32> to vector<16xf32>
    %13 = vector.shape_cast %12 : vector<16xf32> to vector<16x1xf32>
    %cst_9 = arith.constant 1.280000e+02 : f32
    %14 = vector.broadcast %cst_9 : f32 to vector<16x1xf32>
    %15 = arith.divf %13, %14 : vector<16x1xf32>
    %16 = vector.broadcast %15 : vector<16x1xf32> to vector<16x128xf32>
    %17 = arith.subf %9, %16 : vector<16x128xf32>
    %18 = arith.mulf %17, %17 : vector<16x128xf32>
    %cst_10 = arith.constant dense<0.000000e+00> : vector<16xf32>
    %19 = vector.multi_reduction <add>, %18, %cst_10 [1] : vector<16x128xf32> to vector<16xf32>
    %20 = vector.shape_cast %19 : vector<16xf32> to vector<16x1xf32>
    %cst_11 = arith.constant 1.280000e+02 : f32
    %21 = vector.broadcast %cst_11 : f32 to vector<16x1xf32>
    %22 = arith.divf %20, %21 : vector<16x1xf32>
    %23 = vector.broadcast %15 : vector<16x1xf32> to vector<16x128xf32>
    %24 = arith.subf %9, %23 : vector<16x128xf32>
    %cst_12 = arith.constant 9.99999996E-13 : f32
    %25 = vector.broadcast %cst_12 : f32 to vector<16x1xf32>
    %26 = arith.addf %22, %25 : vector<16x1xf32>
    %27 = math.rsqrt %26 : vector<16x1xf32>
    %28 = vector.broadcast %27 : vector<16x1xf32> to vector<16x128xf32>
    %29 = arith.mulf %24, %28 : vector<16x128xf32>
    %30 = vector.broadcast %10 : vector<1x128xf32> to vector<16x128xf32>
    %31 = arith.mulf %29, %30 : vector<16x128xf32>
    %32 = vector.broadcast %11 : vector<1x128xf32> to vector<16x128xf32>
    %33 = arith.addf %31, %32 : vector<16x128xf32>
    %c0_13 = arith.constant 0 : index
    %c0_14 = arith.constant 0 : index
    %34 = vector.load %arg4[%c0_13, %c0_14] : memref<2x8xf32, #tpu.memory_space<vmem>>, vector<2x8xf32>
    %cst_15 = arith.constant 1.000000e+00 : f32
    %35 = vector.broadcast %cst_15 : f32 to vector<2x8xf32>
    %36 = arith.subf %35, %34 : vector<2x8xf32>
    %cst_16 = arith.constant -1.000000e+04 : f32
    %37 = vector.broadcast %cst_16 : f32 to vector<2x8xf32>
    %38 = arith.mulf %36, %37 : vector<2x8xf32>
    %c0_17 = arith.constant 0 : index
    %c0_18 = arith.constant 0 : index
    %c0_19 = arith.constant 0 : index
    %39 = vector.load %arg7[%c0_17, %c0_18, %c0_19] : memref<2x128x384xf32, #tpu.memory_space<vmem>>, vector<1x128x384xf32>
    %40 = vector.shape_cast %39 : vector<1x128x384xf32> to vector<128x384xf32>
    %cst_20 = arith.constant dense<0.000000e+00> : vector<16x384xf32>
    %41 = tpu.matmul %33, %40, %cst_20 {dimension_numbers = #tpu.dot_dimension_numbers<[1], [0], [0], [1], [0, 0, 1, 1], [], []>} : vector<16x128xf32>, vector<128x384xf32>, vector<16x384xf32> -> vector<16x384xf32>
    %c0_21 = arith.constant 0 : index
    %c0_22 = arith.constant 0 : index
    %c0_23 = arith.constant 0 : index
    %42 = vector.load %arg8[%c0_21, %c0_22, %c0_23] : memref<2x1x384xf32, #tpu.memory_space<vmem>>, vector<1x1x384xf32>
    %43 = vector.shape_cast %42 : vector<1x1x384xf32> to vector<1x384xf32>
    %44 = vector.broadcast %43 : vector<1x384xf32> to vector<16x384xf32>
    %45 = arith.addf %41, %44 : vector<16x384xf32>
    %46 = vector.extract_strided_slice %45 {offsets = [0, 0], sizes = [16, 128], strides = [1, 1]} : vector<16x384xf32> to vector<16x128xf32>
    %47 = vector.extract_strided_slice %45 {offsets = [0, 128], sizes = [16, 128], strides = [1, 1]} : vector<16x384xf32> to vector<16x128xf32>
    %48 = vector.extract_strided_slice %45 {offsets = [0, 256], sizes = [16, 128], strides = [1, 1]} : vector<16x384xf32> to vector<16x128xf32>
    %49 = vector.extract_strided_slice %38 {offsets = [0, 0], sizes = [1, 8], strides = [1, 1]} : vector<2x8xf32> to vector<1x8xf32>
    %50 = vector.extract_strided_slice %46 {offsets = [0, 0], sizes = [8, 32], strides = [1, 1]} : vector<16x128xf32> to vector<8x32xf32>
    %51 = vector.extract_strided_slice %47 {offsets = [0, 0], sizes = [8, 32], strides = [1, 1]} : vector<16x128xf32> to vector<8x32xf32>
    %52 = vector.extract_strided_slice %48 {offsets = [0, 0], sizes = [8, 32], strides = [1, 1]} : vector<16x128xf32> to vector<8x32xf32>
    %cst_24 = arith.constant dense<0.000000e+00> : vector<8x8xf32>
    %53 = tpu.matmul %50, %51, %cst_24 {dimension_numbers = #tpu.dot_dimension_numbers<[1], [1], [0], [0], [0, 0, 1, 0], [], []>} : vector<8x32xf32>, vector<8x32xf32>, vector<8x8xf32> -> vector<8x8xf32>
    %cst_25 = arith.constant 0.176776692 : f32
    %54 = vector.broadcast %cst_25 : f32 to vector<8x8xf32>
    %55 = arith.mulf %53, %54 : vector<8x8xf32>
    %56 = vector.broadcast %49 : vector<1x8xf32> to vector<8x8xf32>
    %57 = arith.addf %55, %56 : vector<8x8xf32>
    %cst_26 = arith.constant dense<0xFF800000> : vector<8xf32>
    %58 = vector.multi_reduction <maximumf>, %57, %cst_26 [1] : vector<8x8xf32> to vector<8xf32>
    %59 = vector.shape_cast %58 : vector<8xf32> to vector<8x1xf32>
    %60 = vector.broadcast %59 : vector<8x1xf32> to vector<8x8xf32>
    %61 = arith.subf %57, %60 : vector<8x8xf32>
    %62 = math.exp %61 : vector<8x8xf32>
    %cst_27 = arith.constant dense<0.000000e+00> : vector<8xf32>
    %63 = vector.multi_reduction <add>, %62, %cst_27 [1] : vector<8x8xf32> to vector<8xf32>
    %64 = vector.shape_cast %63 : vector<8xf32> to vector<8x1xf32>
    %65 = vector.broadcast %64 : vector<8x1xf32> to vector<8x8xf32>
    %66 = arith.divf %62, %65 : vector<8x8xf32>
    %cst_28 = arith.constant dense<0.000000e+00> : vector<8x32xf32>
    %67 = tpu.matmul %66, %52, %cst_28 {dimension_numbers = #tpu.dot_dimension_numbers<[1], [0], [0], [1], [0, 0, 1, 1], [], []>} : vector<8x8xf32>, vector<8x32xf32>, vector<8x32xf32> -> vector<8x32xf32>
    %c0_29 = arith.constant 0 : index
    %c0_30 = arith.constant 0 : index
    %68 = vector.load %arg26[%c0_29, %c0_30] : memref<16x128xf32, #tpu.memory_space<vmem>>, vector<8x32xf32>
    tpu.vector_store %arg26[%c0_29, %c0_30], %67 {strides = array<i32>} : memref<16x128xf32, #tpu.memory_space<vmem>>, vector<8x32xf32>,
    %69 = vector.extract_strided_slice %46 {offsets = [0, 32], sizes = [8, 32], strides = [1, 1]} : vector<16x128xf32> to vector<8x32xf32>
    %70 = vector.extract_strided_slice %47 {offsets = [0, 32], sizes = [8, 32], strides = [1, 1]} : vector<16x128xf32> to vector<8x32xf32>
    %71 = vector.extract_strided_slice %48 {offsets = [0, 32], sizes = [8, 32], strides = [1, 1]} : vector<16x128xf32> to vector<8x32xf32>
    %cst_31 = arith.constant dense<0.000000e+00> : vector<8x8xf32>
    %72 = tpu.matmul %69, %70, %cst_31 {dimension_numbers = #tpu.dot_dimension_numbers<[1], [1], [0], [0], [0, 0, 1, 0], [], []>} : vector<8x32xf32>, vector<8x32xf32>, vector<8x8xf32> -> vector<8x8xf32>
    %cst_32 = arith.constant 0.176776692 : f32
    %73 = vector.broadcast %cst_32 : f32 to vector<8x8xf32>
    %74 = arith.mulf %72, %73 : vector<8x8xf32>
    %75 = vector.broadcast %49 : vector<1x8xf32> to vector<8x8xf32>
    %76 = arith.addf %74, %75 : vector<8x8xf32>
    %cst_33 = arith.constant dense<0xFF800000> : vector<8xf32>
    %77 = vector.multi_reduction <maximumf>, %76, %cst_33 [1] : vector<8x8xf32> to vector<8xf32>
    %78 = vector.shape_cast %77 : vector<8xf32> to vector<8x1xf32>
    %79 = vector.broadcast %78 : vector<8x1xf32> to vector<8x8xf32>
    %80 = arith.subf %76, %79 : vector<8x8xf32>
    %81 = math.exp %80 : vector<8x8xf32>
    %cst_34 = arith.constant dense<0.000000e+00> : vector<8xf32>
    %82 = vector.multi_reduction <add>, %81, %cst_34 [1] : vector<8x8xf32> to vector<8xf32>
    %83 = vector.shape_cast %82 : vector<8xf32> to vector<8x1xf32>
    %84 = vector.broadcast %83 : vector<8x1xf32> to vector<8x8xf32>
    %85 = arith.divf %81, %84 : vector<8x8xf32>
    %cst_35 = arith.constant dense<0.000000e+00> : vector<8x32xf32>
    %86 = tpu.matmul %85, %71, %cst_35 {dimension_numbers = #tpu.dot_dimension_numbers<[1], [0], [0], [1], [0, 0, 1, 1], [], []>} : vector<8x8xf32>, vector<8x32xf32>, vector<8x32xf32> -> vector<8x32xf32>
    %c0_36 = arith.constant 0 : index
    %c32 = arith.constant 32 : index
    %87 = vector.load %arg26[%c0_36, %c32] : memref<16x128xf32, #tpu.memory_space<vmem>>, vector<8x32xf32>
    tpu.vector_store %arg26[%c0_36, %c32], %86 {strides = array<i32>} : memref<16x128xf32, #tpu.memory_space<vmem>>, vector<8x32xf32>,
    %88 = vector.extract_strided_slice %46 {offsets = [0, 64], sizes = [8, 32], strides = [1, 1]} : vector<16x128xf32> to vector<8x32xf32>
    %89 = vector.extract_strided_slice %47 {offsets = [0, 64], sizes = [8, 32], strides = [1, 1]} : vector<16x128xf32> to vector<8x32xf32>
    %90 = vector.extract_strided_slice %48 {offsets = [0, 64], sizes = [8, 32], strides = [1, 1]} : vector<16x128xf32> to vector<8x32xf32>
    %cst_37 = arith.constant dense<0.000000e+00> : vector<8x8xf32>
    %91 = tpu.matmul %88, %89, %cst_37 {dimension_numbers = #tpu.dot_dimension_numbers<[1], [1], [0], [0], [0, 0, 1, 0], [], []>} : vector<8x32xf32>, vector<8x32xf32>, vector<8x8xf32> -> vector<8x8xf32>
    %cst_38 = arith.constant 0.176776692 : f32
    %92 = vector.broadcast %cst_38 : f32 to vector<8x8xf32>
    %93 = arith.mulf %91, %92 : vector<8x8xf32>
    %94 = vector.broadcast %49 : vector<1x8xf32> to vector<8x8xf32>
    %95 = arith.addf %93, %94 : vector<8x8xf32>
    %cst_39 = arith.constant dense<0xFF800000> : vector<8xf32>
    %96 = vector.multi_reduction <maximumf>, %95, %cst_39 [1] : vector<8x8xf32> to vector<8xf32>
    %97 = vector.shape_cast %96 : vector<8xf32> to vector<8x1xf32>
    %98 = vector.broadcast %97 : vector<8x1xf32> to vector<8x8xf32>
    %99 = arith.subf %95, %98 : vector<8x8xf32>
    %100 = math.exp %99 : vector<8x8xf32>
    %cst_40 = arith.constant dense<0.000000e+00> : vector<8xf32>
    %101 = vector.multi_reduction <add>, %100, %cst_40 [1] : vector<8x8xf32> to vector<8xf32>
    %102 = vector.shape_cast %101 : vector<8xf32> to vector<8x1xf32>
    %103 = vector.broadcast %102 : vector<8x1xf32> to vector<8x8xf32>
    %104 = arith.divf %100, %103 : vector<8x8xf32>
    %cst_41 = arith.constant dense<0.000000e+00> : vector<8x32xf32>
    %105 = tpu.matmul %104, %90, %cst_41 {dimension_numbers = #tpu.dot_dimension_numbers<[1], [0], [0], [1], [0, 0, 1, 1], [], []>} : vector<8x8xf32>, vector<8x32xf32>, vector<8x32xf32> -> vector<8x32xf32>
    %c0_42 = arith.constant 0 : index
    %c64 = arith.constant 64 : index
    %106 = vector.load %arg26[%c0_42, %c64] : memref<16x128xf32, #tpu.memory_space<vmem>>, vector<8x32xf32>
    tpu.vector_store %arg26[%c0_42, %c64], %105 {strides = array<i32>} : memref<16x128xf32, #tpu.memory_space<vmem>>, vector<8x32xf32>,
    %107 = vector.extract_strided_slice %46 {offsets = [0, 96], sizes = [8, 32], strides = [1, 1]} : vector<16x128xf32> to vector<8x32xf32>
    %108 = vector.extract_strided_slice %47 {offsets = [0, 96], sizes = [8, 32], strides = [1, 1]} : vector<16x128xf32> to vector<8x32xf32>
    %109 = vector.extract_strided_slice %48 {offsets = [0, 96], sizes = [8, 32], strides = [1, 1]} : vector<16x128xf32> to vector<8x32xf32>
    %cst_43 = arith.constant dense<0.000000e+00> : vector<8x8xf32>
    %110 = tpu.matmul %107, %108, %cst_43 {dimension_numbers = #tpu.dot_dimension_numbers<[1], [1], [0], [0], [0, 0, 1, 0], [], []>} : vector<8x32xf32>, vector<8x32xf32>, vector<8x8xf32> -> vector<8x8xf32>
    %cst_44 = arith.constant 0.176776692 : f32
    %111 = vector.broadcast %cst_44 : f32 to vector<8x8xf32>
    %112 = arith.mulf %110, %111 : vector<8x8xf32>
    %113 = vector.broadcast %49 : vector<1x8xf32> to vector<8x8xf32>
    %114 = arith.addf %112, %113 : vector<8x8xf32>
    %cst_45 = arith.constant dense<0xFF800000> : vector<8xf32>
    %115 = vector.multi_reduction <maximumf>, %114, %cst_45 [1] : vector<8x8xf32> to vector<8xf32>
    %116 = vector.shape_cast %115 : vector<8xf32> to vector<8x1xf32>
    %117 = vector.broadcast %116 : vector<8x1xf32> to vector<8x8xf32>
    %118 = arith.subf %114, %117 : vector<8x8xf32>
    %119 = math.exp %118 : vector<8x8xf32>
    %cst_46 = arith.constant dense<0.000000e+00> : vector<8xf32>
    %120 = vector.multi_reduction <add>, %119, %cst_46 [1] : vector<8x8xf32> to vector<8xf32>
    %121 = vector.shape_cast %120 : vector<8xf32> to vector<8x1xf32>
    %122 = vector.broadcast %121 : vector<8x1xf32> to vector<8x8xf32>
    %123 = arith.divf %119, %122 : vector<8x8xf32>
    %cst_47 = arith.constant dense<0.000000e+00> : vector<8x32xf32>
    %124 = tpu.matmul %123, %109, %cst_47 {dimension_numbers = #tpu.dot_dimension_numbers<[1], [0], [0], [1], [0, 0, 1, 1], [], []>} : vector<8x8xf32>, vector<8x32xf32>, vector<8x32xf32> -> vector<8x32xf32>
    %c0_48 = arith.constant 0 : index
    %c96 = arith.constant 96 : index
    %125 = vector.load %arg26[%c0_48, %c96] : memref<16x128xf32, #tpu.memory_space<vmem>>, vector<8x32xf32>
    tpu.vector_store %arg26[%c0_48, %c96], %124 {strides = array<i32>} : memref<16x128xf32, #tpu.memory_space<vmem>>, vector<8x32xf32>,
    %126 = vector.extract_strided_slice %38 {offsets = [1, 0], sizes = [1, 8], strides = [1, 1]} : vector<2x8xf32> to vector<1x8xf32>
    %127 = vector.extract_strided_slice %46 {offsets = [8, 0], sizes = [8, 32], strides = [1, 1]} : vector<16x128xf32> to vector<8x32xf32>
    %128 = vector.extract_strided_slice %47 {offsets = [8, 0], sizes = [8, 32], strides = [1, 1]} : vector<16x128xf32> to vector<8x32xf32>
    %129 = vector.extract_strided_slice %48 {offsets = [8, 0], sizes = [8, 32], strides = [1, 1]} : vector<16x128xf32> to vector<8x32xf32>
    %cst_49 = arith.constant dense<0.000000e+00> : vector<8x8xf32>
    %130 = tpu.matmul %127, %128, %cst_49 {dimension_numbers = #tpu.dot_dimension_numbers<[1], [1], [0], [0], [0, 0, 1, 0], [], []>} : vector<8x32xf32>, vector<8x32xf32>, vector<8x8xf32> -> vector<8x8xf32>
    %cst_50 = arith.constant 0.176776692 : f32
    %131 = vector.broadcast %cst_50 : f32 to vector<8x8xf32>
    %132 = arith.mulf %130, %131 : vector<8x8xf32>
    %133 = vector.broadcast %126 : vector<1x8xf32> to vector<8x8xf32>
    %134 = arith.addf %132, %133 : vector<8x8xf32>
    %cst_51 = arith.constant dense<0xFF800000> : vector<8xf32>
    %135 = vector.multi_reduction <maximumf>, %134, %cst_51 [1] : vector<8x8xf32> to vector<8xf32>
    %136 = vector.shape_cast %135 : vector<8xf32> to vector<8x1xf32>
    %137 = vector.broadcast %136 : vector<8x1xf32> to vector<8x8xf32>
    %138 = arith.subf %134, %137 : vector<8x8xf32>
    %139 = math.exp %138 : vector<8x8xf32>
    %cst_52 = arith.constant dense<0.000000e+00> : vector<8xf32>
    %140 = vector.multi_reduction <add>, %139, %cst_52 [1] : vector<8x8xf32> to vector<8xf32>
    %141 = vector.shape_cast %140 : vector<8xf32> to vector<8x1xf32>
    %142 = vector.broadcast %141 : vector<8x1xf32> to vector<8x8xf32>
    %143 = arith.divf %139, %142 : vector<8x8xf32>
    %cst_53 = arith.constant dense<0.000000e+00> : vector<8x32xf32>
    %144 = tpu.matmul %143, %129, %cst_53 {dimension_numbers = #tpu.dot_dimension_numbers<[1], [0], [0], [1], [0, 0, 1, 1], [], []>} : vector<8x8xf32>, vector<8x32xf32>, vector<8x32xf32> -> vector<8x32xf32>
    %c8 = arith.constant 8 : index
    %c0_54 = arith.constant 0 : index
    %145 = vector.load %arg26[%c8, %c0_54] : memref<16x128xf32, #tpu.memory_space<vmem>>, vector<8x32xf32>
    tpu.vector_store %arg26[%c8, %c0_54], %144 {strides = array<i32>} : memref<16x128xf32, #tpu.memory_space<vmem>>, vector<8x32xf32>,
    %146 = vector.extract_strided_slice %46 {offsets = [8, 32], sizes = [8, 32], strides = [1, 1]} : vector<16x128xf32> to vector<8x32xf32>
    %147 = vector.extract_strided_slice %47 {offsets = [8, 32], sizes = [8, 32], strides = [1, 1]} : vector<16x128xf32> to vector<8x32xf32>
    %148 = vector.extract_strided_slice %48 {offsets = [8, 32], sizes = [8, 32], strides = [1, 1]} : vector<16x128xf32> to vector<8x32xf32>
    %cst_55 = arith.constant dense<0.000000e+00> : vector<8x8xf32>
    %149 = tpu.matmul %146, %147, %cst_55 {dimension_numbers = #tpu.dot_dimension_numbers<[1], [1], [0], [0], [0, 0, 1, 0], [], []>} : vector<8x32xf32>, vector<8x32xf32>, vector<8x8xf32> -> vector<8x8xf32>
    %cst_56 = arith.constant 0.176776692 : f32
    %150 = vector.broadcast %cst_56 : f32 to vector<8x8xf32>
    %151 = arith.mulf %149, %150 : vector<8x8xf32>
    %152 = vector.broadcast %126 : vector<1x8xf32> to vector<8x8xf32>
    %153 = arith.addf %151, %152 : vector<8x8xf32>
    %cst_57 = arith.constant dense<0xFF800000> : vector<8xf32>
    %154 = vector.multi_reduction <maximumf>, %153, %cst_57 [1] : vector<8x8xf32> to vector<8xf32>
    %155 = vector.shape_cast %154 : vector<8xf32> to vector<8x1xf32>
    %156 = vector.broadcast %155 : vector<8x1xf32> to vector<8x8xf32>
    %157 = arith.subf %153, %156 : vector<8x8xf32>
    %158 = math.exp %157 : vector<8x8xf32>
    %cst_58 = arith.constant dense<0.000000e+00> : vector<8xf32>
    %159 = vector.multi_reduction <add>, %158, %cst_58 [1] : vector<8x8xf32> to vector<8xf32>
    %160 = vector.shape_cast %159 : vector<8xf32> to vector<8x1xf32>
    %161 = vector.broadcast %160 : vector<8x1xf32> to vector<8x8xf32>
    %162 = arith.divf %158, %161 : vector<8x8xf32>
    %cst_59 = arith.constant dense<0.000000e+00> : vector<8x32xf32>
    %163 = tpu.matmul %162, %148, %cst_59 {dimension_numbers = #tpu.dot_dimension_numbers<[1], [0], [0], [1], [0, 0, 1, 1], [], []>} : vector<8x8xf32>, vector<8x32xf32>, vector<8x32xf32> -> vector<8x32xf32>
    %c8_60 = arith.constant 8 : index
    %c32_61 = arith.constant 32 : index
    %164 = vector.load %arg26[%c8_60, %c32_61] : memref<16x128xf32, #tpu.memory_space<vmem>>, vector<8x32xf32>
    tpu.vector_store %arg26[%c8_60, %c32_61], %163 {strides = array<i32>} : memref<16x128xf32, #tpu.memory_space<vmem>>, vector<8x32xf32>,
    %165 = vector.extract_strided_slice %46 {offsets = [8, 64], sizes = [8, 32], strides = [1, 1]} : vector<16x128xf32> to vector<8x32xf32>
    %166 = vector.extract_strided_slice %47 {offsets = [8, 64], sizes = [8, 32], strides = [1, 1]} : vector<16x128xf32> to vector<8x32xf32>
    %167 = vector.extract_strided_slice %48 {offsets = [8, 64], sizes = [8, 32], strides = [1, 1]} : vector<16x128xf32> to vector<8x32xf32>
    %cst_62 = arith.constant dense<0.000000e+00> : vector<8x8xf32>
    %168 = tpu.matmul %165, %166, %cst_62 {dimension_numbers = #tpu.dot_dimension_numbers<[1], [1], [0], [0], [0, 0, 1, 0], [], []>} : vector<8x32xf32>, vector<8x32xf32>, vector<8x8xf32> -> vector<8x8xf32>
    %cst_63 = arith.constant 0.176776692 : f32
    %169 = vector.broadcast %cst_63 : f32 to vector<8x8xf32>
    %170 = arith.mulf %168, %169 : vector<8x8xf32>
    %171 = vector.broadcast %126 : vector<1x8xf32> to vector<8x8xf32>
    %172 = arith.addf %170, %171 : vector<8x8xf32>
    %cst_64 = arith.constant dense<0xFF800000> : vector<8xf32>
    %173 = vector.multi_reduction <maximumf>, %172, %cst_64 [1] : vector<8x8xf32> to vector<8xf32>
    %174 = vector.shape_cast %173 : vector<8xf32> to vector<8x1xf32>
    %175 = vector.broadcast %174 : vector<8x1xf32> to vector<8x8xf32>
    %176 = arith.subf %172, %175 : vector<8x8xf32>
    %177 = math.exp %176 : vector<8x8xf32>
    %cst_65 = arith.constant dense<0.000000e+00> : vector<8xf32>
    %178 = vector.multi_reduction <add>, %177, %cst_65 [1] : vector<8x8xf32> to vector<8xf32>
    %179 = vector.shape_cast %178 : vector<8xf32> to vector<8x1xf32>
    %180 = vector.broadcast %179 : vector<8x1xf32> to vector<8x8xf32>
    %181 = arith.divf %177, %180 : vector<8x8xf32>
    %cst_66 = arith.constant dense<0.000000e+00> : vector<8x32xf32>
    %182 = tpu.matmul %181, %167, %cst_66 {dimension_numbers = #tpu.dot_dimension_numbers<[1], [0], [0], [1], [0, 0, 1, 1], [], []>} : vector<8x8xf32>, vector<8x32xf32>, vector<8x32xf32> -> vector<8x32xf32>
    %c8_67 = arith.constant 8 : index
    %c64_68 = arith.constant 64 : index
    %183 = vector.load %arg26[%c8_67, %c64_68] : memref<16x128xf32, #tpu.memory_space<vmem>>, vector<8x32xf32>
    tpu.vector_store %arg26[%c8_67, %c64_68], %182 {strides = array<i32>} : memref<16x128xf32, #tpu.memory_space<vmem>>, vector<8x32xf32>,
    %184 = vector.extract_strided_slice %46 {offsets = [8, 96], sizes = [8, 32], strides = [1, 1]} : vector<16x128xf32> to vector<8x32xf32>
    %185 = vector.extract_strided_slice %47 {offsets = [8, 96], sizes = [8, 32], strides = [1, 1]} : vector<16x128xf32> to vector<8x32xf32>
    %186 = vector.extract_strided_slice %48 {offsets = [8, 96], sizes = [8, 32], strides = [1, 1]} : vector<16x128xf32> to vector<8x32xf32>
    %cst_69 = arith.constant dense<0.000000e+00> : vector<8x8xf32>
    %187 = tpu.matmul %184, %185, %cst_69 {dimension_numbers = #tpu.dot_dimension_numbers<[1], [1], [0], [0], [0, 0, 1, 0], [], []>} : vector<8x32xf32>, vector<8x32xf32>, vector<8x8xf32> -> vector<8x8xf32>
    %cst_70 = arith.constant 0.176776692 : f32
    %188 = vector.broadcast %cst_70 : f32 to vector<8x8xf32>
    %189 = arith.mulf %187, %188 : vector<8x8xf32>
    %190 = vector.broadcast %126 : vector<1x8xf32> to vector<8x8xf32>
    %191 = arith.addf %189, %190 : vector<8x8xf32>
    %cst_71 = arith.constant dense<0xFF800000> : vector<8xf32>
    %192 = vector.multi_reduction <maximumf>, %191, %cst_71 [1] : vector<8x8xf32> to vector<8xf32>
    %193 = vector.shape_cast %192 : vector<8xf32> to vector<8x1xf32>
    %194 = vector.broadcast %193 : vector<8x1xf32> to vector<8x8xf32>
    %195 = arith.subf %191, %194 : vector<8x8xf32>
    %196 = math.exp %195 : vector<8x8xf32>
    %cst_72 = arith.constant dense<0.000000e+00> : vector<8xf32>
    %197 = vector.multi_reduction <add>, %196, %cst_72 [1] : vector<8x8xf32> to vector<8xf32>
    %198 = vector.shape_cast %197 : vector<8xf32> to vector<8x1xf32>
    %199 = vector.broadcast %198 : vector<8x1xf32> to vector<8x8xf32>
    %200 = arith.divf %196, %199 : vector<8x8xf32>
    %cst_73 = arith.constant dense<0.000000e+00> : vector<8x32xf32>
    %201 = tpu.matmul %200, %186, %cst_73 {dimension_numbers = #tpu.dot_dimension_numbers<[1], [0], [0], [1], [0, 0, 1, 1], [], []>} : vector<8x8xf32>, vector<8x32xf32>, vector<8x32xf32> -> vector<8x32xf32>
    %c8_74 = arith.constant 8 : index
    %c96_75 = arith.constant 96 : index
    %202 = vector.load %arg26[%c8_74, %c96_75] : memref<16x128xf32, #tpu.memory_space<vmem>>, vector<8x32xf32>
    tpu.vector_store %arg26[%c8_74, %c96_75], %201 {strides = array<i32>} : memref<16x128xf32, #tpu.memory_space<vmem>>, vector<8x32xf32>,
    %c0_76 = arith.constant 0 : index
    %c0_77 = arith.constant 0 : index
    %203 = vector.load %arg26[%c0_76, %c0_77] : memref<16x128xf32, #tpu.memory_space<vmem>>, vector<16x128xf32>
    %c0_78 = arith.constant 0 : index
    %c0_79 = arith.constant 0 : index
    %c0_80 = arith.constant 0 : index
    %204 = vector.load %arg9[%c0_78, %c0_79, %c0_80] : memref<2x128x128xf32, #tpu.memory_space<vmem>>, vector<1x128x128xf32>
    %205 = vector.shape_cast %204 : vector<1x128x128xf32> to vector<128x128xf32>
    %cst_81 = arith.constant dense<0.000000e+00> : vector<16x128xf32>
    %206 = tpu.matmul %203, %205, %cst_81 {dimension_numbers = #tpu.dot_dimension_numbers<[1], [0], [0], [1], [0, 0, 1, 1], [], []>} : vector<16x128xf32>, vector<128x128xf32>, vector<16x128xf32> -> vector<16x128xf32>
    %c0_82 = arith.constant 0 : index
    %c0_83 = arith.constant 0 : index
    %c0_84 = arith.constant 0 : index
    %207 = vector.load %arg10[%c0_82, %c0_83, %c0_84] : memref<2x1x128xf32, #tpu.memory_space<vmem>>, vector<1x1x128xf32>
    %208 = vector.shape_cast %207 : vector<1x1x128xf32> to vector<1x128xf32>
    %209 = vector.broadcast %208 : vector<1x128xf32> to vector<16x128xf32>
    %210 = arith.addf %206, %209 : vector<16x128xf32>
    %211 = arith.addf %33, %210 : vector<16x128xf32>
    %c0_85 = arith.constant 0 : index
    %c0_86 = arith.constant 0 : index
    %c0_87 = arith.constant 0 : index
    %212 = vector.load %arg11[%c0_85, %c0_86, %c0_87] : memref<2x1x128xf32, #tpu.memory_space<vmem>>, vector<1x1x128xf32>
    %213 = vector.shape_cast %212 : vector<1x1x128xf32> to vector<1x128xf32>
    %c0_88 = arith.constant 0 : index
    %c0_89 = arith.constant 0 : index
    %c0_90 = arith.constant 0 : index
    %214 = vector.load %arg12[%c0_88, %c0_89, %c0_90] : memref<2x1x128xf32, #tpu.memory_space<vmem>>, vector<1x1x128xf32>
    %215 = vector.shape_cast %214 : vector<1x1x128xf32> to vector<1x128xf32>
    %cst_91 = arith.constant dense<0.000000e+00> : vector<16xf32>
    %216 = vector.multi_reduction <add>, %211, %cst_91 [1] : vector<16x128xf32> to vector<16xf32>
    %217 = vector.shape_cast %216 : vector<16xf32> to vector<16x1xf32>
    %cst_92 = arith.constant 1.280000e+02 : f32
    %218 = vector.broadcast %cst_92 : f32 to vector<16x1xf32>
    %219 = arith.divf %217, %218 : vector<16x1xf32>
    %220 = vector.broadcast %219 : vector<16x1xf32> to vector<16x128xf32>
    %221 = arith.subf %211, %220 : vector<16x128xf32>
    %222 = arith.mulf %221, %221 : vector<16x128xf32>
    %cst_93 = arith.constant dense<0.000000e+00> : vector<16xf32>
    %223 = vector.multi_reduction <add>, %222, %cst_93 [1] : vector<16x128xf32> to vector<16xf32>
    %224 = vector.shape_cast %223 : vector<16xf32> to vector<16x1xf32>
    %cst_94 = arith.constant 1.280000e+02 : f32
    %225 = vector.broadcast %cst_94 : f32 to vector<16x1xf32>
    %226 = arith.divf %224, %225 : vector<16x1xf32>
    %227 = vector.broadcast %219 : vector<16x1xf32> to vector<16x128xf32>
    %228 = arith.subf %211, %227 : vector<16x128xf32>
    %cst_95 = arith.constant 9.99999996E-13 : f32
    %229 = vector.broadcast %cst_95 : f32 to vector<16x1xf32>
    %230 = arith.addf %226, %229 : vector<16x1xf32>
    %231 = math.rsqrt %230 : vector<16x1xf32>
    %232 = vector.broadcast %231 : vector<16x1xf32> to vector<16x128xf32>
    %233 = arith.mulf %228, %232 : vector<16x128xf32>
    %234 = vector.broadcast %213 : vector<1x128xf32> to vector<16x128xf32>
    %235 = arith.mulf %233, %234 : vector<16x128xf32>
    %236 = vector.broadcast %215 : vector<1x128xf32> to vector<16x128xf32>
    %237 = arith.addf %235, %236 : vector<16x128xf32>
    %c0_96 = arith.constant 0 : index
    %c0_97 = arith.constant 0 : index
    %c0_98 = arith.constant 0 : index
    %238 = vector.load %arg13[%c0_96, %c0_97, %c0_98] : memref<2x128x256xf32, #tpu.memory_space<vmem>>, vector<1x128x256xf32>
    %239 = vector.shape_cast %238 : vector<1x128x256xf32> to vector<128x256xf32>
    %cst_99 = arith.constant dense<0.000000e+00> : vector<16x256xf32>
    %240 = tpu.matmul %237, %239, %cst_99 {dimension_numbers = #tpu.dot_dimension_numbers<[1], [0], [0], [1], [0, 0, 1, 1], [], []>} : vector<16x128xf32>, vector<128x256xf32>, vector<16x256xf32> -> vector<16x256xf32>
    %c0_100 = arith.constant 0 : index
    %c0_101 = arith.constant 0 : index
    %c0_102 = arith.constant 0 : index
    %241 = vector.load %arg14[%c0_100, %c0_101, %c0_102] : memref<2x1x256xf32, #tpu.memory_space<vmem>>, vector<1x1x256xf32>
    %242 = vector.shape_cast %241 : vector<1x1x256xf32> to vector<1x256xf32>
    %243 = vector.broadcast %242 : vector<1x256xf32> to vector<16x256xf32>
    %244 = arith.addf %240, %243 : vector<16x256xf32>
    %245 = arith.mulf %244, %244 : vector<16x256xf32>
    %246 = arith.mulf %244, %245 : vector<16x256xf32>
    %cst_103 = arith.constant 4.471500e-02 : f32
    %247 = vector.broadcast %cst_103 : f32 to vector<16x256xf32>
    %248 = arith.mulf %247, %246 : vector<16x256xf32>
    %249 = arith.addf %244, %248 : vector<16x256xf32>
    %cst_104 = arith.constant 0.797884583 : f32
    %250 = vector.broadcast %cst_104 : f32 to vector<16x256xf32>
    %251 = arith.mulf %250, %249 : vector<16x256xf32>
    %252 = math.tanh %251 : vector<16x256xf32>
    %cst_105 = arith.constant 1.000000e+00 : f32
    %253 = vector.broadcast %cst_105 : f32 to vector<16x256xf32>
    %254 = arith.addf %253, %252 : vector<16x256xf32>
    %cst_106 = arith.constant 5.000000e-01 : f32
    %255 = vector.broadcast %cst_106 : f32 to vector<16x256xf32>
    %256 = arith.mulf %255, %254 : vector<16x256xf32>
    %257 = arith.mulf %244, %256 : vector<16x256xf32>
    %c0_107 = arith.constant 0 : index
    %c0_108 = arith.constant 0 : index
    %c0_109 = arith.constant 0 : index
    %258 = vector.load %arg15[%c0_107, %c0_108, %c0_109] : memref<2x256x128xf32, #tpu.memory_space<vmem>>, vector<1x256x128xf32>
    %259 = vector.shape_cast %258 : vector<1x256x128xf32> to vector<256x128xf32>
    %cst_110 = arith.constant dense<0.000000e+00> : vector<16x128xf32>
    %260 = tpu.matmul %257, %259, %cst_110 {dimension_numbers = #tpu.dot_dimension_numbers<[1], [0], [0], [1], [0, 0, 1, 1], [], []>} : vector<16x256xf32>, vector<256x128xf32>, vector<16x128xf32> -> vector<16x128xf32>
    %c0_111 = arith.constant 0 : index
    %c0_112 = arith.constant 0 : index
    %c0_113 = arith.constant 0 : index
    %261 = vector.load %arg16[%c0_111, %c0_112, %c0_113] : memref<2x1x128xf32, #tpu.memory_space<vmem>>, vector<1x1x128xf32>
    %262 = vector.shape_cast %261 : vector<1x1x128xf32> to vector<1x128xf32>
    %263 = vector.broadcast %262 : vector<1x128xf32> to vector<16x128xf32>
    %264 = arith.addf %260, %263 : vector<16x128xf32>
    %265 = arith.addf %237, %264 : vector<16x128xf32>
    %c0_114 = arith.constant 0 : index
    %c0_115 = arith.constant 0 : index
    %c0_116 = arith.constant 0 : index
    %266 = vector.load %arg17[%c0_114, %c0_115, %c0_116] : memref<2x1x128xf32, #tpu.memory_space<vmem>>, vector<1x1x128xf32>
    %267 = vector.shape_cast %266 : vector<1x1x128xf32> to vector<1x128xf32>
    %c0_117 = arith.constant 0 : index
    %c0_118 = arith.constant 0 : index
    %c0_119 = arith.constant 0 : index
    %268 = vector.load %arg18[%c0_117, %c0_118, %c0_119] : memref<2x1x128xf32, #tpu.memory_space<vmem>>, vector<1x1x128xf32>
    %269 = vector.shape_cast %268 : vector<1x1x128xf32> to vector<1x128xf32>
    %cst_120 = arith.constant dense<0.000000e+00> : vector<16xf32>
    %270 = vector.multi_reduction <add>, %265, %cst_120 [1] : vector<16x128xf32> to vector<16xf32>
    %271 = vector.shape_cast %270 : vector<16xf32> to vector<16x1xf32>
    %cst_121 = arith.constant 1.280000e+02 : f32
    %272 = vector.broadcast %cst_121 : f32 to vector<16x1xf32>
    %273 = arith.divf %271, %272 : vector<16x1xf32>
    %274 = vector.broadcast %273 : vector<16x1xf32> to vector<16x128xf32>
    %275 = arith.subf %265, %274 : vector<16x128xf32>
    %276 = arith.mulf %275, %275 : vector<16x128xf32>
    %cst_122 = arith.constant dense<0.000000e+00> : vector<16xf32>
    %277 = vector.multi_reduction <add>, %276, %cst_122 [1] : vector<16x128xf32> to vector<16xf32>
    %278 = vector.shape_cast %277 : vector<16xf32> to vector<16x1xf32>
    %cst_123 = arith.constant 1.280000e+02 : f32
    %279 = vector.broadcast %cst_123 : f32 to vector<16x1xf32>
    %280 = arith.divf %278, %279 : vector<16x1xf32>
    %281 = vector.broadcast %273 : vector<16x1xf32> to vector<16x128xf32>
    %282 = arith.subf %265, %281 : vector<16x128xf32>
    %cst_124 = arith.constant 9.99999996E-13 : f32
    %283 = vector.broadcast %cst_124 : f32 to vector<16x1xf32>
    %284 = arith.addf %280, %283 : vector<16x1xf32>
    %285 = math.rsqrt %284 : vector<16x1xf32>
    %286 = vector.broadcast %285 : vector<16x1xf32> to vector<16x128xf32>
    %287 = arith.mulf %282, %286 : vector<16x128xf32>
    %288 = vector.broadcast %267 : vector<1x128xf32> to vector<16x128xf32>
    %289 = arith.mulf %287, %288 : vector<16x128xf32>
    %290 = vector.broadcast %269 : vector<1x128xf32> to vector<16x128xf32>
    %291 = arith.addf %289, %290 : vector<16x128xf32>
    %c1 = arith.constant 1 : index
    %c0_125 = arith.constant 0 : index
    %c0_126 = arith.constant 0 : index
    %292 = vector.load %arg7[%c1, %c0_125, %c0_126] : memref<2x128x384xf32, #tpu.memory_space<vmem>>, vector<1x128x384xf32>
    %293 = vector.shape_cast %292 : vector<1x128x384xf32> to vector<128x384xf32>
    %cst_127 = arith.constant dense<0.000000e+00> : vector<16x384xf32>
    %294 = tpu.matmul %291, %293, %cst_127 {dimension_numbers = #tpu.dot_dimension_numbers<[1], [0], [0], [1], [0, 0, 1, 1], [], []>} : vector<16x128xf32>, vector<128x384xf32>, vector<16x384xf32> -> vector<16x384xf32>
    %c1_128 = arith.constant 1 : index
    %c0_129 = arith.constant 0 : index
    %c0_130 = arith.constant 0 : index
    %295 = vector.load %arg8[%c1_128, %c0_129, %c0_130] : memref<2x1x384xf32, #tpu.memory_space<vmem>>, vector<1x1x384xf32>
    %296 = vector.shape_cast %295 : vector<1x1x384xf32> to vector<1x384xf32>
    %297 = vector.broadcast %296 : vector<1x384xf32> to vector<16x384xf32>
    %298 = arith.addf %294, %297 : vector<16x384xf32>
    %299 = vector.extract_strided_slice %298 {offsets = [0, 0], sizes = [16, 128], strides = [1, 1]} : vector<16x384xf32> to vector<16x128xf32>
    %300 = vector.extract_strided_slice %298 {offsets = [0, 128], sizes = [16, 128], strides = [1, 1]} : vector<16x384xf32> to vector<16x128xf32>
    %301 = vector.extract_strided_slice %298 {offsets = [0, 256], sizes = [16, 128], strides = [1, 1]} : vector<16x384xf32> to vector<16x128xf32>
    %302 = vector.extract_strided_slice %38 {offsets = [0, 0], sizes = [1, 8], strides = [1, 1]} : vector<2x8xf32> to vector<1x8xf32>
    %303 = vector.extract_strided_slice %299 {offsets = [0, 0], sizes = [8, 32], strides = [1, 1]} : vector<16x128xf32> to vector<8x32xf32>
    %304 = vector.extract_strided_slice %300 {offsets = [0, 0], sizes = [8, 32], strides = [1, 1]} : vector<16x128xf32> to vector<8x32xf32>
    %305 = vector.extract_strided_slice %301 {offsets = [0, 0], sizes = [8, 32], strides = [1, 1]} : vector<16x128xf32> to vector<8x32xf32>
    %cst_131 = arith.constant dense<0.000000e+00> : vector<8x8xf32>
    %306 = tpu.matmul %303, %304, %cst_131 {dimension_numbers = #tpu.dot_dimension_numbers<[1], [1], [0], [0], [0, 0, 1, 0], [], []>} : vector<8x32xf32>, vector<8x32xf32>, vector<8x8xf32> -> vector<8x8xf32>
    %cst_132 = arith.constant 0.176776692 : f32
    %307 = vector.broadcast %cst_132 : f32 to vector<8x8xf32>
    %308 = arith.mulf %306, %307 : vector<8x8xf32>
    %309 = vector.broadcast %302 : vector<1x8xf32> to vector<8x8xf32>
    %310 = arith.addf %308, %309 : vector<8x8xf32>
    %cst_133 = arith.constant dense<0xFF800000> : vector<8xf32>
    %311 = vector.multi_reduction <maximumf>, %310, %cst_133 [1] : vector<8x8xf32> to vector<8xf32>
    %312 = vector.shape_cast %311 : vector<8xf32> to vector<8x1xf32>
    %313 = vector.broadcast %312 : vector<8x1xf32> to vector<8x8xf32>
    %314 = arith.subf %310, %313 : vector<8x8xf32>
    %315 = math.exp %314 : vector<8x8xf32>
    %cst_134 = arith.constant dense<0.000000e+00> : vector<8xf32>
    %316 = vector.multi_reduction <add>, %315, %cst_134 [1] : vector<8x8xf32> to vector<8xf32>
    %317 = vector.shape_cast %316 : vector<8xf32> to vector<8x1xf32>
    %318 = vector.broadcast %317 : vector<8x1xf32> to vector<8x8xf32>
    %319 = arith.divf %315, %318 : vector<8x8xf32>
    %cst_135 = arith.constant dense<0.000000e+00> : vector<8x32xf32>
    %320 = tpu.matmul %319, %305, %cst_135 {dimension_numbers = #tpu.dot_dimension_numbers<[1], [0], [0], [1], [0, 0, 1, 1], [], []>} : vector<8x8xf32>, vector<8x32xf32>, vector<8x32xf32> -> vector<8x32xf32>
    %c0_136 = arith.constant 0 : index
    %c0_137 = arith.constant 0 : index
    %321 = vector.load %arg26[%c0_136, %c0_137] : memref<16x128xf32, #tpu.memory_space<vmem>>, vector<8x32xf32>
    tpu.vector_store %arg26[%c0_136, %c0_137], %320 {strides = array<i32>} : memref<16x128xf32, #tpu.memory_space<vmem>>, vector<8x32xf32>,
    %322 = vector.extract_strided_slice %299 {offsets = [0, 32], sizes = [8, 32], strides = [1, 1]} : vector<16x128xf32> to vector<8x32xf32>
    %323 = vector.extract_strided_slice %300 {offsets = [0, 32], sizes = [8, 32], strides = [1, 1]} : vector<16x128xf32> to vector<8x32xf32>
    %324 = vector.extract_strided_slice %301 {offsets = [0, 32], sizes = [8, 32], strides = [1, 1]} : vector<16x128xf32> to vector<8x32xf32>
    %cst_138 = arith.constant dense<0.000000e+00> : vector<8x8xf32>
    %325 = tpu.matmul %322, %323, %cst_138 {dimension_numbers = #tpu.dot_dimension_numbers<[1], [1], [0], [0], [0, 0, 1, 0], [], []>} : vector<8x32xf32>, vector<8x32xf32>, vector<8x8xf32> -> vector<8x8xf32>
    %cst_139 = arith.constant 0.176776692 : f32
    %326 = vector.broadcast %cst_139 : f32 to vector<8x8xf32>
    %327 = arith.mulf %325, %326 : vector<8x8xf32>
    %328 = vector.broadcast %302 : vector<1x8xf32> to vector<8x8xf32>
    %329 = arith.addf %327, %328 : vector<8x8xf32>
    %cst_140 = arith.constant dense<0xFF800000> : vector<8xf32>
    %330 = vector.multi_reduction <maximumf>, %329, %cst_140 [1] : vector<8x8xf32> to vector<8xf32>
    %331 = vector.shape_cast %330 : vector<8xf32> to vector<8x1xf32>
    %332 = vector.broadcast %331 : vector<8x1xf32> to vector<8x8xf32>
    %333 = arith.subf %329, %332 : vector<8x8xf32>
    %334 = math.exp %333 : vector<8x8xf32>
    %cst_141 = arith.constant dense<0.000000e+00> : vector<8xf32>
    %335 = vector.multi_reduction <add>, %334, %cst_141 [1] : vector<8x8xf32> to vector<8xf32>
    %336 = vector.shape_cast %335 : vector<8xf32> to vector<8x1xf32>
    %337 = vector.broadcast %336 : vector<8x1xf32> to vector<8x8xf32>
    %338 = arith.divf %334, %337 : vector<8x8xf32>
    %cst_142 = arith.constant dense<0.000000e+00> : vector<8x32xf32>
    %339 = tpu.matmul %338, %324, %cst_142 {dimension_numbers = #tpu.dot_dimension_numbers<[1], [0], [0], [1], [0, 0, 1, 1], [], []>} : vector<8x8xf32>, vector<8x32xf32>, vector<8x32xf32> -> vector<8x32xf32>
    %c0_143 = arith.constant 0 : index
    %c32_144 = arith.constant 32 : index
    %340 = vector.load %arg26[%c0_143, %c32_144] : memref<16x128xf32, #tpu.memory_space<vmem>>, vector<8x32xf32>
    tpu.vector_store %arg26[%c0_143, %c32_144], %339 {strides = array<i32>} : memref<16x128xf32, #tpu.memory_space<vmem>>, vector<8x32xf32>,
    %341 = vector.extract_strided_slice %299 {offsets = [0, 64], sizes = [8, 32], strides = [1, 1]} : vector<16x128xf32> to vector<8x32xf32>
    %342 = vector.extract_strided_slice %300 {offsets = [0, 64], sizes = [8, 32], strides = [1, 1]} : vector<16x128xf32> to vector<8x32xf32>
    %343 = vector.extract_strided_slice %301 {offsets = [0, 64], sizes = [8, 32], strides = [1, 1]} : vector<16x128xf32> to vector<8x32xf32>
    %cst_145 = arith.constant dense<0.000000e+00> : vector<8x8xf32>
    %344 = tpu.matmul %341, %342, %cst_145 {dimension_numbers = #tpu.dot_dimension_numbers<[1], [1], [0], [0], [0, 0, 1, 0], [], []>} : vector<8x32xf32>, vector<8x32xf32>, vector<8x8xf32> -> vector<8x8xf32>
    %cst_146 = arith.constant 0.176776692 : f32
    %345 = vector.broadcast %cst_146 : f32 to vector<8x8xf32>
    %346 = arith.mulf %344, %345 : vector<8x8xf32>
    %347 = vector.broadcast %302 : vector<1x8xf32> to vector<8x8xf32>
    %348 = arith.addf %346, %347 : vector<8x8xf32>
    %cst_147 = arith.constant dense<0xFF800000> : vector<8xf32>
    %349 = vector.multi_reduction <maximumf>, %348, %cst_147 [1] : vector<8x8xf32> to vector<8xf32>
    %350 = vector.shape_cast %349 : vector<8xf32> to vector<8x1xf32>
    %351 = vector.broadcast %350 : vector<8x1xf32> to vector<8x8xf32>
    %352 = arith.subf %348, %351 : vector<8x8xf32>
    %353 = math.exp %352 : vector<8x8xf32>
    %cst_148 = arith.constant dense<0.000000e+00> : vector<8xf32>
    %354 = vector.multi_reduction <add>, %353, %cst_148 [1] : vector<8x8xf32> to vector<8xf32>
    %355 = vector.shape_cast %354 : vector<8xf32> to vector<8x1xf32>
    %356 = vector.broadcast %355 : vector<8x1xf32> to vector<8x8xf32>
    %357 = arith.divf %353, %356 : vector<8x8xf32>
    %cst_149 = arith.constant dense<0.000000e+00> : vector<8x32xf32>
    %358 = tpu.matmul %357, %343, %cst_149 {dimension_numbers = #tpu.dot_dimension_numbers<[1], [0], [0], [1], [0, 0, 1, 1], [], []>} : vector<8x8xf32>, vector<8x32xf32>, vector<8x32xf32> -> vector<8x32xf32>
    %c0_150 = arith.constant 0 : index
    %c64_151 = arith.constant 64 : index
    %359 = vector.load %arg26[%c0_150, %c64_151] : memref<16x128xf32, #tpu.memory_space<vmem>>, vector<8x32xf32>
    tpu.vector_store %arg26[%c0_150, %c64_151], %358 {strides = array<i32>} : memref<16x128xf32, #tpu.memory_space<vmem>>, vector<8x32xf32>,
    %360 = vector.extract_strided_slice %299 {offsets = [0, 96], sizes = [8, 32], strides = [1, 1]} : vector<16x128xf32> to vector<8x32xf32>
    %361 = vector.extract_strided_slice %300 {offsets = [0, 96], sizes = [8, 32], strides = [1, 1]} : vector<16x128xf32> to vector<8x32xf32>
    %362 = vector.extract_strided_slice %301 {offsets = [0, 96], sizes = [8, 32], strides = [1, 1]} : vector<16x128xf32> to vector<8x32xf32>
    %cst_152 = arith.constant dense<0.000000e+00> : vector<8x8xf32>
    %363 = tpu.matmul %360, %361, %cst_152 {dimension_numbers = #tpu.dot_dimension_numbers<[1], [1], [0], [0], [0, 0, 1, 0], [], []>} : vector<8x32xf32>, vector<8x32xf32>, vector<8x8xf32> -> vector<8x8xf32>
    %cst_153 = arith.constant 0.176776692 : f32
    %364 = vector.broadcast %cst_153 : f32 to vector<8x8xf32>
    %365 = arith.mulf %363, %364 : vector<8x8xf32>
    %366 = vector.broadcast %302 : vector<1x8xf32> to vector<8x8xf32>
    %367 = arith.addf %365, %366 : vector<8x8xf32>
    %cst_154 = arith.constant dense<0xFF800000> : vector<8xf32>
    %368 = vector.multi_reduction <maximumf>, %367, %cst_154 [1] : vector<8x8xf32> to vector<8xf32>
    %369 = vector.shape_cast %368 : vector<8xf32> to vector<8x1xf32>
    %370 = vector.broadcast %369 : vector<8x1xf32> to vector<8x8xf32>
    %371 = arith.subf %367, %370 : vector<8x8xf32>
    %372 = math.exp %371 : vector<8x8xf32>
    %cst_155 = arith.constant dense<0.000000e+00> : vector<8xf32>
    %373 = vector.multi_reduction <add>, %372, %cst_155 [1] : vector<8x8xf32> to vector<8xf32>
    %374 = vector.shape_cast %373 : vector<8xf32> to vector<8x1xf32>
    %375 = vector.broadcast %374 : vector<8x1xf32> to vector<8x8xf32>
    %376 = arith.divf %372, %375 : vector<8x8xf32>
    %cst_156 = arith.constant dense<0.000000e+00> : vector<8x32xf32>
    %377 = tpu.matmul %376, %362, %cst_156 {dimension_numbers = #tpu.dot_dimension_numbers<[1], [0], [0], [1], [0, 0, 1, 1], [], []>} : vector<8x8xf32>, vector<8x32xf32>, vector<8x32xf32> -> vector<8x32xf32>
    %c0_157 = arith.constant 0 : index
    %c96_158 = arith.constant 96 : index
    %378 = vector.load %arg26[%c0_157, %c96_158] : memref<16x128xf32, #tpu.memory_space<vmem>>, vector<8x32xf32>
    tpu.vector_store %arg26[%c0_157, %c96_158], %377 {strides = array<i32>} : memref<16x128xf32, #tpu.memory_space<vmem>>, vector<8x32xf32>,
    %379 = vector.extract_strided_slice %38 {offsets = [1, 0], sizes = [1, 8], strides = [1, 1]} : vector<2x8xf32> to vector<1x8xf32>
    %380 = vector.extract_strided_slice %299 {offsets = [8, 0], sizes = [8, 32], strides = [1, 1]} : vector<16x128xf32> to vector<8x32xf32>
    %381 = vector.extract_strided_slice %300 {offsets = [8, 0], sizes = [8, 32], strides = [1, 1]} : vector<16x128xf32> to vector<8x32xf32>
    %382 = vector.extract_strided_slice %301 {offsets = [8, 0], sizes = [8, 32], strides = [1, 1]} : vector<16x128xf32> to vector<8x32xf32>
    %cst_159 = arith.constant dense<0.000000e+00> : vector<8x8xf32>
    %383 = tpu.matmul %380, %381, %cst_159 {dimension_numbers = #tpu.dot_dimension_numbers<[1], [1], [0], [0], [0, 0, 1, 0], [], []>} : vector<8x32xf32>, vector<8x32xf32>, vector<8x8xf32> -> vector<8x8xf32>
    %cst_160 = arith.constant 0.176776692 : f32
    %384 = vector.broadcast %cst_160 : f32 to vector<8x8xf32>
    %385 = arith.mulf %383, %384 : vector<8x8xf32>
    %386 = vector.broadcast %379 : vector<1x8xf32> to vector<8x8xf32>
    %387 = arith.addf %385, %386 : vector<8x8xf32>
    %cst_161 = arith.constant dense<0xFF800000> : vector<8xf32>
    %388 = vector.multi_reduction <maximumf>, %387, %cst_161 [1] : vector<8x8xf32> to vector<8xf32>
    %389 = vector.shape_cast %388 : vector<8xf32> to vector<8x1xf32>
    %390 = vector.broadcast %389 : vector<8x1xf32> to vector<8x8xf32>
    %391 = arith.subf %387, %390 : vector<8x8xf32>
    %392 = math.exp %391 : vector<8x8xf32>
    %cst_162 = arith.constant dense<0.000000e+00> : vector<8xf32>
    %393 = vector.multi_reduction <add>, %392, %cst_162 [1] : vector<8x8xf32> to vector<8xf32>
    %394 = vector.shape_cast %393 : vector<8xf32> to vector<8x1xf32>
    %395 = vector.broadcast %394 : vector<8x1xf32> to vector<8x8xf32>
    %396 = arith.divf %392, %395 : vector<8x8xf32>
    %cst_163 = arith.constant dense<0.000000e+00> : vector<8x32xf32>
    %397 = tpu.matmul %396, %382, %cst_163 {dimension_numbers = #tpu.dot_dimension_numbers<[1], [0], [0], [1], [0, 0, 1, 1], [], []>} : vector<8x8xf32>, vector<8x32xf32>, vector<8x32xf32> -> vector<8x32xf32>
    %c8_164 = arith.constant 8 : index
    %c0_165 = arith.constant 0 : index
    %398 = vector.load %arg26[%c8_164, %c0_165] : memref<16x128xf32, #tpu.memory_space<vmem>>, vector<8x32xf32>
    tpu.vector_store %arg26[%c8_164, %c0_165], %397 {strides = array<i32>} : memref<16x128xf32, #tpu.memory_space<vmem>>, vector<8x32xf32>,
    %399 = vector.extract_strided_slice %299 {offsets = [8, 32], sizes = [8, 32], strides = [1, 1]} : vector<16x128xf32> to vector<8x32xf32>
    %400 = vector.extract_strided_slice %300 {offsets = [8, 32], sizes = [8, 32], strides = [1, 1]} : vector<16x128xf32> to vector<8x32xf32>
    %401 = vector.extract_strided_slice %301 {offsets = [8, 32], sizes = [8, 32], strides = [1, 1]} : vector<16x128xf32> to vector<8x32xf32>
    %cst_166 = arith.constant dense<0.000000e+00> : vector<8x8xf32>
    %402 = tpu.matmul %399, %400, %cst_166 {dimension_numbers = #tpu.dot_dimension_numbers<[1], [1], [0], [0], [0, 0, 1, 0], [], []>} : vector<8x32xf32>, vector<8x32xf32>, vector<8x8xf32> -> vector<8x8xf32>
    %cst_167 = arith.constant 0.176776692 : f32
    %403 = vector.broadcast %cst_167 : f32 to vector<8x8xf32>
    %404 = arith.mulf %402, %403 : vector<8x8xf32>
    %405 = vector.broadcast %379 : vector<1x8xf32> to vector<8x8xf32>
    %406 = arith.addf %404, %405 : vector<8x8xf32>
    %cst_168 = arith.constant dense<0xFF800000> : vector<8xf32>
    %407 = vector.multi_reduction <maximumf>, %406, %cst_168 [1] : vector<8x8xf32> to vector<8xf32>
    %408 = vector.shape_cast %407 : vector<8xf32> to vector<8x1xf32>
    %409 = vector.broadcast %408 : vector<8x1xf32> to vector<8x8xf32>
    %410 = arith.subf %406, %409 : vector<8x8xf32>
    %411 = math.exp %410 : vector<8x8xf32>
    %cst_169 = arith.constant dense<0.000000e+00> : vector<8xf32>
    %412 = vector.multi_reduction <add>, %411, %cst_169 [1] : vector<8x8xf32> to vector<8xf32>
    %413 = vector.shape_cast %412 : vector<8xf32> to vector<8x1xf32>
    %414 = vector.broadcast %413 : vector<8x1xf32> to vector<8x8xf32>
    %415 = arith.divf %411, %414 : vector<8x8xf32>
    %cst_170 = arith.constant dense<0.000000e+00> : vector<8x32xf32>
    %416 = tpu.matmul %415, %401, %cst_170 {dimension_numbers = #tpu.dot_dimension_numbers<[1], [0], [0], [1], [0, 0, 1, 1], [], []>} : vector<8x8xf32>, vector<8x32xf32>, vector<8x32xf32> -> vector<8x32xf32>
    %c8_171 = arith.constant 8 : index
    %c32_172 = arith.constant 32 : index
    %417 = vector.load %arg26[%c8_171, %c32_172] : memref<16x128xf32, #tpu.memory_space<vmem>>, vector<8x32xf32>
    tpu.vector_store %arg26[%c8_171, %c32_172], %416 {strides = array<i32>} : memref<16x128xf32, #tpu.memory_space<vmem>>, vector<8x32xf32>,
    %418 = vector.extract_strided_slice %299 {offsets = [8, 64], sizes = [8, 32], strides = [1, 1]} : vector<16x128xf32> to vector<8x32xf32>
    %419 = vector.extract_strided_slice %300 {offsets = [8, 64], sizes = [8, 32], strides = [1, 1]} : vector<16x128xf32> to vector<8x32xf32>
    %420 = vector.extract_strided_slice %301 {offsets = [8, 64], sizes = [8, 32], strides = [1, 1]} : vector<16x128xf32> to vector<8x32xf32>
    %cst_173 = arith.constant dense<0.000000e+00> : vector<8x8xf32>
    %421 = tpu.matmul %418, %419, %cst_173 {dimension_numbers = #tpu.dot_dimension_numbers<[1], [1], [0], [0], [0, 0, 1, 0], [], []>} : vector<8x32xf32>, vector<8x32xf32>, vector<8x8xf32> -> vector<8x8xf32>
    %cst_174 = arith.constant 0.176776692 : f32
    %422 = vector.broadcast %cst_174 : f32 to vector<8x8xf32>
    %423 = arith.mulf %421, %422 : vector<8x8xf32>
    %424 = vector.broadcast %379 : vector<1x8xf32> to vector<8x8xf32>
    %425 = arith.addf %423, %424 : vector<8x8xf32>
    %cst_175 = arith.constant dense<0xFF800000> : vector<8xf32>
    %426 = vector.multi_reduction <maximumf>, %425, %cst_175 [1] : vector<8x8xf32> to vector<8xf32>
    %427 = vector.shape_cast %426 : vector<8xf32> to vector<8x1xf32>
    %428 = vector.broadcast %427 : vector<8x1xf32> to vector<8x8xf32>
    %429 = arith.subf %425, %428 : vector<8x8xf32>
    %430 = math.exp %429 : vector<8x8xf32>
    %cst_176 = arith.constant dense<0.000000e+00> : vector<8xf32>
    %431 = vector.multi_reduction <add>, %430, %cst_176 [1] : vector<8x8xf32> to vector<8xf32>
    %432 = vector.shape_cast %431 : vector<8xf32> to vector<8x1xf32>
    %433 = vector.broadcast %432 : vector<8x1xf32> to vector<8x8xf32>
    %434 = arith.divf %430, %433 : vector<8x8xf32>
    %cst_177 = arith.constant dense<0.000000e+00> : vector<8x32xf32>
    %435 = tpu.matmul %434, %420, %cst_177 {dimension_numbers = #tpu.dot_dimension_numbers<[1], [0], [0], [1], [0, 0, 1, 1], [], []>} : vector<8x8xf32>, vector<8x32xf32>, vector<8x32xf32> -> vector<8x32xf32>
    %c8_178 = arith.constant 8 : index
    %c64_179 = arith.constant 64 : index
    %436 = vector.load %arg26[%c8_178, %c64_179] : memref<16x128xf32, #tpu.memory_space<vmem>>, vector<8x32xf32>
    tpu.vector_store %arg26[%c8_178, %c64_179], %435 {strides = array<i32>} : memref<16x128xf32, #tpu.memory_space<vmem>>, vector<8x32xf32>,
    %437 = vector.extract_strided_slice %299 {offsets = [8, 96], sizes = [8, 32], strides = [1, 1]} : vector<16x128xf32> to vector<8x32xf32>
    %438 = vector.extract_strided_slice %300 {offsets = [8, 96], sizes = [8, 32], strides = [1, 1]} : vector<16x128xf32> to vector<8x32xf32>
    %439 = vector.extract_strided_slice %301 {offsets = [8, 96], sizes = [8, 32], strides = [1, 1]} : vector<16x128xf32> to vector<8x32xf32>
    %cst_180 = arith.constant dense<0.000000e+00> : vector<8x8xf32>
    %440 = tpu.matmul %437, %438, %cst_180 {dimension_numbers = #tpu.dot_dimension_numbers<[1], [1], [0], [0], [0, 0, 1, 0], [], []>} : vector<8x32xf32>, vector<8x32xf32>, vector<8x8xf32> -> vector<8x8xf32>
    %cst_181 = arith.constant 0.176776692 : f32
    %441 = vector.broadcast %cst_181 : f32 to vector<8x8xf32>
    %442 = arith.mulf %440, %441 : vector<8x8xf32>
    %443 = vector.broadcast %379 : vector<1x8xf32> to vector<8x8xf32>
    %444 = arith.addf %442, %443 : vector<8x8xf32>
    %cst_182 = arith.constant dense<0xFF800000> : vector<8xf32>
    %445 = vector.multi_reduction <maximumf>, %444, %cst_182 [1] : vector<8x8xf32> to vector<8xf32>
    %446 = vector.shape_cast %445 : vector<8xf32> to vector<8x1xf32>
    %447 = vector.broadcast %446 : vector<8x1xf32> to vector<8x8xf32>
    %448 = arith.subf %444, %447 : vector<8x8xf32>
    %449 = math.exp %448 : vector<8x8xf32>
    %cst_183 = arith.constant dense<0.000000e+00> : vector<8xf32>
    %450 = vector.multi_reduction <add>, %449, %cst_183 [1] : vector<8x8xf32> to vector<8xf32>
    %451 = vector.shape_cast %450 : vector<8xf32> to vector<8x1xf32>
    %452 = vector.broadcast %451 : vector<8x1xf32> to vector<8x8xf32>
    %453 = arith.divf %449, %452 : vector<8x8xf32>
    %cst_184 = arith.constant dense<0.000000e+00> : vector<8x32xf32>
    %454 = tpu.matmul %453, %439, %cst_184 {dimension_numbers = #tpu.dot_dimension_numbers<[1], [0], [0], [1], [0, 0, 1, 1], [], []>} : vector<8x8xf32>, vector<8x32xf32>, vector<8x32xf32> -> vector<8x32xf32>
    %c8_185 = arith.constant 8 : index
    %c96_186 = arith.constant 96 : index
    %455 = vector.load %arg26[%c8_185, %c96_186] : memref<16x128xf32, #tpu.memory_space<vmem>>, vector<8x32xf32>
    tpu.vector_store %arg26[%c8_185, %c96_186], %454 {strides = array<i32>} : memref<16x128xf32, #tpu.memory_space<vmem>>, vector<8x32xf32>,
    %c0_187 = arith.constant 0 : index
    %c0_188 = arith.constant 0 : index
    %456 = vector.load %arg26[%c0_187, %c0_188] : memref<16x128xf32, #tpu.memory_space<vmem>>, vector<16x128xf32>
    %c1_189 = arith.constant 1 : index
    %c0_190 = arith.constant 0 : index
    %c0_191 = arith.constant 0 : index
    %457 = vector.load %arg9[%c1_189, %c0_190, %c0_191] : memref<2x128x128xf32, #tpu.memory_space<vmem>>, vector<1x128x128xf32>
    %458 = vector.shape_cast %457 : vector<1x128x128xf32> to vector<128x128xf32>
    %cst_192 = arith.constant dense<0.000000e+00> : vector<16x128xf32>
    %459 = tpu.matmul %456, %458, %cst_192 {dimension_numbers = #tpu.dot_dimension_numbers<[1], [0], [0], [1], [0, 0, 1, 1], [], []>} : vector<16x128xf32>, vector<128x128xf32>, vector<16x128xf32> -> vector<16x128xf32>
    %c1_193 = arith.constant 1 : index
    %c0_194 = arith.constant 0 : index
    %c0_195 = arith.constant 0 : index
    %460 = vector.load %arg10[%c1_193, %c0_194, %c0_195] : memref<2x1x128xf32, #tpu.memory_space<vmem>>, vector<1x1x128xf32>
    %461 = vector.shape_cast %460 : vector<1x1x128xf32> to vector<1x128xf32>
    %462 = vector.broadcast %461 : vector<1x128xf32> to vector<16x128xf32>
    %463 = arith.addf %459, %462 : vector<16x128xf32>
    %464 = arith.addf %291, %463 : vector<16x128xf32>
    %c1_196 = arith.constant 1 : index
    %c0_197 = arith.constant 0 : index
    %c0_198 = arith.constant 0 : index
    %465 = vector.load %arg11[%c1_196, %c0_197, %c0_198] : memref<2x1x128xf32, #tpu.memory_space<vmem>>, vector<1x1x128xf32>
    %466 = vector.shape_cast %465 : vector<1x1x128xf32> to vector<1x128xf32>
    %c1_199 = arith.constant 1 : index
    %c0_200 = arith.constant 0 : index
    %c0_201 = arith.constant 0 : index
    %467 = vector.load %arg12[%c1_199, %c0_200, %c0_201] : memref<2x1x128xf32, #tpu.memory_space<vmem>>, vector<1x1x128xf32>
    %468 = vector.shape_cast %467 : vector<1x1x128xf32> to vector<1x128xf32>
    %cst_202 = arith.constant dense<0.000000e+00> : vector<16xf32>
    %469 = vector.multi_reduction <add>, %464, %cst_202 [1] : vector<16x128xf32> to vector<16xf32>
    %470 = vector.shape_cast %469 : vector<16xf32> to vector<16x1xf32>
    %cst_203 = arith.constant 1.280000e+02 : f32
    %471 = vector.broadcast %cst_203 : f32 to vector<16x1xf32>
    %472 = arith.divf %470, %471 : vector<16x1xf32>
    %473 = vector.broadcast %472 : vector<16x1xf32> to vector<16x128xf32>
    %474 = arith.subf %464, %473 : vector<16x128xf32>
    %475 = arith.mulf %474, %474 : vector<16x128xf32>
    %cst_204 = arith.constant dense<0.000000e+00> : vector<16xf32>
    %476 = vector.multi_reduction <add>, %475, %cst_204 [1] : vector<16x128xf32> to vector<16xf32>
    %477 = vector.shape_cast %476 : vector<16xf32> to vector<16x1xf32>
    %cst_205 = arith.constant 1.280000e+02 : f32
    %478 = vector.broadcast %cst_205 : f32 to vector<16x1xf32>
    %479 = arith.divf %477, %478 : vector<16x1xf32>
    %480 = vector.broadcast %472 : vector<16x1xf32> to vector<16x128xf32>
    %481 = arith.subf %464, %480 : vector<16x128xf32>
    %cst_206 = arith.constant 9.99999996E-13 : f32
    %482 = vector.broadcast %cst_206 : f32 to vector<16x1xf32>
    %483 = arith.addf %479, %482 : vector<16x1xf32>
    %484 = math.rsqrt %483 : vector<16x1xf32>
    %485 = vector.broadcast %484 : vector<16x1xf32> to vector<16x128xf32>
    %486 = arith.mulf %481, %485 : vector<16x128xf32>
    %487 = vector.broadcast %466 : vector<1x128xf32> to vector<16x128xf32>
    %488 = arith.mulf %486, %487 : vector<16x128xf32>
    %489 = vector.broadcast %468 : vector<1x128xf32> to vector<16x128xf32>
    %490 = arith.addf %488, %489 : vector<16x128xf32>
    %c1_207 = arith.constant 1 : index
    %c0_208 = arith.constant 0 : index
    %c0_209 = arith.constant 0 : index
    %491 = vector.load %arg13[%c1_207, %c0_208, %c0_209] : memref<2x128x256xf32, #tpu.memory_space<vmem>>, vector<1x128x256xf32>
    %492 = vector.shape_cast %491 : vector<1x128x256xf32> to vector<128x256xf32>
    %cst_210 = arith.constant dense<0.000000e+00> : vector<16x256xf32>
    %493 = tpu.matmul %490, %492, %cst_210 {dimension_numbers = #tpu.dot_dimension_numbers<[1], [0], [0], [1], [0, 0, 1, 1], [], []>} : vector<16x128xf32>, vector<128x256xf32>, vector<16x256xf32> -> vector<16x256xf32>
    %c1_211 = arith.constant 1 : index
    %c0_212 = arith.constant 0 : index
    %c0_213 = arith.constant 0 : index
    %494 = vector.load %arg14[%c1_211, %c0_212, %c0_213] : memref<2x1x256xf32, #tpu.memory_space<vmem>>, vector<1x1x256xf32>
    %495 = vector.shape_cast %494 : vector<1x1x256xf32> to vector<1x256xf32>
    %496 = vector.broadcast %495 : vector<1x256xf32> to vector<16x256xf32>
    %497 = arith.addf %493, %496 : vector<16x256xf32>
    %498 = arith.mulf %497, %497 : vector<16x256xf32>
    %499 = arith.mulf %497, %498 : vector<16x256xf32>
    %cst_214 = arith.constant 4.471500e-02 : f32
    %500 = vector.broadcast %cst_214 : f32 to vector<16x256xf32>
    %501 = arith.mulf %500, %499 : vector<16x256xf32>
    %502 = arith.addf %497, %501 : vector<16x256xf32>
    %cst_215 = arith.constant 0.797884583 : f32
    %503 = vector.broadcast %cst_215 : f32 to vector<16x256xf32>
    %504 = arith.mulf %503, %502 : vector<16x256xf32>
    %505 = math.tanh %504 : vector<16x256xf32>
    %cst_216 = arith.constant 1.000000e+00 : f32
    %506 = vector.broadcast %cst_216 : f32 to vector<16x256xf32>
    %507 = arith.addf %506, %505 : vector<16x256xf32>
    %cst_217 = arith.constant 5.000000e-01 : f32
    %508 = vector.broadcast %cst_217 : f32 to vector<16x256xf32>
    %509 = arith.mulf %508, %507 : vector<16x256xf32>
    %510 = arith.mulf %497, %509 : vector<16x256xf32>
    %c1_218 = arith.constant 1 : index
    %c0_219 = arith.constant 0 : index
    %c0_220 = arith.constant 0 : index
    %511 = vector.load %arg15[%c1_218, %c0_219, %c0_220] : memref<2x256x128xf32, #tpu.memory_space<vmem>>, vector<1x256x128xf32>
    %512 = vector.shape_cast %511 : vector<1x256x128xf32> to vector<256x128xf32>
    %cst_221 = arith.constant dense<0.000000e+00> : vector<16x128xf32>
    %513 = tpu.matmul %510, %512, %cst_221 {dimension_numbers = #tpu.dot_dimension_numbers<[1], [0], [0], [1], [0, 0, 1, 1], [], []>} : vector<16x256xf32>, vector<256x128xf32>, vector<16x128xf32> -> vector<16x128xf32>
    %c1_222 = arith.constant 1 : index
    %c0_223 = arith.constant 0 : index
    %c0_224 = arith.constant 0 : index
    %514 = vector.load %arg16[%c1_222, %c0_223, %c0_224] : memref<2x1x128xf32, #tpu.memory_space<vmem>>, vector<1x1x128xf32>
    %515 = vector.shape_cast %514 : vector<1x1x128xf32> to vector<1x128xf32>
    %516 = vector.broadcast %515 : vector<1x128xf32> to vector<16x128xf32>
    %517 = arith.addf %513, %516 : vector<16x128xf32>
    %518 = arith.addf %490, %517 : vector<16x128xf32>
    %c1_225 = arith.constant 1 : index
    %c0_226 = arith.constant 0 : index
    %c0_227 = arith.constant 0 : index
    %519 = vector.load %arg17[%c1_225, %c0_226, %c0_227] : memref<2x1x128xf32, #tpu.memory_space<vmem>>, vector<1x1x128xf32>
    %520 = vector.shape_cast %519 : vector<1x1x128xf32> to vector<1x128xf32>
    %c1_228 = arith.constant 1 : index
    %c0_229 = arith.constant 0 : index
    %c0_230 = arith.constant 0 : index
    %521 = vector.load %arg18[%c1_228, %c0_229, %c0_230] : memref<2x1x128xf32, #tpu.memory_space<vmem>>, vector<1x1x128xf32>
    %522 = vector.shape_cast %521 : vector<1x1x128xf32> to vector<1x128xf32>
    %cst_231 = arith.constant dense<0.000000e+00> : vector<16xf32>
    %523 = vector.multi_reduction <add>, %518, %cst_231 [1] : vector<16x128xf32> to vector<16xf32>
    %524 = vector.shape_cast %523 : vector<16xf32> to vector<16x1xf32>
    %cst_232 = arith.constant 1.280000e+02 : f32
    %525 = vector.broadcast %cst_232 : f32 to vector<16x1xf32>
    %526 = arith.divf %524, %525 : vector<16x1xf32>
    %527 = vector.broadcast %526 : vector<16x1xf32> to vector<16x128xf32>
    %528 = arith.subf %518, %527 : vector<16x128xf32>
    %529 = arith.mulf %528, %528 : vector<16x128xf32>
    %cst_233 = arith.constant dense<0.000000e+00> : vector<16xf32>
    %530 = vector.multi_reduction <add>, %529, %cst_233 [1] : vector<16x128xf32> to vector<16xf32>
    %531 = vector.shape_cast %530 : vector<16xf32> to vector<16x1xf32>
    %cst_234 = arith.constant 1.280000e+02 : f32
    %532 = vector.broadcast %cst_234 : f32 to vector<16x1xf32>
    %533 = arith.divf %531, %532 : vector<16x1xf32>
    %534 = vector.broadcast %526 : vector<16x1xf32> to vector<16x128xf32>
    %535 = arith.subf %518, %534 : vector<16x128xf32>
    %cst_235 = arith.constant 9.99999996E-13 : f32
    %536 = vector.broadcast %cst_235 : f32 to vector<16x1xf32>
    %537 = arith.addf %533, %536 : vector<16x1xf32>
    %538 = math.rsqrt %537 : vector<16x1xf32>
    %539 = vector.broadcast %538 : vector<16x1xf32> to vector<16x128xf32>
    %540 = arith.mulf %535, %539 : vector<16x128xf32>
    %541 = vector.broadcast %520 : vector<1x128xf32> to vector<16x128xf32>
    %542 = arith.mulf %540, %541 : vector<16x128xf32>
    %543 = vector.broadcast %522 : vector<1x128xf32> to vector<16x128xf32>
    %544 = arith.addf %542, %543 : vector<16x128xf32>
    %545 = vector.extract_strided_slice %544 {offsets = [0, 0], sizes = [1, 128], strides = [1, 1]} : vector<16x128xf32> to vector<1x128xf32>
    %546 = vector.extract_strided_slice %544 {offsets = [8, 0], sizes = [1, 128], strides = [1, 1]} : vector<16x128xf32> to vector<1x128xf32>
    %547 = tpu.concatenate %545, %546 in 0 : vector<1x128xf32>, vector<1x128xf32> -> vector<2x128xf32>
    %c0_236 = arith.constant 0 : index
    %c0_237 = arith.constant 0 : index
    %548 = vector.load %arg19[%c0_236, %c0_237] : memref<128x128xf32, #tpu.memory_space<vmem>>, vector<128x128xf32>
    %cst_238 = arith.constant dense<0.000000e+00> : vector<2x128xf32>
    %549 = tpu.matmul %547, %548, %cst_238 {dimension_numbers = #tpu.dot_dimension_numbers<[1], [0], [0], [1], [0, 0, 1, 1], [], []>} : vector<2x128xf32>, vector<128x128xf32>, vector<2x128xf32> -> vector<2x128xf32>
    %c0_239 = arith.constant 0 : index
    %c0_240 = arith.constant 0 : index
    %550 = vector.load %arg20[%c0_239, %c0_240] : memref<1x128xf32, #tpu.memory_space<vmem>>, vector<1x128xf32>
    %551 = vector.broadcast %550 : vector<1x128xf32> to vector<2x128xf32>
    %552 = arith.addf %549, %551 : vector<2x128xf32>
    %553 = math.tanh %552 : vector<2x128xf32>
    %c0_241 = arith.constant 0 : index
    %c0_242 = arith.constant 0 : index
    %554 = vector.load %arg21[%c0_241, %c0_242] : memref<128x128xf32, #tpu.memory_space<vmem>>, vector<128x128xf32>
    %cst_243 = arith.constant dense<0.000000e+00> : vector<2x128xf32>
    %555 = tpu.matmul %553, %554, %cst_243 {dimension_numbers = #tpu.dot_dimension_numbers<[1], [0], [0], [1], [0, 0, 1, 1], [], []>} : vector<2x128xf32>, vector<128x128xf32>, vector<2x128xf32> -> vector<2x128xf32>
    %c0_244 = arith.constant 0 : index
    %c0_245 = arith.constant 0 : index
    %556 = vector.load %arg22[%c0_244, %c0_245] : memref<1x128xf32, #tpu.memory_space<vmem>>, vector<1x128xf32>
    %557 = vector.broadcast %556 : vector<1x128xf32> to vector<2x128xf32>
    %558 = arith.addf %555, %557 : vector<2x128xf32>
    %cst_246 = arith.constant 0.000000e+00 : f32
    %559 = vector.broadcast %cst_246 : f32 to vector<2x128xf32>
    %560 = arith.maximumf %558, %559 : vector<2x128xf32>
    %c0_247 = arith.constant 0 : index
    %c0_248 = arith.constant 0 : index
    %561 = vector.load %arg23[%c0_247, %c0_248] : memref<128x128xf32, #tpu.memory_space<vmem>>, vector<128x128xf32>
    %cst_249 = arith.constant dense<0.000000e+00> : vector<2x128xf32>
    %562 = tpu.matmul %560, %561, %cst_249 {dimension_numbers = #tpu.dot_dimension_numbers<[1], [0], [0], [1], [0, 0, 1, 1], [], []>} : vector<2x128xf32>, vector<128x128xf32>, vector<2x128xf32> -> vector<2x128xf32>
    %c0_250 = arith.constant 0 : index
    %c0_251 = arith.constant 0 : index
    %563 = vector.load %arg24[%c0_250, %c0_251] : memref<1x128xf32, #tpu.memory_space<vmem>>, vector<1x128xf32>
    %564 = vector.broadcast %563 : vector<1x128xf32> to vector<2x128xf32>
    %565 = arith.addf %562, %564 : vector<2x128xf32>
    %566 = vector.extract_strided_slice %565 {offsets = [0, 0], sizes = [2, 5], strides = [1, 1]} : vector<2x128xf32> to vector<2x5xf32>
    %c0_252 = arith.constant 0 : index
    %c0_253 = arith.constant 0 : index
    %567 = vector.load %arg25[%c0_252, %c0_253] : memref<2x5xf32, #tpu.memory_space<vmem>>, vector<2x5xf32>
    tpu.vector_store %arg25[%c0_252, %c0_253], %566 {strides = array<i32>} : memref<2x5xf32, #tpu.memory_space<vmem>>, vector<2x5xf32>,
    return
  }
  func.func @transform_0(%arg0: i32) -> (i32, i32) {
    %c0_i32 = arith.constant 0 : i32
    %c0_i32_0 = arith.constant 0 : i32
    %c0_i32_1 = arith.constant 0 : i32
    return %c0_i32, %c0_i32_0 : i32, i32
  }
  func.func @transform_1(%arg0: i32) -> (i32, i32) {
    %c0_i32 = arith.constant 0 : i32
    %c0_i32_0 = arith.constant 0 : i32
    %c0_i32_1 = arith.constant 0 : i32
    return %c0_i32, %c0_i32_0 : i32, i32
  }
  func.func @transform_2(%arg0: i32) -> (i32, i32) {
    %c0_i32 = arith.constant 0 : i32
    %c0_i32_0 = arith.constant 0 : i32
    %c0_i32_1 = arith.constant 0 : i32
    return %c0_i32, %c0_i32_0 : i32, i32
  }
  func.func @transform_3(%arg0: i32) -> (i32, i32) {
    %c0_i32 = arith.constant 0 : i32
    %c0_i32_0 = arith.constant 0 : i32
    %c0_i32_1 = arith.constant 0 : i32
    return %c0_i32, %c0_i32_0 : i32, i32
  }
  func.func @transform_4(%arg0: i32) -> (i32, i32) {
    %c0_i32 = arith.constant 0 : i32
    %c0_i32_0 = arith.constant 0 : i32
    %c0_i32_1 = arith.constant 0 : i32
    return %c0_i32, %c0_i32_0 : i32, i32
  }
  func.func @transform_5(%arg0: i32) -> (i32, i32) {
    %c0_i32 = arith.constant 0 : i32
    %c0_i32_0 = arith.constant 0 : i32
    %c0_i32_1 = arith.constant 0 : i32
    return %c0_i32, %c0_i32_0 : i32, i32
  }
  func.func @transform_6(%arg0: i32) -> (i32, i32, i32) {
    %c0_i32 = arith.constant 0 : i32
    %c0_i32_0 = arith.constant 0 : i32
    %c0_i32_1 = arith.constant 0 : i32
    %c0_i32_2 = arith.constant 0 : i32
    return %c0_i32, %c0_i32_0, %c0_i32_1 : i32, i32, i32
  }
  func.func @transform_7(%arg0: i32) -> (i32, i32, i32) {
    %c0_i32 = arith.constant 0 : i32
    %c0_i32_0 = arith.constant 0 : i32
    %c0_i32_1 = arith.constant 0 : i32
    %c0_i32_2 = arith.constant 0 : i32
    return %c0_i32, %c0_i32_0, %c0_i32_1 : i32, i32, i32
  }
  func.func @transform_8(%arg0: i32) -> (i32, i32, i32) {
    %c0_i32 = arith.constant 0 : i32
    %c0_i32_0 = arith.constant 0 : i32
    %c0_i32_1 = arith.constant 0 : i32
    %c0_i32_2 = arith.constant 0 : i32
    return %c0_i32, %c0_i32_0, %c0_i32_1 : i32, i32, i32
  }
  func.func @transform_9(%arg0: i32) -> (i32, i32, i32) {
    %c0_i32 = arith.constant 0 : i32
    %c0_i32_0 = arith.constant 0 : i32
    %c0_i32_1 = arith.constant 0 : i32
    %c0_i32_2 = arith.constant 0 : i32
    return %c0_i32, %c0_i32_0, %c0_i32_1 : i32, i32, i32
  }
  func.func @transform_10(%arg0: i32) -> (i32, i32, i32) {
    %c0_i32 = arith.constant 0 : i32
    %c0_i32_0 = arith.constant 0 : i32
    %c0_i32_1 = arith.constant 0 : i32
    %c0_i32_2 = arith.constant 0 : i32
    return %c0_i32, %c0_i32_0, %c0_i32_1 : i32, i32, i32
  }
  func.func @transform_11(%arg0: i32) -> (i32, i32, i32) {
    %c0_i32 = arith.constant 0 : i32
    %c0_i32_0 = arith.constant 0 : i32
    %c0_i32_1 = arith.constant 0 : i32
    %c0_i32_2 = arith.constant 0 : i32
    return %c0_i32, %c0_i32_0, %c0_i32_1 : i32, i32, i32
  }
  func.func @transform_12(%arg0: i32) -> (i32, i32, i32) {
    %c0_i32 = arith.constant 0 : i32
    %c0_i32_0 = arith.constant 0 : i32
    %c0_i32_1 = arith.constant 0 : i32
    %c0_i32_2 = arith.constant 0 : i32
    return %c0_i32, %c0_i32_0, %c0_i32_1 : i32, i32, i32
  }
  func.func @transform_13(%arg0: i32) -> (i32, i32, i32) {
    %c0_i32 = arith.constant 0 : i32
    %c0_i32_0 = arith.constant 0 : i32
    %c0_i32_1 = arith.constant 0 : i32
    %c0_i32_2 = arith.constant 0 : i32
    return %c0_i32, %c0_i32_0, %c0_i32_1 : i32, i32, i32
  }
  func.func @transform_14(%arg0: i32) -> (i32, i32, i32) {
    %c0_i32 = arith.constant 0 : i32
    %c0_i32_0 = arith.constant 0 : i32
    %c0_i32_1 = arith.constant 0 : i32
    %c0_i32_2 = arith.constant 0 : i32
    return %c0_i32, %c0_i32_0, %c0_i32_1 : i32, i32, i32
  }
  func.func @transform_15(%arg0: i32) -> (i32, i32, i32) {
    %c0_i32 = arith.constant 0 : i32
    %c0_i32_0 = arith.constant 0 : i32
    %c0_i32_1 = arith.constant 0 : i32
    %c0_i32_2 = arith.constant 0 : i32
    return %c0_i32, %c0_i32_0, %c0_i32_1 : i32, i32, i32
  }
  func.func @transform_16(%arg0: i32) -> (i32, i32, i32) {
    %c0_i32 = arith.constant 0 : i32
    %c0_i32_0 = arith.constant 0 : i32
    %c0_i32_1 = arith.constant 0 : i32
    %c0_i32_2 = arith.constant 0 : i32
    return %c0_i32, %c0_i32_0, %c0_i32_1 : i32, i32, i32
  }
  func.func @transform_17(%arg0: i32) -> (i32, i32, i32) {
    %c0_i32 = arith.constant 0 : i32
    %c0_i32_0 = arith.constant 0 : i32
    %c0_i32_1 = arith.constant 0 : i32
    %c0_i32_2 = arith.constant 0 : i32
    return %c0_i32, %c0_i32_0, %c0_i32_1 : i32, i32, i32
  }
  func.func @transform_18(%arg0: i32) -> (i32, i32) {
    %c0_i32 = arith.constant 0 : i32
    %c0_i32_0 = arith.constant 0 : i32
    %c0_i32_1 = arith.constant 0 : i32
    return %c0_i32, %c0_i32_0 : i32, i32
  }
  func.func @transform_19(%arg0: i32) -> (i32, i32) {
    %c0_i32 = arith.constant 0 : i32
    %c0_i32_0 = arith.constant 0 : i32
    %c0_i32_1 = arith.constant 0 : i32
    return %c0_i32, %c0_i32_0 : i32, i32
  }
  func.func @transform_20(%arg0: i32) -> (i32, i32) {
    %c0_i32 = arith.constant 0 : i32
    %c0_i32_0 = arith.constant 0 : i32
    %c0_i32_1 = arith.constant 0 : i32
    return %c0_i32, %c0_i32_0 : i32, i32
  }
  func.func @transform_21(%arg0: i32) -> (i32, i32) {
    %c0_i32 = arith.constant 0 : i32
    %c0_i32_0 = arith.constant 0 : i32
    %c0_i32_1 = arith.constant 0 : i32
    return %c0_i32, %c0_i32_0 : i32, i32
  }
  func.func @transform_22(%arg0: i32) -> (i32, i32) {
    %c0_i32 = arith.constant 0 : i32
    %c0_i32_0 = arith.constant 0 : i32
    %c0_i32_1 = arith.constant 0 : i32
    return %c0_i32, %c0_i32_0 : i32, i32
  }
  func.func @transform_23(%arg0: i32) -> (i32, i32) {
    %c0_i32 = arith.constant 0 : i32
    %c0_i32_0 = arith.constant 0 : i32
    %c0_i32_1 = arith.constant 0 : i32
    return %c0_i32, %c0_i32_0 : i32, i32
  }
  func.func @transform_24(%arg0: i32) -> (i32, i32) {
    %c0_i32 = arith.constant 0 : i32
    %c0_i32_0 = arith.constant 0 : i32
    %c0_i32_1 = arith.constant 0 : i32
    return %c0_i32, %c0_i32_0 : i32, i32
  }
}

</mosaic_0001>

<bundles_post_ra>
// kernel: classifier_forward.1
= control target key start
LH: loop header
LB: loop body
LE: loop exit
PB: predicated region body
PF: predicated region fallthrough
CT: control target
= control target key end

     0   :  { %s6429_s0 = inlined_call_operand.vmem [shape: f32[16,128], index: 0, kind: input, shape index: {}]   ;;  %s6430_s1 = inlined_call_operand.vmem [shape: f32[8,128], index: 1, kind: input, shape index: {}]   ;;  %s6431_s2 = inlined_call_operand.vmem [shape: f32[1,128], index: 2, kind: input, shape index: {}]   ;;  %s6432_s3 = inlined_call_operand.vmem [shape: f32[2,8], index: 3, kind: input, shape index: {}]   ;;  %s6433_s4 = inlined_call_operand.vmem [shape: f32[1,128], index: 4, kind: input, shape index: {}]   ;;  %s6434_s5 = inlined_call_operand.vmem [shape: f32[1,128], index: 5, kind: input, shape index: {}]   ;;  %s6435_s6 = inlined_call_operand.hbm [shape: f32[2,128,384], index: 6, kind: input, shape index: {}]   ;;  %s6436_s7 = inlined_call_operand.vmem [shape: f32[2,1,384], index: 7, kind: input, shape index: {}]   ;;  %s6437_s8 = inlined_call_operand.hbm [shape: f32[2,128,128], index: 8, kind: input, shape index: {}]   ;;  %s6438_s9 = inlined_call_operand.vmem [shape: f32[2,1,128], index: 9, kind: input, shape index: {}]   ;;  %s6439_s10 = inlined_call_operand.vmem [shape: f32[2,1,128], index: 10, kind: input, shape index: {}]   ;;  %s6440_s11 = inlined_call_operand.vmem [shape: f32[2,1,128], index: 11, kind: input, shape index: {}]   ;;  %s6441_s12 = inlined_call_operand.hbm [shape: f32[2,128,256], index: 12, kind: input, shape index: {}]   ;;  %s6442_s13 = inlined_call_operand.vmem [shape: f32[2,1,256], index: 13, kind: input, shape index: {}]   ;;  %s6443_s14 = inlined_call_operand.hbm [shape: f32[2,256,128], index: 14, kind: input, shape index: {}]   ;;  %s6444_s15 = inlined_call_operand.vmem [shape: f32[2,1,128], index: 15, kind: input, shape index: {}]   ;;  %s6445_s16 = inlined_call_operand.vmem [shape: f32[2,1,128], index: 16, kind: input, shape index: {}]   ;;  %s6446_s17 = inlined_call_operand.vmem [shape: f32[2,1,128], index: 17, kind: input, shape index: {}]   ;;  %s6447_s18 = inlined_call_operand.vmem [shape: f32[128,128], index: 18, kind: input, shape index: {}]   ;;  %s6448_s19 = inlined_call_operand.vmem [shape: f32[1,128], index: 19, kind: input, shape index: {}]   ;;  %s6449_s20 = inlined_call_operand.hbm [shape: f32[128,128], index: 20, kind: input, shape index: {}]   ;;  %s6450_s21 = inlined_call_operand.vmem [shape: f32[1,128], index: 21, kind: input, shape index: {}]   ;;  %s6451_s22 = inlined_call_operand.hbm [shape: f32[128,128], index: 22, kind: input, shape index: {}]   ;;  %s6452_s23 = inlined_call_operand.vmem [shape: f32[1,128], index: 23, kind: input, shape index: {}]   ;;  %s6453_s24 = inlined_call_operand.hbm [shape: f32[2,5], index: 24, kind: output, shape index: {}]  }
   0x1   :  { %6458 = sst [smem:[#allocation20_spill]] %s6429_s0 }
   0x2   :  { %6459 = sst [smem:[#allocation21_spill]] %s6430_s1 }
   0x3   :  { %6460 = sst [smem:[#allocation22_spill]] %s6431_s2 }
   0x4   :  { %6461 = sst [smem:[#allocation23_spill]] %s6432_s3 }
   0x5   :  { %6462 = sst [smem:[#allocation24_spill]] %s6433_s4 }
   0x6   :  { %6463 = sst [smem:[#allocation25_spill]] %s6434_s5 }
   0x7   :  { %6464 = sst [smem:[#allocation26_spill]] %s6435_s6 }
   0x8   :  { %6465 = sst [smem:[#allocation27_spill]] %s6436_s7 }
   0x9   :  { %6466 = sst [smem:[#allocation28_spill]] %s6437_s8 }
   0xa   :  { %29 = vsyncpa [#allocation4], 0 }
   0xb   :  { %30 = vsyncpa [#allocation7], 0 }
   0xc   :  { %31 = vsyncpa [#allocation10], 0 }
   0xd   :  { %32 = vsyncpa [#allocation13], 0 }
   0xe   :  { %33 = vsyncpa [#allocation5], 0  ;;  %s5625_s5 = smov [#allocation6]  }
   0xf   :  { %s65_s26 = sshll.u32 %s5625_s5, 4  ;;  %s66_s26 = int_to_ptr.vmem [resolvable:$true] %s65_s26 }
  0x10   :  { %s5483_s27 = scalar_lea.vmem %s66_s26, 4096  ;;  %p5488_p1 = scmp.lt.s32.totalorder %s66_s26, %s66_s26 }
  0x11   :  { %p5484_p0 = scmp.ne.s32.totalorder %s66_s26, %s5483_s27  ;;  %p5489_p2 = scmp.lt.s32.totalorder %s5483_s27, %s5483_s27 }
  0x13   :  { %p5490_p3 = por %p5489_p2, %p5488_p1 }
  0x15   :  { %p5491_p4 = pnand %p5490_p3, %p5484_p0 }
  0x17   :  { %5494 = shalt.err (!%p5491_p4)
}
  0x18   :  { %s6456_s28 = smov 128   ;;  %s5627_s6 = smov 8  }
  0x19   :  { %s6467_s0 = sld [smem:[#allocation28_spill]]  ;;  %s5628_s7 = smov [#allocation9]  }
  0x1a   :  { %s97_s30 = sshll.u32 %s5628_s7, 4  ;;  %s5629_s3 = smov [#allocation3]   ;;  %s98_s30 = int_to_ptr.vmem [resolvable:$true] %s97_s30 }
  0x1b   :  { %s51_s25 = sshll.u32 %s5629_s3, 4  ;;  %s5503_s8 = scalar_lea.vmem %s98_s30, 8192  ;;  %s52_s25 = int_to_ptr.vmem [resolvable:$true] %s51_s25 }
  0x1c   :  { %p5504_p5 = scmp.ne.s32.totalorder %s98_s30, %s5503_s8  ;;  %p5508_p6 = scmp.lt.s32.totalorder %s98_s30, %s98_s30 }
  0x1d   :  { %p5509_p7 = scmp.lt.s32.totalorder %s5503_s8, %s5503_s8 }
  0x1f   :  { %71 = dma.hbm_to_vmem [thread:$0]  %s6467_s0, 4096, %s66_s26, [#allocation7], %s6456_s28, %s6456_s28, %s5627_s6  }
  0x20   :  { %p5510_p8 = por %p5509_p7, %p5508_p6 }
  0x22   :  { %p5511_p9 = pnand %p5510_p8, %p5504_p5 }
  0x24   :  { %5514 = shalt.err (!%p5511_p9)
}
  0x25   :  { %103 = dma.hbm_to_vmem [thread:$0]  %s6443_s14, 8192, %s98_s30, [#allocation10], %s6456_s28, %s6456_s28, %s5627_s6  }
  0x26   :  { %s5523_s5 = scalar_lea.vmem %s52_s25, 12288  ;;  %p5528_p11 = scmp.lt.s32.totalorder %s52_s25, %s52_s25 }
  0x27   :  { %p5524_p10 = scmp.ne.s32.totalorder %s52_s25, %s5523_s5  ;;  %p5529_p12 = scmp.lt.s32.totalorder %s5523_s5, %s5523_s5 }
  0x29   :  { %p5530_p13 = por %p5529_p12, %p5528_p11 }
  0x2b   :  { %p5531_p0 = pnand %p5530_p13, %p5524_p10 }
  0x2d   :  { %5534 = shalt.err (!%p5531_p0)
}
  0x2e   :  { %s5630_s26 = smov 384   ;;  %s5631_s27 = smov 24  }
  0x2f   :  { %s6468_s0 = sld [smem:[#allocation26_spill]]  ;;  %s5632_s7 = smov [#allocation8]  }
  0x30   :  { %s83_s3 = sshll.u32 %s5632_s7, 4  ;;  %s84_s3 = int_to_ptr.vmem [resolvable:$true] %s83_s3 }
  0x31   :  { %s5543_s8 = scalar_lea.vmem %s84_s3, 8192  ;;  %p5548_p2 = scmp.lt.s32.totalorder %s84_s3, %s84_s3 }
  0x32   :  { %p5544_p1 = scmp.ne.s32.totalorder %s84_s3, %s5543_s8  ;;  %p5549_p3 = scmp.lt.s32.totalorder %s5543_s8, %s5543_s8 }
  0x34   :  { %p5550_p4 = por %p5549_p3, %p5548_p2 }
  0x35   :  { %57 = dma.hbm_to_vmem [thread:$0]  %s6468_s0, 12288, %s52_s25, [#allocation4], %s5630_s26, %s5630_s26, %s5631_s27  }
  0x36   :  { %p5551_p5 = pnand %p5550_p4, %p5544_p1 }
  0x38   :  { %5554 = shalt.err (!%p5551_p5)
}
  0x39   :  { %s5633_s14 = smov 256   ;;  %s5634_s30 = smov 16  }
  0x3a   :  { %89 = dma.hbm_to_vmem [thread:$0]  %s6441_s12, 8192, %s84_s3, [#allocation7], %s5633_s14, %s5633_s14, %s5634_s30  }
  0x3b   :  { %s5635_s5 = smov [#allocation11]   ;;  %s5636_s2 = smov [#allocation12]  }
  0x3c   :  { %s119_s28 = sshll.u32 %s5635_s5, 4  ;;  %s133_s25 = sshll.u32 %s5636_s2, 4  ;;  %s120_s28 = int_to_ptr.vmem [resolvable:$true] %s119_s28  ;;  %s134_s25 = int_to_ptr.vmem [resolvable:$true] %s133_s25 }
  0x3d   :  { %s5563_s26 = scalar_lea.vmem %s120_s28, 2048  ;;  %p5568_p7 = scmp.lt.s32.totalorder %s120_s28, %s120_s28 }
  0x3e   :  { %p5564_p6 = scmp.ne.s32.totalorder %s120_s28, %s5563_s26  ;;  %p5569_p8 = scmp.lt.s32.totalorder %s5563_s26, %s5563_s26 }
  0x40   :  { %p5570_p9 = por %p5569_p8, %p5568_p7 }
  0x42   :  { %p5571_p10 = pnand %p5570_p9, %p5564_p6 }
  0x44   :  { %5574 = shalt.err (!%p5571_p10)
}
  0x45   :  { %s6469_s27 = smov 128   ;;  %s5583_s12 = scalar_lea.vmem %s134_s25, 2048 }
  0x46   :  { %125 = dma.hbm_to_vmem [thread:$0]  %s6449_s20, 2048, %s120_s28, [#allocation10], %s6469_s27, %s6469_s27, %s5627_s6  }
  0x47   :  { %p5584_p11 = scmp.ne.s32.totalorder %s134_s25, %s5583_s12  ;;  %p5588_p12 = scmp.lt.s32.totalorder %s134_s25, %s134_s25 }
  0x48   :  { %p5589_p13 = scmp.lt.s32.totalorder %s5583_s12, %s5583_s12 }
  0x4a   :  { %p5590_p0 = por %p5589_p13, %p5588_p12 }
  0x4c   :  { %p5591_p1 = pnand %p5590_p0, %p5584_p11 }
  0x4e   :  { %5594 = shalt.err (!%p5591_p1)
}
  0x4f   :  { %139 = dma.hbm_to_vmem [thread:$0]  %s6451_s22, 2048, %s134_s25, [#allocation13], %s6469_s27, %s6469_s27, %s5627_s6  }
  0x50   :  { %5615 = dma.done.wait [#allocation4], 12288  }
  0x51   :  { %5616 = vsyncadd [#allocation4], 4294955008 }
  0x52   :  { %5617 = dma.done.wait [#allocation7], 12288  }
  0x53   :  { %5618 = vsyncadd [#allocation7], 4294955008 }
  0x54   :  { %5619 = dma.done.wait [#allocation10], 10240  }
  0x55   :  { %5620 = vsyncadd [#allocation10], 4294957056 }
  0x56   :  { %5621 = dma.done.wait [#allocation13], 2048  }
  0x57   :  { %5622 = vsyncadd [#allocation13], 4294965248  ;;  %s6470_s8 = sld [smem:[#allocation20_spill]]  ;;  %v264_v8 = vld [vmem:[#allocation3 + $0x170] sm:$0xff]  ;;  %v263_v9 = vld [vmem:[#allocation3 + $0x168] sm:$0xff]  ;;  %v5637_v62 = vmov 0.0  }
  0x58   :  { %s6471_s4 = sld [smem:[#allocation21_spill]]  ;;  %v261_v10 = vld [vmem:[#allocation3 + $0x158] sm:$0xff]  ;;  %283 = vmatprep.subr.mxu0 %v264_v8  ;;  %v260_v11 = vld [vmem:[#allocation3 + $0x150] sm:$0xff]  ;;  %v258_v13 = vld [vmem:[#allocation3 + $0x140] sm:$0xff]  ;;  %347 = vmatprep.mubr.f32.mxu0 %v5637_v62  ;;  %vm5638_vm0 = vmmov 0   ;;  %vm435_vm1 = vcmask 261120  }
  0x59   :  { %s6472_s2 = sld [smem:[#allocation22_spill]]  ;;  %v265_v12 = vld [vmem:[#allocation3 + $0x178] sm:$0xff]  ;;  %284 = vmatpush1.msra.mxu0 %v263_v9  ;;  %v262_v14 = vld [vmem:[#allocation3 + $0x160] sm:$0xff]  ;;  %v255_v16 = vld [vmem:[#allocation3 + $0x128] sm:$0xff]  ;;  %s5639_s28 = smov 96   ;;  %vm518_vm2 = vcmask 64512  }
  0x5a   :  { %4950 = vmatprep.subr.mxu1 %v265_v12  ;;  %285 = vmatprep.subr.mxu0 %v261_v10  ;;  %v257_v15 = vld [vmem:[#allocation3 + $0x138] sm:$0xff]  ;;  %v254_v17 = vld [vmem:[#allocation3 + $0x120] sm:$0xff]  ;;  %v252_v26 = vld [vmem:[#allocation3 + $0x110] sm:$0xff]  ;;  %s6473_s27 = sld [smem:[#allocation24_spill]]  ;;  %s5641_s14 = smov 32   ;;  %vm776_vm3 = vcmask 523520  }
  0x5b   :  { %4951 = vmatpush3.msra.mxu1 %v265_v12  ;;  %286 = vmatpush1.msra.mxu0 %v260_v11  ;;  %v259_v27 = vld [vmem:[#allocation3 + $0x148] sm:$0xff]  ;;  %v249_v29 = vld [vmem:[#allocation3 + $0xf8] sm:$0xff]  ;;  %v256_v30 = vld [vmem:[#allocation3 + $0x130] sm:$0xff]  ;;  %s6474_s12 = sld [smem:[#allocation25_spill]]  ;;  %vm949_vm4 = vcmask 785920   ;;  %vm1122_vm5 = vcmask 1048320  }
  0x5c   :  { %4952 = vmatprep.subr.mxu1 %v262_v14  ;;  %287 = vmatprep.subr.mxu0 %v258_v13  ;;  %v251_v28 = vld [vmem:[#allocation3 + $0x108] sm:$0xff]  ;;  %v248_v31 = vld [vmem:[#allocation3 + $0xf0] sm:$0xff]  ;;  %v246_v32 = vld [vmem:[#allocation3 + $0xe0] sm:$0xff]  ;;  %s6475_s20 = sld [smem:[#allocation27_spill]]  ;;  %vm4310_vm6 = vcmask 1040384   ;;  %vm4593_vm7 = vcmask 33792  }
  0x5d   :  { %v160_v0 = vld [vmem:[%s6470_s8] sm:$0xff]  ;;  %v161_v4 = vld [vmem:[%s6470_s8 + $0x8] sm:$0xff]  ;;  %4953 = vmatpush3.msra.mxu1 %v262_v14  ;;  %288 = vmatpush1.msra.mxu0 %v257_v15  ;;  %v243_v35 = vld [vmem:[#allocation3 + $0xc8] sm:$0xff]  ;;  %s5640_s8 = smov 64   ;;  %s6476_s1 = sld [smem:[#allocation23_spill]] }
  0x5e   :  { %v162_v1 = vld [vmem:[%s6471_s4] sm:$0xff]  ;;  %289 = vmatprep.subr.mxu0 %v255_v16  ;;  %4954 = vmatprep.subr.mxu1 %v259_v27  ;;  %v253_v33 = vld [vmem:[#allocation3 + $0x118] sm:$0xff]  ;;  %v250_v36 = vld [vmem:[#allocation3 + $0x100] sm:$0xff] }
  0x5f   :  { %v4613_v2 = vld [vmem:[%s6472_s2] ss:$0 sm:$0xff]  ;;  %v164_v3 = vadd.f32 %v162_v1, %v160_v0  ;;  %v165_v5 = vadd.f32 %v162_v1, %v161_v4  ;;  %290 = vmatpush1.msra.mxu0 %v254_v17  ;;  %4955 = vmatpush3.msra.mxu1 %v259_v27  ;;  %v245_v34 = vld [vmem:[#allocation3 + $0xd8] sm:$0xff]  ;;  %v242_v37 = vld [vmem:[#allocation3 + $0xc0] sm:$0xff]  ;;  %v268_v17 = vlaneseq }
  0x60   :  { %291 = vmatprep.subr.mxu0 %v252_v26  ;;  %4956 = vmatprep.subr.mxu1 %v256_v30  ;;  %v240_v38 = vld [vmem:[#allocation3 + $0xb0] sm:$0xff]  ;;  %v247_v39 = vld [vmem:[#allocation3 + $0xe8] sm:$0xff]  ;;  %v237_v41 = vld [vmem:[#allocation3 + $0x98] sm:$0xff] }
  0x61   :  { %v172_v6 = vadd.f32 %v4613_v2, %v164_v3  ;;  %v173_v7 = vadd.f32 %v4613_v2, %v165_v5  ;;  %292 = vmatpush1.msra.mxu0 %v251_v28  ;;  %4957 = vmatpush3.msra.mxu1 %v256_v30  ;;  %v239_v40 = vld [vmem:[#allocation3 + $0xa8] sm:$0xff]  ;;  %v244_v42 = vld [vmem:[#allocation3 + $0xd0] sm:$0xff]  ;;  %v234_v44 = vld [vmem:[#allocation3 + $0x80] sm:$0xff] }
  0x62   :  { %293 = vmatprep.subr.mxu0 %v249_v29  ;;  %4958 = vmatprep.subr.mxu1 %v253_v33  ;;  %v236_v43 = vld [vmem:[#allocation3 + $0x90] sm:$0xff]  ;;  %v241_v45 = vld [vmem:[#allocation3 + $0xb8] sm:$0xff]  ;;  %v231_v47 = vld [vmem:[#allocation3 + $0x68] sm:$0xff] }
  0x63   :  { %176 = vadd.xlane.f32.xlu0 %v172_v6  ;;  %294 = vmatpush1.msra.mxu0 %v248_v31  ;;  %v233_v46 = vld [vmem:[#allocation3 + $0x78] sm:$0xff]  ;;  %v238_v48 = vld [vmem:[#allocation3 + $0xa0] sm:$0xff]  ;;  %v228_v50 = vld [vmem:[#allocation3 + $0x50] sm:$0xff] }
  0x64   :  { %295 = vmatprep.subr.mxu0 %v246_v32  ;;  %4959 = vmatpush3.msra.mxu1 %v253_v33  ;;  %v230_v49 = vld [vmem:[#allocation3 + $0x60] sm:$0xff]  ;;  %v235_v51 = vld [vmem:[#allocation3 + $0x88] sm:$0xff]  ;;  %v225_v53 = vld [vmem:[#allocation3 + $0x38] sm:$0xff] }
  0x65   :  { %296 = vmatpush1.msra.mxu0 %v245_v34  ;;  %4960 = vmatprep.subr.mxu1 %v250_v36  ;;  %v227_v52 = vld [vmem:[#allocation3 + $0x48] sm:$0xff]  ;;  %v232_v54 = vld [vmem:[#allocation3 + $0x70] sm:$0xff]  ;;  %v222_v56 = vld [vmem:[#allocation3 + $0x20] sm:$0xff] }
  0x66   :  { %297 = vmatprep.subr.mxu0 %v243_v35  ;;  %4961 = vmatpush3.msra.mxu1 %v250_v36  ;;  %v224_v55 = vld [vmem:[#allocation3 + $0x30] sm:$0xff]  ;;  %v229_v57 = vld [vmem:[#allocation3 + $0x58] sm:$0xff]  ;;  %v219_v59 = vld [vmem:[#allocation3 + $0x8] sm:$0xff] }
  0x67   :  { %178 = vadd.xlane.f32.xlu0 %v173_v7  ;;  %298 = vmatpush1.msra.mxu0 %v242_v37  ;;  %v221_v58 = vld [vmem:[#allocation3 + $0x18] sm:$0xff]  ;;  %v226_v60 = vld [vmem:[#allocation3 + $0x40] sm:$0xff]  ;;  %v223_v63 = vld [vmem:[#allocation3 + $0x28] sm:$0xff] }
  0x68   :  { %299 = vmatprep.subr.mxu0 %v240_v38  ;;  %4962 = vmatprep.subr.mxu1 %v247_v39  ;;  %v218_v61 = vld [vmem:[#allocation3] sm:$0xff]  ;;  %v220_v0 = vld [vmem:[#allocation3 + $0x10] sm:$0xff] }
  0x69   :  { %300 = vmatpush1.msra.mxu0 %v239_v40  ;;  %4963 = vmatpush3.msra.mxu1 %v247_v39  ;;  %v4614_v8 = vld [vmem:[%s6473_s27] ss:$0 sm:$0xff] }
  0x6a   :  { %301 = vmatprep.subr.mxu0 %v237_v41  ;;  %4964 = vmatprep.subr.mxu1 %v244_v42  ;;  %v4615_v10 = vld [vmem:[%s6474_s12] ss:$0 sm:$0xff] }
  0x6b   :  { %302 = vmatpush1.msra.mxu0 %v236_v43  ;;  %4965 = vmatpush3.msra.mxu1 %v244_v42 }
  0x6c   :  { %303 = vmatprep.subr.mxu0 %v234_v44  ;;  %4966 = vmatprep.subr.mxu1 %v241_v45 }
  0x6d   :  { %304 = vmatpush1.msra.mxu0 %v233_v46  ;;  %4967 = vmatpush3.msra.mxu1 %v241_v45 }
  0x6e   :  { %305 = vmatprep.subr.mxu0 %v231_v47  ;;  %4968 = vmatprep.subr.mxu1 %v238_v48 }
  0x6f   :  { %306 = vmatpush1.msra.mxu0 %v230_v49  ;;  %4969 = vmatpush3.msra.mxu1 %v238_v48 }
  0x70   :  { %307 = vmatprep.subr.mxu0 %v228_v50  ;;  %4970 = vmatprep.subr.mxu1 %v235_v51  ;;  %v215_v50 = vld [vmem:[%s6476_s1] sm:$0x3] }
  0x71   :  { %308 = vmatpush1.msra.mxu0 %v227_v52  ;;  %4971 = vmatpush3.msra.mxu1 %v235_v51  ;;  %v216_v51 = vsub.f32 1.0, %v215_v50 }
  0x72   :  { %309 = vmatprep.subr.mxu0 %v225_v53  ;;  %4972 = vmatprep.subr.mxu1 %v232_v54 }
  0x73   :  { %310 = vmatpush1.msra.mxu0 %v224_v55  ;;  %4973 = vmatpush3.msra.mxu1 %v232_v54  ;;  %v217_v52 = vmul.f32 -10000.0, %v216_v51 }
  0x74   :  { %311 = vmatprep.subr.mxu0 %v222_v56  ;;  %4974 = vmatprep.subr.mxu1 %v229_v57 }
  0x75   :  { %312 = vmatpush1.msra.mxu0 %v221_v58  ;;  %4975 = vmatpush3.msra.mxu1 %v229_v57 }
  0x76   :  { %313 = vmatprep.subr.mxu0 %v219_v59  ;;  %4976 = vmatprep.subr.mxu1 %v226_v60 }
  0x77   :  { %314 = vmatpush1.msra.mxu0 %v218_v61  ;;  %4977 = vmatpush3.msra.mxu1 %v226_v60 }
  0x78   :  { %4990 = vmatprep.subr.mxu0 %v5637_v62  ;;  %4978 = vmatprep.subr.mxu1 %v223_v63 }
  0x79   :  { %4979 = vmatpush3.msra.mxu1 %v223_v63 }
  0x7a   :  { %4980 = vmatprep.subr.mxu1 %v220_v0 }
  0x7b   :  { %4981 = vmatpush3.msra.mxu1 %v220_v0 }
  0x7c   :  { %4985 = vmatprep.subr.mxu1 %v5637_v62 }
  0xec   :  { %v177_v18 = vpop.xlane.xlu0 %176 }
  0xed   :  { %v181_v19 = vmul.f32 0.0078125, %v177_v18  ;;  %v5842_v18 = vshrl.u32 %v268_v17, 7 }
  0xef   :  { %v5810_v20 = vsub.f32 %v172_v6, %v181_v19  ;;  %v5845_v19 = vsub.s32 0, %v5842_v18 }
  0xf0   :  { %v179_v21 = vpop.xlane.xlu0 %178 }
  0xf1   :  { %v182_v22 = vmul.f32 0.0078125, %v179_v21  ;;  %v185_v23 = vmul.f32 %v5810_v20, %v5810_v20  ;;  %v5851_v21 = vsub.s32 1, %v5842_v18  ;;  %v5917_v53 = vrot.slane %v217_v52, %v5845_v19 }
  0xf3   :  { %v5814_v24 = vsub.f32 %v173_v7, %v182_v22  ;;  %187 = vadd.xlane.f32.xlu1 %v185_v23  ;;  %v278_v23 = vsub.s32 2, %v5842_v18 }
  0xf5   :  { %v186_v25 = vmul.f32 %v5814_v24, %v5814_v24 }
  0xf7   :  { %189 = vadd.xlane.f32.xlu1 %v186_v25 }
 0x17c   :  { %v188_v1 = vpop.xlane.xlu1 %187 }
 0x17d   :  { %v191_v2 = vmul.f32 0.0078125, %v188_v1 }
 0x17f   :  { %v193_v3 = vadd.f32 1e-12, %v191_v2 }
 0x180   :  { %v190_v4 = vpop.xlane.xlu1 %189 }
 0x181   :  { %5373 = vrsqrt.f32 %v193_v3  ;;  %v192_v5 = vmul.f32 0.0078125, %v190_v4 }
 0x183   :  { %v194_v6 = vadd.f32 1e-12, %v192_v5 }
 0x185   :  { %5375 = vrsqrt.f32 %v194_v6 }
 0x18e   :  { %v5374_v7 = vpop.eup %5373 }
 0x18f   :  { %v197_v9 = vmul.f32 %v5374_v7, %v5810_v20  ;;  %v266_v20 = vld [vmem:[%s6475_s20] sm:$0x7] }
 0x190   :  { %v271_v22 = vrot.slane %v266_v20, %v5845_v19  ;;  %v279_v27 = vrot.slane %v266_v20, %v278_v23 }
 0x191   :  { %v205_v11 = vmul.f32 %v4614_v8, %v197_v9  ;;  %v5926_v9 = vrot.slane %v217_v52, %v5851_v21 }
 0x192   :  { %v5376_v12 = vpop.eup %5375 }
 0x193   :  { %v5828_v13 = vadd.f32 %v4615_v10, %v205_v11  ;;  %v198_v14 = vmul.f32 %v5376_v12, %v5814_v24  ;;  %v275_v24 = vrot.slane %v266_v20, %v5851_v21 }
 0x195   :  { %348 = vmatmul.mubr.f32.vlgmr.msra.gmra.mxu0 %v5828_v13  ;;  %4982 = vmatprep.mubr.f32.mxu1 %v5828_v13  ;;  %v206_v15 = vmul.f32 %v4614_v8, %v198_v14 }
 0x196   :  { %353 = vmatprep.mubr.f32.mxu0 %v5637_v62 }
 0x197   :  { %v5834_v16 = vadd.f32 %v4615_v10, %v206_v15 }
 0x199   :  { %354 = vmatmul.mubr.f32.gmra.mxu0 %v5834_v16  ;;  %4983 = vmatmul.mubr.f32.vlgmr.msra.gmra.mxu1 %v5834_v16 }
 0x19a   :  { %4987 = vmatprep.mubr.msk.f32.mxu1 %vm5638_vm0, %v5637_v62  ;;  %4992 = vmatprep.mubr.msk.f32.mxu0 %vm5638_vm0, %v5637_v62 }
 0x255   :  { %v349_v25 = vpop.f32.mrf.mxu0 }
 0x256   :  { %v350_v26 = vadd.f32 %v349_v25, %v271_v22 }
 0x257   :  { %v351_v28 = vpop.f32.mrf.mxu0 }
 0x258   :  { %v352_v29 = vadd.f32 %v351_v28, %v275_v24  ;;  %604 = vrot.lane.b32.xlu1 %v350_v26, %s5639_s28 }
 0x259   :  { %v355_v30 = vpop.f32.mrf.mxu0  ;;  %v4984_v31 = vpop.f32.mrf.mxu1 }
 0x25a   :  { %v5859_v32 = vadd.f32 %v4984_v31, %v279_v27  ;;  %606 = vrot.lane.b32.xlu0 %v352_v29, %s5639_s28  ;;  %4986 = vmatpush3.xpose.msk.msra.mxu1 %vm435_vm1, %v352_v29  ;;  %v356_v37 = vadd.f32 %v355_v30, %v271_v22 }
 0x25b   :  { %v426_v33 = vpop.f32.mrf.mxu1  ;;  %4995 = vmatprep.subr.mxu1 %v5637_v62  ;;  %v357_v35 = vpop.f32.mrf.mxu0 }
 0x25c   :  { %v5864_v34 = vadd.f32 %v426_v33, %v279_v27  ;;  %780 = vrot.lane.b32.xlu1 %v352_v29, %s5640_s8  ;;  %v358_v36 = vadd.f32 %v357_v35, %v275_v24 }
 0x25d   :  { %4988 = vmatmul.mubr.msk.f32.vlgmr.msra.gmra.mxu1 %vm435_vm1, %v350_v26 }
 0x25e   :  { %953 = vrot.lane.b32.xlu0 %v352_v29, %s5641_s14  ;;  %4991 = vmatpush3.msra.mxu0 %v5864_v34 }
 0x25f   :  { %4997 = vmatprep.mubr.msk.f32.mxu1 %vm5638_vm0, %v5637_v62  ;;  %5000 = vmatprep.subr.mxu0 %v5637_v62 }
 0x260   :  { %778 = vrot.lane.b32.xlu1 %v350_v26, %s5640_s8 }
 0x262   :  { %1293 = vrot.lane.b32.xlu0 %v358_v36, %s5639_s28 }
 0x264   :  { %951 = vrot.lane.b32.xlu1 %v350_v26, %s5641_s14 }
 0x266   :  { %1466 = vrot.lane.b32.xlu0 %v358_v36, %s5640_s8 }
 0x268   :  { %1291 = vrot.lane.b32.xlu1 %v356_v37, %s5639_s28 }
 0x26a   :  { %1638 = vrot.lane.b32.xlu0 %v358_v36, %s5641_s14 }
 0x26c   :  { %1464 = vrot.lane.b32.xlu1 %v356_v37, %s5640_s8 }
 0x270   :  { %1636 = vrot.lane.b32.xlu1 %v356_v37, %s5641_s14 }
 0x2ca   :  { %v605_v38 = vpop.permute.xlu1 %604 }
 0x2cc   :  { %v607_v39 = vpop.permute.xlu0 %606 }
 0x2cd   :  { %4996 = vmatpush3.xpose.msk.msra.mxu1 %vm435_vm1, %v607_v39 }
 0x2ce   :  { %v781_v40 = vpop.permute.xlu1 %780  ;;  %5005 = vmatprep.subr.mxu1 %v5637_v62 }
 0x2d0   :  { %4998 = vmatmul.mubr.msk.f32.vlgmr.msra.gmra.mxu1 %vm435_vm1, %v605_v38  ;;  %v954_v41 = vpop.permute.xlu0 %953 }
 0x2d1   :  { %5006 = vmatpush3.xpose.msk.msra.mxu1 %vm435_vm1, %v781_v40  ;;  %5007 = vmatprep.mubr.msk.f32.mxu1 %vm5638_vm0, %v5637_v62 }
 0x2d2   :  { %v779_v42 = vpop.permute.xlu1 %778  ;;  %5015 = vmatprep.subr.mxu1 %v5637_v62 }
 0x2d4   :  { %5008 = vmatmul.mubr.msk.f32.vlgmr.msra.gmra.mxu1 %vm435_vm1, %v779_v42  ;;  %v1294_v44 = vpop.permute.xlu0 %1293 }
 0x2d5   :  { %5016 = vmatpush3.xpose.msk.msra.mxu1 %vm435_vm1, %v954_v41  ;;  %5017 = vmatprep.mubr.msk.f32.mxu1 %vm5638_vm0, %v5637_v62 }
 0x2d6   :  { %v952_v43 = vpop.permute.xlu1 %951  ;;  %5025 = vmatprep.subr.mxu1 %v5637_v62 }
 0x2d8   :  { %5018 = vmatmul.mubr.msk.f32.vlgmr.msra.gmra.mxu1 %vm435_vm1, %v952_v43  ;;  %v1467_v46 = vpop.permute.xlu0 %1466 }
 0x2d9   :  { %5026 = vmatpush3.xpose.msk.msra.mxu1 %vm435_vm1, %v358_v36  ;;  %5027 = vmatprep.mubr.msk.f32.mxu1 %vm5638_vm0, %v5637_v62 }
 0x2da   :  { %5035 = vmatprep.subr.mxu1 %v5637_v62  ;;  %v1292_v45 = vpop.permute.xlu1 %1291 }
 0x2dc   :  { %5028 = vmatmul.mubr.msk.f32.vlgmr.msra.gmra.mxu1 %vm435_vm1, %v356_v37  ;;  %v1639_v48 = vpop.permute.xlu0 %1638 }
 0x2dd   :  { %5036 = vmatpush3.xpose.msk.msra.mxu1 %vm435_vm1, %v1294_v44  ;;  %5037 = vmatprep.mubr.msk.f32.mxu1 %vm5638_vm0, %v5637_v62 }
 0x2de   :  { %5045 = vmatprep.subr.mxu1 %v5637_v62  ;;  %v1465_v47 = vpop.permute.xlu1 %1464 }
 0x2e0   :  { %5038 = vmatmul.mubr.msk.f32.vlgmr.msra.gmra.mxu1 %vm435_vm1, %v1292_v45 }
 0x2e1   :  { %5046 = vmatpush3.xpose.msk.msra.mxu1 %vm435_vm1, %v1467_v46  ;;  %5047 = vmatprep.mubr.msk.f32.mxu1 %vm5638_vm0, %v5637_v62 }
 0x2e2   :  { %5055 = vmatprep.subr.mxu1 %v5637_v62  ;;  %v1637_v49 = vpop.permute.xlu1 %1636 }
 0x2e4   :  { %5048 = vmatmul.mubr.msk.f32.vlgmr.msra.gmra.mxu1 %vm435_vm1, %v1465_v47 }
 0x2e5   :  { %5056 = vmatpush3.xpose.msk.msra.mxu1 %vm435_vm1, %v1639_v48  ;;  %5057 = vmatprep.mubr.msk.f32.mxu1 %vm5638_vm0, %v5637_v62 }
 0x2e8   :  { %5058 = vmatmul.mubr.msk.f32.vlgmr.msra.gmra.mxu1 %vm435_vm1, %v1637_v49 }
 0x31d   :  { %v508_v54 = vpop.f32.mrf.mxu1 }
 0x31e   :  { %v512_v55 = vmul.f32 0.17677669, %v508_v54 }
 0x31f   :  { %v4989_v56 = vpop.f32.mrf.mxu1 }
 0x320   :  { %v517_v57 = vadd.f32 %v5917_v53, %v512_v55 }
 0x322   :  { %v519_v58 = vsel %vm518_vm2, %v517_v57, -inf }
 0x323   :  { %520 = vmax.xlane.f32.xlu0 %v519_v58 }
 0x390   :  { %v678_v59 = vpop.f32.mrf.mxu1 }
 0x391   :  { %v682_v60 = vmul.f32 0.17677669, %v678_v59 }
 0x392   :  { %v4999_v61 = vpop.f32.mrf.mxu1 }
 0x393   :  { %v683_v63 = vadd.f32 %v682_v60, %v5917_v53 }
 0x394   :  { %v852_v0 = vpop.f32.mrf.mxu1 }
 0x395   :  { %v856_v1 = vmul.f32 0.17677669, %v852_v0  ;;  %v684_v2 = vsel %vm518_vm2, %v683_v63, -inf }
 0x396   :  { %685 = vmax.xlane.f32.xlu1 %v684_v2  ;;  %v5009_v3 = vpop.f32.mrf.mxu1 }
 0x397   :  { %v857_v4 = vadd.f32 %v856_v1, %v5917_v53 }
 0x398   :  { %v1025_v5 = vpop.f32.mrf.mxu1 }
 0x399   :  { %v1029_v6 = vmul.f32 0.17677669, %v1025_v5  ;;  %v858_v7 = vsel %vm518_vm2, %v857_v4, -inf }
 0x39a   :  { %859 = vmax.xlane.f32.xlu0 %v858_v7  ;;  %v5019_v8 = vpop.f32.mrf.mxu1 }
 0x39b   :  { %v5929_v10 = vadd.f32 %v1029_v6, %v5917_v53 }
 0x39c   :  { %v1196_v11 = vpop.f32.mrf.mxu1 }
 0x39d   :  { %v1200_v12 = vmul.f32 0.17677669, %v1196_v11  ;;  %v1031_v14 = vsel %vm518_vm2, %v5929_v10, -inf }
 0x39e   :  { %1032 = vmax.xlane.f32.xlu0 %v1031_v14  ;;  %v5029_v15 = vpop.f32.mrf.mxu1 }
 0x39f   :  { %v1205_v17 = vadd.f32 %v5926_v9, %v1200_v12 }
 0x3a0   :  { %v1365_v20 = vpop.f32.mrf.mxu1 }
 0x3a1   :  { %v1369_v22 = vmul.f32 0.17677669, %v1365_v20  ;;  %v1206_v24 = vsel %vm518_vm2, %v1205_v17, -inf }
 0x3a2   :  { %1207 = vmax.xlane.f32.xlu0 %v1206_v24  ;;  %v5039_v25 = vpop.f32.mrf.mxu1 }
 0x3a3   :  { %v1370_v26 = vadd.f32 %v1369_v22, %v5926_v9 }
 0x3a4   :  { %v1538_v27 = vpop.f32.mrf.mxu1 }
 0x3a5   :  { %v1542_v28 = vmul.f32 0.17677669, %v1538_v27  ;;  %v1371_v29 = vsel %vm518_vm2, %v1370_v26, -inf }
 0x3a6   :  { %1372 = vmax.xlane.f32.xlu1 %v1371_v29  ;;  %v5049_v30 = vpop.f32.mrf.mxu1 }
 0x3a7   :  { %v1543_v31 = vadd.f32 %v1542_v28, %v5926_v9 }
 0x3a8   :  { %v1710_v33 = vpop.f32.mrf.mxu1 }
 0x3a9   :  { %v1714_v35 = vmul.f32 0.17677669, %v1710_v33  ;;  %v1544_v36 = vsel %vm518_vm2, %v1543_v31, -inf }
 0x3aa   :  { %1545 = vmax.xlane.f32.xlu0 %v1544_v36  ;;  %v5059_v37 = vpop.f32.mrf.mxu1 }
 0x3ab   :  { %v1715_v38 = vadd.f32 %v1714_v35, %v5926_v9 }
 0x3ac   :  { %v521_v39 = vpop.xlane.xlu0 %520 }
 0x3ad   :  { %v522_v40 = vsub.f32 %v517_v57, %v521_v39  ;;  %v1716_v41 = vsel %vm518_vm2, %v1715_v38, -inf }
 0x3ae   :  { %1717 = vmax.xlane.f32.xlu1 %v1716_v41 }
 0x3af   :  { %v523_v42 = vmul.f32 1.442695, %v522_v40 }
 0x3b1   :  { %5377 = vpow2.f32 %v523_v42 }
 0x3be   :  { %v5378_v43 = vpop.eup %5377 }
 0x3bf   :  { %v525_v44 = vsel %vm518_vm2, %v5378_v43, 0.0 }
 0x3c0   :  { %526 = vadd.xlane.f32.xlu0 %v525_v44 }
 0x41f   :  { %v686_v45 = vpop.xlane.xlu1 %685 }
 0x420   :  { %v687_v46 = vsub.f32 %v683_v63, %v686_v45 }
 0x422   :  { %v688_v47 = vmul.f32 1.442695, %v687_v46 }
 0x423   :  { %v860_v48 = vpop.xlane.xlu0 %859 }
 0x424   :  { %5379 = vpow2.f32 %v688_v47  ;;  %v861_v49 = vsub.f32 %v857_v4, %v860_v48 }
 0x426   :  { %v862_v50 = vmul.f32 1.442695, %v861_v49 }
 0x427   :  { %v1033_v56 = vpop.xlane.xlu0 %1032 }
 0x428   :  { %5381 = vpow2.f32 %v862_v50  ;;  %v1034_v61 = vsub.f32 %v5929_v10, %v1033_v56 }
 0x42a   :  { %v1035_v4 = vmul.f32 1.442695, %v1034_v61  ;;  %v1822_v61 = vld [vmem:[#allocation6 + $0x60] sm:$0xff] }
 0x42b   :  { %v1208_v57 = vpop.xlane.xlu0 %1207 }
 0x42c   :  { %v1209_v60 = vsub.f32 %v1205_v17, %v1208_v57 }
 0x42e   :  { %v1210_v0 = vmul.f32 1.442695, %v1209_v60  ;;  %v1823_v60 = vld [vmem:[#allocation6 + $0x68] sm:$0xff] }
 0x42f   :  { %v1373_v2 = vpop.xlane.xlu1 %1372 }
 0x430   :  { %v1374_v5 = vsub.f32 %v1370_v26, %v1373_v2 }
 0x431   :  { %v5380_v51 = vpop.eup %5379 }
 0x432   :  { %v690_v52 = vsel %vm518_vm2, %v5380_v51, 0.0 }
 0x433   :  { %691 = vadd.xlane.f32.xlu1 %v690_v52  ;;  %v1546_v58 = vpop.xlane.xlu0 %1545 }
 0x434   :  { %v1547_v1 = vsub.f32 %v1543_v31, %v1546_v58  ;;  %v1825_v58 = vld [vmem:[#allocation6 + $0x78] sm:$0xff] }
 0x435   :  { %v5943_v54 = vpop.eup %5381  ;;  %5065 = vmatprep.subr.mxu1 %v1825_v58 }
 0x436   :  { %v864_v55 = vsel %vm518_vm2, %v5943_v54, 0.0  ;;  %v1548_v6 = vmul.f32 1.442695, %v1547_v1  ;;  %5066 = vmatpush3.msra.mxu1 %v1825_v58 }
 0x437   :  { %865 = vadd.xlane.f32.xlu0 %v864_v55  ;;  %v1718_v7 = vpop.xlane.xlu1 %1717 }
 0x438   :  { %v1719_v8 = vsub.f32 %v1715_v38, %v1718_v7  ;;  %v1817_v7 = vld [vmem:[#allocation6 + $0x38] sm:$0xff] }
 0x43a   :  { %v1720_v10 = vmul.f32 1.442695, %v1719_v8 }
 0x444   :  { %869 = vrot.lane.b32.xlu1 %v5864_v34, %s5640_s8 }
 0x448   :  { %1042 = vrot.lane.b32.xlu1 %v5864_v34, %s5641_s14 }
 0x449   :  { %v527_v59 = vpop.xlane.xlu0 %526 }
 0x44a   :  { %5383 = vrcp.f32 %v527_v59  ;;  %v1824_v59 = vld [vmem:[#allocation6 + $0x70] sm:$0xff] }
 0x44b   :  { %5385 = vpow2.f32 %v1210_v0  ;;  %5067 = vmatprep.subr.mxu1 %v1824_v59 }
 0x44c   :  { %1383 = vrot.lane.b32.xlu1 %v5859_v32, %s5639_s28  ;;  %5387 = vpow2.f32 %v1035_v4  ;;  %5068 = vmatpush3.msra.mxu1 %v1824_v59  ;;  %v1820_v4 = vld [vmem:[#allocation6 + $0x50] sm:$0xff] }
 0x44d   :  { %696 = vrot.lane.b32.xlu0 %v5864_v34, %s5639_s28  ;;  %v1375_v34 = vmul.f32 1.442695, %v1374_v5  ;;  %5389 = vpow2.f32 %v1548_v6  ;;  %5069 = vmatprep.subr.mxu1 %v1823_v60  ;;  %v1819_v5 = vld [vmem:[#allocation6 + $0x48] sm:$0xff]  ;;  %v1818_v6 = vld [vmem:[#allocation6 + $0x40] sm:$0xff] }
 0x44e   :  { %5070 = vmatpush3.msra.mxu1 %v1823_v60 }
 0x44f   :  { %5391 = vpow2.f32 %v1375_v34  ;;  %5071 = vmatprep.subr.mxu1 %v1822_v61  ;;  %v1816_v34 = vld [vmem:[#allocation6 + $0x30] sm:$0xff] }
 0x450   :  { %5393 = vpow2.f32 %v1720_v10  ;;  %5072 = vmatpush3.msra.mxu1 %v1822_v61  ;;  %v1815_v10 = vld [vmem:[#allocation6 + $0x28] sm:$0xff] }
 0x457   :  { %v5384_v63 = vpop.eup %5383 }
 0x458   :  { %v529_v3 = vmul.f32 %v5384_v63, %v5378_v43  ;;  %v5386_v11 = vpop.eup %5385 }
 0x459   :  { %v5388_v12 = vpop.eup %5387  ;;  %v1212_v14 = vsel %vm518_vm2, %v5386_v11, 0.0 }
 0x45a   :  { %4993 = vmatmul.mubr.msk.f32.vlgmr.msra.gmra.mxu0 %vm518_vm2, %v529_v3  ;;  %v5960_v15 = vpop.eup %5389  ;;  %v1037_v17 = vsel %vm518_vm2, %v5388_v12, 0.0  ;;  %v1821_v3 = vld [vmem:[#allocation6 + $0x58] sm:$0xff] }
 0x45b   :  { %5002 = vmatprep.mubr.msk.f32.mxu0 %vm5638_vm0, %v5637_v62  ;;  %v1550_v20 = vsel %vm518_vm2, %v5960_v15, 0.0  ;;  %5073 = vmatprep.subr.mxu1 %v1821_v3 }
 0x45c   :  { %v5392_v22 = vpop.eup %5391  ;;  %5074 = vmatpush3.msra.mxu1 %v1821_v3  ;;  %v1969_v3 = vld [vmem:[#allocation8 + $0x98] sm:$0xff] }
 0x45d   :  { %v1377_v24 = vsel %vm518_vm2, %v5392_v22, 0.0  ;;  %v5966_v25 = vpop.eup %5393  ;;  %5075 = vmatprep.subr.mxu1 %v1820_v4 }
 0x45e   :  { %v1722_v26 = vsel %vm518_vm2, %v5966_v25, 0.0  ;;  %5076 = vmatpush3.msra.mxu1 %v1820_v4  ;;  %v1968_v4 = vld [vmem:[#allocation8 + $0x90] sm:$0xff] }
 0x45f   :  { %5077 = vmatprep.subr.mxu1 %v1819_v5 }
 0x460   :  { %5078 = vmatpush3.msra.mxu1 %v1819_v5  ;;  %v1967_v5 = vld [vmem:[#allocation8 + $0x88] sm:$0xff] }
 0x461   :  { %5079 = vmatprep.subr.mxu1 %v1818_v6 }
 0x462   :  { %5080 = vmatpush3.msra.mxu1 %v1818_v6  ;;  %v1966_v6 = vld [vmem:[#allocation8 + $0x80] sm:$0xff] }
 0x463   :  { %5081 = vmatprep.subr.mxu1 %v1817_v7 }
 0x464   :  { %5082 = vmatpush3.msra.mxu1 %v1817_v7  ;;  %v1965_v7 = vld [vmem:[#allocation8 + $0x78] sm:$0xff] }
 0x465   :  { %5083 = vmatprep.subr.mxu1 %v1816_v34 }
 0x466   :  { %5084 = vmatpush3.msra.mxu1 %v1816_v34  ;;  %v1964_v34 = vld [vmem:[#allocation8 + $0x70] sm:$0xff] }
 0x467   :  { %5085 = vmatprep.subr.mxu1 %v1815_v10 }
 0x468   :  { %5086 = vmatpush3.msra.mxu1 %v1815_v10  ;;  %v1962_v10 = vld [vmem:[#allocation8 + $0x60] sm:$0xff] }
 0x46c   :  { %1213 = vadd.xlane.f32.xlu0 %v1212_v14 }
 0x470   :  { %1038 = vadd.xlane.f32.xlu1 %v1037_v17  ;;  %1551 = vadd.xlane.f32.xlu0 %v1550_v20  ;;  %v1812_v17 = vld [vmem:[#allocation6 + $0x10] sm:$0xff] }
 0x474   :  { %1378 = vadd.xlane.f32.xlu1 %v1377_v24 }
 0x478   :  { %1723 = vadd.xlane.f32.xlu1 %v1722_v26 }
 0x486   :  { %1555 = vrot.lane.b32.xlu0 %v5859_v32, %s5640_s8 }
 0x489   :  { %1727 = vrot.lane.b32.xlu1 %v5859_v32, %s5641_s14 }
 0x4bc   :  { %v692_v27 = vpop.xlane.xlu1 %691 }
 0x4bd   :  { %5395 = vrcp.f32 %v692_v27 }
 0x4c0   :  { %v866_v28 = vpop.xlane.xlu0 %865  ;;  %v870_v31 = vpop.permute.xlu1 %869 }
 0x4c1   :  { %5397 = vrcp.f32 %v866_v28 }
 0x4c4   :  { %v697_v29 = vpop.permute.xlu0 %696  ;;  %v1043_v37 = vpop.permute.xlu1 %1042 }
 0x4c5   :  { %5001 = vmatpush3.msra.mxu0 %v697_v29 }
 0x4c6   :  { %5010 = vmatprep.subr.mxu0 %v5637_v62 }
 0x4c8   :  { %v1384_v38 = vpop.permute.xlu1 %1383 }
 0x4ca   :  { %v5396_v30 = vpop.eup %5395 }
 0x4cb   :  { %v694_v33 = vmul.f32 %v5396_v30, %v5380_v51 }
 0x4cd   :  { %5003 = vmatmul.mubr.msk.f32.vlgmr.msra.gmra.mxu0 %vm518_vm2, %v694_v33 }
 0x4ce   :  { %v5398_v35 = vpop.eup %5397  ;;  %5011 = vmatpush3.msra.mxu0 %v870_v31  ;;  %5012 = vmatprep.mubr.msk.f32.mxu0 %vm5638_vm0, %v5637_v62 }
 0x4cf   :  { %5020 = vmatprep.subr.mxu0 %v5637_v62  ;;  %v868_v36 = vmul.f32 %v5398_v35, %v5943_v54 }
 0x4d1   :  { %5013 = vmatmul.mubr.msk.f32.vlgmr.msra.gmra.mxu0 %vm518_vm2, %v868_v36 }
 0x4d2   :  { %5021 = vmatpush3.msra.mxu0 %v1043_v37  ;;  %5022 = vmatprep.mubr.msk.f32.mxu0 %vm5638_vm0, %v5637_v62 }
 0x4d3   :  { %5030 = vmatprep.subr.mxu0 %v5637_v62 }
 0x4f5   :  { %v1214_v39 = vpop.xlane.xlu0 %1213 }
 0x4f9   :  { %v1039_v40 = vpop.xlane.xlu1 %1038  ;;  %v1552_v42 = vpop.xlane.xlu0 %1551 }
 0x4fa   :  { %5399 = vrcp.f32 %v1039_v40 }
 0x4fb   :  { %5401 = vrcp.f32 %v1214_v39 }
 0x4fd   :  { %v1379_v41 = vpop.xlane.xlu1 %1378  ;;  %v1556_v51 = vpop.permute.xlu0 %1555 }
 0x4fe   :  { %5403 = vrcp.f32 %v1379_v41 }
 0x4ff   :  { %5405 = vrcp.f32 %v1552_v42  ;;  %v4640_v42 = vld [vmem:[%s6438_s9] ss:$0 sm:$0xff] }
 0x501   :  { %v1724_v43 = vpop.xlane.xlu1 %1723 }
 0x502   :  { %5407 = vrcp.f32 %v1724_v43 }
 0x505   :  { %v1728_v54 = vpop.permute.xlu1 %1727 }
 0x507   :  { %v5400_v44 = vpop.eup %5399 }
 0x508   :  { %v1041_v45 = vmul.f32 %v5400_v44, %v5388_v12  ;;  %v5402_v46 = vpop.eup %5401 }
 0x509   :  { %v1216_v47 = vmul.f32 %v5402_v46, %v5386_v11  ;;  %v1814_v11 = vld [vmem:[#allocation6 + $0x20] sm:$0xff] }
 0x50a   :  { %5023 = vmatmul.mubr.msk.f32.vlgmr.msra.gmra.mxu0 %vm518_vm2, %v1041_v45  ;;  %5087 = vmatprep.subr.mxu1 %v1814_v11 }
 0x50b   :  { %5031 = vmatpush3.msra.mxu0 %v5859_v32  ;;  %5032 = vmatprep.mubr.msk.f32.mxu0 %vm5638_vm0, %v5637_v62  ;;  %v5404_v48 = vpop.eup %5403 }
 0x50c   :  { %5040 = vmatprep.subr.mxu0 %v5637_v62  ;;  %v1381_v49 = vmul.f32 %v5404_v48, %v5392_v22  ;;  %v5406_v50 = vpop.eup %5405  ;;  %5088 = vmatpush3.msra.mxu1 %v1814_v11  ;;  %v1811_v22 = vld [vmem:[#allocation6 + $0x8] sm:$0xff]  ;;  %v1981_v48 = vld [vmem:[#allocation8 + $0xf8] sm:$0xff] }
 0x50d   :  { %v1554_v32 = vmul.f32 %v5406_v50, %v5960_v15  ;;  %v1813_v15 = vld [vmem:[#allocation6 + $0x18] sm:$0xff]  ;;  %v1979_v50 = vld [vmem:[#allocation8 + $0xe8] sm:$0xff] }
 0x50e   :  { %5033 = vmatmul.mubr.msk.f32.vlgmr.msra.gmra.mxu0 %vm518_vm2, %v1216_v47  ;;  %5089 = vmatprep.subr.mxu1 %v1813_v15  ;;  %v1961_v11 = vld [vmem:[#allocation8 + $0x58] sm:$0xff] }
 0x50f   :  { %5041 = vmatpush3.msra.mxu0 %v1384_v38  ;;  %5042 = vmatprep.mubr.msk.f32.mxu0 %vm5638_vm0, %v5637_v62  ;;  %v5408_v52 = vpop.eup %5407 }
 0x510   :  { %5050 = vmatprep.subr.mxu0 %v5637_v62  ;;  %v1726_v55 = vmul.f32 %v5408_v52, %v5966_v25  ;;  %5090 = vmatpush3.msra.mxu1 %v1813_v15  ;;  %v1810_v25 = vld [vmem:[#allocation6] sm:$0xff]  ;;  %v1976_v52 = vld [vmem:[#allocation8 + $0xd0] sm:$0xff] }
 0x511   :  { %5091 = vmatprep.subr.mxu1 %v1812_v17  ;;  %v1958_v15 = vld [vmem:[#allocation8 + $0x40] sm:$0xff] }
 0x512   :  { %5043 = vmatmul.mubr.msk.f32.vlgmr.msra.gmra.mxu0 %vm518_vm2, %v1381_v49  ;;  %5092 = vmatpush3.msra.mxu1 %v1812_v17  ;;  %v1980_v49 = vld [vmem:[#allocation8 + $0xf0] sm:$0xff]  ;;  %v1957_v17 = vld [vmem:[#allocation8 + $0x38] sm:$0xff] }
 0x513   :  { %5051 = vmatpush3.msra.mxu0 %v1556_v51  ;;  %5052 = vmatprep.mubr.msk.f32.mxu0 %vm5638_vm0, %v5637_v62  ;;  %v1978_v51 = vld [vmem:[#allocation8 + $0xe0] sm:$0xff] }
 0x514   :  { %5060 = vmatprep.subr.mxu0 %v5637_v62  ;;  %5093 = vmatprep.subr.mxu1 %v1811_v22 }
 0x515   :  { %5094 = vmatpush3.msra.mxu1 %v1811_v22  ;;  %v1955_v22 = vld [vmem:[#allocation8 + $0x28] sm:$0xff] }
 0x516   :  { %5053 = vmatmul.mubr.msk.f32.vlgmr.msra.gmra.mxu0 %vm518_vm2, %v1554_v32  ;;  %5095 = vmatprep.subr.mxu1 %v1810_v25  ;;  %v1977_v32 = vld [vmem:[#allocation8 + $0xd8] sm:$0xff] }
 0x517   :  { %5061 = vmatpush3.msra.mxu0 %v1728_v54  ;;  %5062 = vmatprep.mubr.msk.f32.mxu0 %vm5638_vm0, %v5637_v62  ;;  %v1975_v54 = vld [vmem:[#allocation8 + $0xc8] sm:$0xff] }
 0x518   :  { %5096 = vmatpush3.msra.mxu1 %v1810_v25  ;;  %1994 = vmatprep.subr.mxu0 %v1981_v48  ;;  %v1953_v25 = vld [vmem:[#allocation8 + $0x18] sm:$0xff] }
 0x519   :  { %v2122_v48 = vld [vmem:[#allocation9 + $0x78] sm:$0xff] }
 0x51a   :  { %v599_v56 = vpop.f32.mrf.mxu0  ;;  %5063 = vmatmul.mubr.msk.f32.vlgmr.msra.gmra.mxu0 %vm518_vm2, %v1726_v55  ;;  %v1974_v55 = vld [vmem:[#allocation8 + $0xc0] sm:$0xff] }
 0x51b   :  { %603 = vst.msk [vmem:[#allocation2] sm:$0xff] %vm435_vm1, %v599_v56  ;;  %2058 = vmatprep.mubr.f32.mxu0 %v5637_v62  ;;  %1995 = vmatpush1.msra.mxu0 %v1980_v49  ;;  %v2137_v49 = vld [vmem:[#allocation9 + $0xf0] sm:$0xff] }
 0x51c   :  { %v4994_v57 = vpop.f32.mrf.mxu0  ;;  %1996 = vmatprep.subr.mxu0 %v1979_v50  ;;  %v2121_v50 = vld [vmem:[#allocation9 + $0x70] sm:$0xff] }
 0x51d   :  { %1997 = vmatpush1.msra.mxu0 %v1978_v51  ;;  %v2136_v51 = vld [vmem:[#allocation9 + $0xe8] sm:$0xff] }
 0x51e   :  { %1998 = vmatprep.subr.mxu0 %v1977_v32  ;;  %v2120_v32 = vld [vmem:[#allocation9 + $0x68] sm:$0xff] }
 0x51f   :  { %1999 = vmatpush1.msra.mxu0 %v1976_v52  ;;  %v2135_v52 = vld [vmem:[#allocation9 + $0xe0] sm:$0xff] }
 0x520   :  { %2000 = vmatprep.subr.mxu0 %v1975_v54  ;;  %v2119_v54 = vld [vmem:[#allocation9 + $0x60] sm:$0xff] }
 0x521   :  { %2001 = vmatpush1.msra.mxu0 %v1974_v55  ;;  %v2134_v55 = vld [vmem:[#allocation9 + $0xd8] sm:$0xff] }
 0x58d   :  { %v768_v63 = vpop.f32.mrf.mxu0 }
 0x58e   :  { %773 = vrot.lane.b32.xlu0 %v768_v63, %s5641_s14  ;;  %v1973_v63 = vld [vmem:[#allocation8 + $0xb8] sm:$0xff] }
 0x58f   :  { %v5004_v0 = vpop.f32.mrf.mxu0  ;;  %2002 = vmatprep.subr.mxu0 %v1973_v63  ;;  %v2114_v63 = vld [vmem:[#allocation9 + $0x38] sm:$0xff] }
 0x590   :  { %v1972_v0 = vld [vmem:[#allocation8 + $0xb0] sm:$0xff] }
 0x591   :  { %v941_v1 = vpop.f32.mrf.mxu0  ;;  %2003 = vmatpush1.msra.mxu0 %v1972_v0  ;;  %v2129_v0 = vld [vmem:[#allocation9 + $0xb0] sm:$0xff] }
 0x592   :  { %946 = vrot.lane.b32.xlu1 %v941_v1, %s5640_s8  ;;  %v1971_v1 = vld [vmem:[#allocation8 + $0xa8] sm:$0xff] }
 0x593   :  { %v5014_v2 = vpop.f32.mrf.mxu0  ;;  %2004 = vmatprep.subr.mxu0 %v1971_v1  ;;  %v2113_v1 = vld [vmem:[#allocation9 + $0x30] sm:$0xff] }
 0x594   :  { %v1970_v2 = vld [vmem:[#allocation8 + $0xa0] sm:$0xff] }
 0x595   :  { %2005 = vmatpush1.msra.mxu0 %v1970_v2  ;;  %v2128_v2 = vld [vmem:[#allocation9 + $0xa8] sm:$0xff] }
 0x596   :  { %2006 = vmatprep.subr.mxu0 %v1969_v3  ;;  %v2112_v3 = vld [vmem:[#allocation9 + $0x28] sm:$0xff] }
 0x597   :  { %2007 = vmatpush1.msra.mxu0 %v1968_v4  ;;  %v2127_v4 = vld [vmem:[#allocation9 + $0xa0] sm:$0xff] }
 0x598   :  { %2008 = vmatprep.subr.mxu0 %v1967_v5  ;;  %v2111_v5 = vld [vmem:[#allocation9 + $0x20] sm:$0xff] }
 0x599   :  { %2009 = vmatpush1.msra.mxu0 %v1966_v6  ;;  %v2126_v6 = vld [vmem:[#allocation9 + $0x98] sm:$0xff] }
 0x59a   :  { %2010 = vmatprep.subr.mxu0 %v1965_v7  ;;  %v2110_v7 = vld [vmem:[#allocation9 + $0x18] sm:$0xff] }
 0x59b   :  { %2011 = vmatpush1.msra.mxu0 %v1964_v34  ;;  %v2125_v34 = vld [vmem:[#allocation9 + $0x90] sm:$0xff] }
 0x5ca   :  { %v1114_v8 = vpop.f32.mrf.mxu0 }
 0x5cb   :  { %1119 = vrot.lane.b32.xlu1 %v1114_v8, %s5639_s28  ;;  %v1963_v8 = vld [vmem:[#allocation8 + $0x68] sm:$0xff] }
 0x5cc   :  { %v5024_v12 = vpop.f32.mrf.mxu0  ;;  %2012 = vmatprep.subr.mxu0 %v1963_v8  ;;  %v2109_v8 = vld [vmem:[#allocation9 + $0x10] sm:$0xff] }
 0x5cd   :  { %v1960_v12 = vld [vmem:[#allocation8 + $0x50] sm:$0xff]  ;;  %2013 = vmatpush1.msra.mxu0 %v1962_v10  ;;  %v2124_v10 = vld [vmem:[#allocation9 + $0x88] sm:$0xff] }
 0x5ce   :  { %v1286_v14 = vpop.f32.mrf.mxu0  ;;  %2014 = vmatprep.subr.mxu0 %v1961_v11  ;;  %v2108_v11 = vld [vmem:[#allocation9 + $0x8] sm:$0xff] }
 0x5cf   :  { %1290 = vst.msk [vmem:[#allocation2 + $0x8] sm:$0xff] %vm435_vm1, %v1286_v14  ;;  %v1959_v14 = vld [vmem:[#allocation8 + $0x48] sm:$0xff]  ;;  %2015 = vmatpush1.msra.mxu0 %v1960_v12  ;;  %v2123_v12 = vld [vmem:[#allocation9 + $0x80] sm:$0xff] }
 0x5d0   :  { %v5034_v20 = vpop.f32.mrf.mxu0  ;;  %2016 = vmatprep.subr.mxu0 %v1959_v14  ;;  %v2107_v14 = vld [vmem:[#allocation9] sm:$0xff] }
 0x5d1   :  { %v1956_v20 = vld [vmem:[#allocation8 + $0x30] sm:$0xff]  ;;  %2017 = vmatpush1.msra.mxu0 %v1958_v15 }
 0x5d2   :  { %v1455_v24 = vpop.f32.mrf.mxu0  ;;  %2018 = vmatprep.subr.mxu0 %v1957_v17  ;;  %v1982_v15 = vld [vmem:[%s6442_s13] sm:$0x3] }
 0x5d3   :  { %1460 = vrot.lane.b32.xlu0 %v1455_v24, %s5641_s14  ;;  %v1954_v24 = vld [vmem:[#allocation8 + $0x20] sm:$0xff]  ;;  %2019 = vmatpush1.msra.mxu0 %v1956_v20  ;;  %v1987_v17 = vrot.slane %v1982_v15, %v5845_v19  ;;  %v1991_v20 = vrot.slane %v1982_v15, %v5851_v21 }
 0x5d4   :  { %v5044_v26 = vpop.f32.mrf.mxu0  ;;  %2020 = vmatprep.subr.mxu0 %v1955_v22 }
 0x5d5   :  { %v1952_v26 = vld [vmem:[#allocation8 + $0x10] sm:$0xff]  ;;  %2021 = vmatpush1.msra.mxu0 %v1954_v24 }
 0x5d6   :  { %v1627_v27 = vpop.f32.mrf.mxu0  ;;  %2022 = vmatprep.subr.mxu0 %v1953_v25 }
 0x5d7   :  { %1632 = vrot.lane.b32.xlu0 %v1627_v27, %s5640_s8  ;;  %v1951_v27 = vld [vmem:[#allocation8 + $0x8] sm:$0xff]  ;;  %2023 = vmatpush1.msra.mxu0 %v1952_v26 }
 0x5d8   :  { %v5054_v28 = vpop.f32.mrf.mxu0  ;;  %2024 = vmatprep.subr.mxu0 %v1951_v27 }
 0x5d9   :  { %v1950_v28 = vld [vmem:[#allocation8] sm:$0xff] }
 0x5da   :  { %v1799_v29 = vpop.f32.mrf.mxu0  ;;  %2025 = vmatpush1.msra.mxu0 %v1950_v28 }
 0x5db   :  { %1804 = vrot.lane.b32.xlu1 %v1799_v29, %s5639_s28 }
 0x5dc   :  { %v5064_v30 = vpop.f32.mrf.mxu0 }
 0x600   :  { %v774_v31 = vpop.permute.xlu0 %773 }
 0x601   :  { %777 = vst.msk [vmem:[#allocation2] sm:$0xff] %vm776_vm3, %v774_v31 }
 0x604   :  { %v947_v33 = vpop.permute.xlu1 %946 }
 0x605   :  { %950 = vst.msk [vmem:[#allocation2] sm:$0xff] %vm949_vm4, %v947_v33 }
 0x63d   :  { %v1120_v35 = vpop.permute.xlu1 %1119 }
 0x63e   :  { %1123 = vst.msk [vmem:[#allocation2] sm:$0xff] %vm1122_vm5, %v1120_v35 }
 0x645   :  { %v1461_v36 = vpop.permute.xlu0 %1460  ;;  %v1808_v37 = vld [vmem:[#allocation2] sm:$0xff] }
 0x646   :  { %1463 = vst.msk [vmem:[#allocation2 + $0x8] sm:$0xff] %vm776_vm3, %v1461_v36  ;;  %5097 = vmatprep.mubr.f32.mxu1 %v1808_v37 }
 0x649   :  { %v1633_v38 = vpop.permute.xlu0 %1632 }
 0x64a   :  { %1635 = vst.msk [vmem:[#allocation2 + $0x8] sm:$0xff] %vm949_vm4, %v1633_v38  ;;  %v4641_v38 = vld [vmem:[%s6439_s10] ss:$0 sm:$0xff] }
 0x64d   :  { %v1805_v39 = vpop.permute.xlu1 %1804 }
 0x64e   :  { %1807 = vst.msk [vmem:[#allocation2 + $0x8] sm:$0xff] %vm1122_vm5, %v1805_v39 }
 0x655   :  { %v1809_v40 = vld [vmem:[#allocation2 + $0x8] sm:$0xff] }
 0x656   :  { %5098 = vmatmul.mubr.f32.vlgmr.msra.gmra.mxu1 %v1809_v40  ;;  %v4642_v40 = vld [vmem:[%s6440_s11] ss:$0 sm:$0xff] }
 0x716   :  { %v5099_v41 = vpop.f32.mrf.mxu1 }
 0x717   :  { %v1905_v45 = vadd.f32 %v5099_v41, %v4640_v42 }
 0x718   :  { %v1899_v43 = vpop.f32.mrf.mxu1 }
 0x719   :  { %v1900_v44 = vadd.f32 %v4640_v42, %v1899_v43  ;;  %v1909_v47 = vadd.f32 %v1905_v45, %v5834_v16 }
 0x71b   :  { %v1908_v46 = vadd.f32 %v1900_v44, %v5828_v13 }
 0x71d   :  { %1912 = vadd.xlane.f32.xlu0 %v1908_v46 }
 0x721   :  { %1914 = vadd.xlane.f32.xlu0 %v1909_v47 }
 0x7a6   :  { %v1913_v13 = vpop.xlane.xlu0 %1912 }
 0x7a7   :  { %v1916_v56 = vmul.f32 0.0078125, %v1913_v13  ;;  %v2118_v13 = vld [vmem:[#allocation9 + $0x58] sm:$0xff] }
 0x7a9   :  { %v6023_v16 = vsub.f32 %v1908_v46, %v1916_v56  ;;  %v2133_v56 = vld [vmem:[#allocation9 + $0xd0] sm:$0xff] }
 0x7aa   :  { %v1915_v57 = vpop.xlane.xlu0 %1914 }
 0x7ab   :  { %v1917_v58 = vmul.f32 0.0078125, %v1915_v57  ;;  %v1920_v59 = vmul.f32 %v6023_v16, %v6023_v16  ;;  %v2132_v57 = vld [vmem:[#allocation9 + $0xc8] sm:$0xff] }
 0x7ad   :  { %v6027_v60 = vsub.f32 %v1909_v47, %v1917_v58  ;;  %1922 = vadd.xlane.f32.xlu1 %v1920_v59  ;;  %v2138_v47 = vld [vmem:[#allocation9 + $0xf8] sm:$0xff]  ;;  %v2116_v58 = vld [vmem:[#allocation9 + $0x48] sm:$0xff]  ;;  %v2131_v59 = vld [vmem:[#allocation9 + $0xc0] sm:$0xff] }
 0x7ae   :  { %4755 = vmatprep.subr.mxu1 %v2138_v47 }
 0x7af   :  { %v1921_v61 = vmul.f32 %v6027_v60, %v6027_v60  ;;  %4756 = vmatpush3.msra.mxu1 %v2122_v48 }
 0x7b0   :  { %4757 = vmatprep.subr.mxu1 %v2137_v49 }
 0x7b1   :  { %1924 = vadd.xlane.f32.xlu0 %v1921_v61  ;;  %4758 = vmatpush3.msra.mxu1 %v2121_v50  ;;  %v2130_v61 = vld [vmem:[#allocation9 + $0xb8] sm:$0xff] }
 0x7b2   :  { %4759 = vmatprep.subr.mxu1 %v2136_v51 }
 0x7b3   :  { %4760 = vmatpush3.msra.mxu1 %v2120_v32 }
 0x7b4   :  { %4761 = vmatprep.subr.mxu1 %v2135_v52 }
 0x7b5   :  { %4762 = vmatpush3.msra.mxu1 %v2119_v54 }
 0x7b6   :  { %4763 = vmatprep.subr.mxu1 %v2134_v55 }
 0x7b7   :  { %4764 = vmatpush3.msra.mxu1 %v2118_v13 }
 0x7b8   :  { %4765 = vmatprep.subr.mxu1 %v2133_v56 }
 0x836   :  { %v1923_v29 = vpop.xlane.xlu1 %1922 }
 0x837   :  { %v1926_v30 = vmul.f32 0.0078125, %v1923_v29 }
 0x839   :  { %v1928_v31 = vadd.f32 1e-12, %v1926_v30 }
 0x83a   :  { %v1925_v33 = vpop.xlane.xlu0 %1924 }
 0x83b   :  { %5409 = vrsqrt.f32 %v1928_v31  ;;  %v1927_v35 = vmul.f32 0.0078125, %v1925_v33 }
 0x83d   :  { %v1929_v36 = vadd.f32 1e-12, %v1927_v35 }
 0x83f   :  { %5411 = vrsqrt.f32 %v1929_v36 }
 0x848   :  { %v5410_v37 = vpop.eup %5409 }
 0x849   :  { %v1932_v39 = vmul.f32 %v5410_v37, %v6023_v16  ;;  %v2117_v16 = vld [vmem:[#allocation9 + $0x50] sm:$0xff] }
 0x84a   :  { %4766 = vmatpush3.msra.mxu1 %v2117_v16 }
 0x84b   :  { %v1940_v41 = vmul.f32 %v4641_v38, %v1932_v39  ;;  %4767 = vmatprep.subr.mxu1 %v2132_v57 }
 0x84c   :  { %v5412_v42 = vpop.eup %5411  ;;  %4768 = vmatpush3.msra.mxu1 %v2116_v58 }
 0x84d   :  { %v6038_v43 = vadd.f32 %v4642_v40, %v1940_v41  ;;  %v1933_v44 = vmul.f32 %v5412_v42, %v6027_v60  ;;  %4769 = vmatprep.subr.mxu1 %v2131_v59  ;;  %v2115_v60 = vld [vmem:[#allocation9 + $0x40] sm:$0xff] }
 0x84e   :  { %4770 = vmatpush3.msra.mxu1 %v2115_v60 }
 0x84f   :  { %2059 = vmatmul.mubr.f32.vlgmr.msra.gmra.mxu0 %v6038_v43  ;;  %v1941_v45 = vmul.f32 %v4641_v38, %v1933_v44  ;;  %4771 = vmatprep.subr.mxu1 %v2130_v61 }
 0x850   :  { %2064 = vmatprep.mubr.f32.mxu0 %v5637_v62  ;;  %4772 = vmatpush3.msra.mxu1 %v2114_v63 }
 0x851   :  { %v6043_v46 = vadd.f32 %v4642_v40, %v1941_v45  ;;  %4773 = vmatprep.subr.mxu1 %v2129_v0 }
 0x852   :  { %4774 = vmatpush3.msra.mxu1 %v2113_v1 }
 0x853   :  { %2065 = vmatmul.mubr.f32.gmra.mxu0 %v6043_v46  ;;  %4775 = vmatprep.subr.mxu1 %v2128_v2 }
 0x854   :  { %2394 = vmatprep.mubr.f32.mxu0 %v5637_v62  ;;  %4776 = vmatpush3.msra.mxu1 %v2112_v3 }
 0x855   :  { %4777 = vmatprep.subr.mxu1 %v2127_v4 }
 0x856   :  { %4778 = vmatpush3.msra.mxu1 %v2111_v5 }
 0x857   :  { %4779 = vmatprep.subr.mxu1 %v2126_v6 }
 0x858   :  { %4780 = vmatpush3.msra.mxu1 %v2110_v7  ;;  %v4643_v7 = vld [vmem:[%s6444_s15] ss:$0 sm:$0xff] }
 0x859   :  { %4781 = vmatprep.subr.mxu1 %v2125_v34 }
 0x85a   :  { %4782 = vmatpush3.msra.mxu1 %v2109_v8 }
 0x85b   :  { %4783 = vmatprep.subr.mxu1 %v2124_v10 }
 0x85c   :  { %4784 = vmatpush3.msra.mxu1 %v2108_v11 }
 0x85d   :  { %4785 = vmatprep.subr.mxu1 %v2123_v12 }
 0x85e   :  { %4786 = vmatpush3.msra.mxu1 %v2107_v14 }
 0x90f   :  { %v2060_v22 = vpop.f32.mrf.mxu0 }
 0x910   :  { %v2061_v24 = vadd.f32 %v2060_v22, %v1987_v17  ;;  %v2310_v22 = vld [vmem:[#allocation3 + $0x2f0] sm:$0xff] }
 0x911   :  { %v2062_v25 = vpop.f32.mrf.mxu0  ;;  %2330 = vmatprep.subr.mxu0 %v2310_v22 }
 0x912   :  { %v2071_v26 = vmul.f32 %v2061_v24, %v2061_v24  ;;  %v2063_v27 = vadd.f32 %v2062_v25, %v1991_v20  ;;  %v2307_v25 = vld [vmem:[#allocation3 + $0x2d8] sm:$0xff] }
 0x913   :  { %v2066_v28 = vpop.f32.mrf.mxu0 }
 0x914   :  { %v2075_v29 = vmul.f32 %v2071_v26, %v2061_v24  ;;  %v2072_v30 = vmul.f32 %v2063_v27, %v2063_v27  ;;  %v2067_v31 = vadd.f32 %v2066_v28, %v1987_v17  ;;  %v2306_v26 = vld [vmem:[#allocation3 + $0x2d0] sm:$0xff]  ;;  %v2304_v28 = vld [vmem:[#allocation3 + $0x2c0] sm:$0xff] }
 0x915   :  { %v2068_v33 = vpop.f32.mrf.mxu0 }
 0x916   :  { %v2079_v35 = vmul.f32 0.044715, %v2075_v29  ;;  %v2076_v36 = vmul.f32 %v2072_v30, %v2063_v27  ;;  %v2073_v37 = vmul.f32 %v2067_v31, %v2067_v31  ;;  %v2069_v38 = vadd.f32 %v2068_v33, %v1991_v20  ;;  %v2308_v29 = vld [vmem:[#allocation3 + $0x2e0] sm:$0xff]  ;;  %v2303_v30 = vld [vmem:[#allocation3 + $0x2b8] sm:$0xff] }
 0x918   :  { %v2083_v39 = vadd.f32 %v2079_v35, %v2061_v24  ;;  %v2080_v40 = vmul.f32 0.044715, %v2076_v36  ;;  %v2077_v41 = vmul.f32 %v2073_v37, %v2067_v31  ;;  %v2074_v42 = vmul.f32 %v2069_v38, %v2069_v38 }
 0x91a   :  { %v2087_v44 = vmul.f32 0.7978846, %v2083_v39  ;;  %v2084_v45 = vadd.f32 %v2080_v40, %v2063_v27  ;;  %v2081_v47 = vmul.f32 0.044715, %v2077_v41  ;;  %v2078_v48 = vmul.f32 %v2074_v42, %v2069_v38  ;;  %v2298_v41 = vld [vmem:[#allocation3 + $0x290] sm:$0xff]  ;;  %v2305_v42 = vld [vmem:[#allocation3 + $0x2c8] sm:$0xff] }
 0x91c   :  { %5413 = vtanh.f32 %v2087_v44  ;;  %v2088_v49 = vmul.f32 0.7978846, %v2084_v45  ;;  %v2085_v50 = vadd.f32 %v2081_v47, %v2067_v31  ;;  %v2082_v51 = vmul.f32 0.044715, %v2078_v48  ;;  %v2297_v44 = vld [vmem:[#allocation3 + $0x288] sm:$0xff]  ;;  %v2295_v45 = vld [vmem:[#allocation3 + $0x278] sm:$0xff] }
 0x91d   :  { %v2302_v47 = vld [vmem:[#allocation3 + $0x2b0] sm:$0xff] }
 0x91e   :  { %5415 = vtanh.f32 %v2088_v49  ;;  %v2089_v32 = vmul.f32 0.7978846, %v2085_v50  ;;  %v2086_v52 = vadd.f32 %v2082_v51, %v2069_v38  ;;  %v2294_v48 = vld [vmem:[#allocation3 + $0x270] sm:$0xff]  ;;  %v2292_v49 = vld [vmem:[#allocation3 + $0x260] sm:$0xff]  ;;  %v2299_v50 = vld [vmem:[#allocation3 + $0x298] sm:$0xff] }
 0x91f   :  { %v2291_v51 = vld [vmem:[#allocation3 + $0x258] sm:$0xff] }
 0x920   :  { %5417 = vtanh.f32 %v2089_v32  ;;  %v2090_v54 = vmul.f32 0.7978846, %v2086_v52  ;;  %v2289_v32 = vld [vmem:[#allocation3 + $0x248] sm:$0xff]  ;;  %v2296_v52 = vld [vmem:[#allocation3 + $0x280] sm:$0xff] }
 0x922   :  { %5419 = vtanh.f32 %v2090_v54  ;;  %v2288_v54 = vld [vmem:[#allocation3 + $0x240] sm:$0xff] }
 0x929   :  { %v5414_v55 = vpop.eup %5413 }
 0x92a   :  { %v2095_v13 = vadd.f32 1.0, %v5414_v55  ;;  %v2286_v55 = vld [vmem:[#allocation3 + $0x230] sm:$0xff] }
 0x92b   :  { %v5416_v56 = vpop.eup %5415 }
 0x92c   :  { %v2096_v16 = vadd.f32 1.0, %v5416_v56  ;;  %v2099_v58 = vmul.f32 0.5, %v2095_v13  ;;  %v2293_v13 = vld [vmem:[#allocation3 + $0x268] sm:$0xff] }
 0x92d   :  { %v5418_v57 = vpop.eup %5417  ;;  %v2285_v56 = vld [vmem:[#allocation3 + $0x228] sm:$0xff] }
 0x92e   :  { %v2100_v59 = vmul.f32 0.5, %v2096_v16  ;;  %v2097_v60 = vadd.f32 1.0, %v5418_v57  ;;  %v2103_v1 = vmul.f32 %v2099_v58, %v2061_v24  ;;  %v2309_v24 = vld [vmem:[#allocation3 + $0x2e8] sm:$0xff]  ;;  %v2283_v16 = vld [vmem:[#allocation3 + $0x218] sm:$0xff]  ;;  %v2290_v57 = vld [vmem:[#allocation3 + $0x250] sm:$0xff] }
 0x92f   :  { %v5420_v61 = vpop.eup %5419  ;;  %2331 = vmatpush1.msra.mxu0 %v2309_v24  ;;  %v2282_v58 = vld [vmem:[#allocation3 + $0x210] sm:$0xff] }
 0x930   :  { %v2104_v63 = vmul.f32 %v2100_v59, %v2063_v27  ;;  %v2098_v0 = vadd.f32 1.0, %v5420_v61  ;;  %v2101_v2 = vmul.f32 0.5, %v2097_v60  ;;  %v2311_v27 = vld [vmem:[#allocation3 + $0x2f8] sm:$0xff]  ;;  %2332 = vmatprep.subr.mxu0 %v2307_v25  ;;  %v2280_v59 = vld [vmem:[#allocation3 + $0x200] sm:$0xff] }
 0x931   :  { %5100 = vmatprep.subr.mxu1 %v2311_v27  ;;  %2333 = vmatpush1.msra.mxu0 %v2306_v26  ;;  %v2287_v60 = vld [vmem:[#allocation3 + $0x238] sm:$0xff] }
 0x932   :  { %2210 = vmatprep.mubr.f32.mxu1 %v2104_v63  ;;  %v2102_v3 = vmul.f32 0.5, %v2098_v0  ;;  %v2105_v5 = vmul.f32 %v2101_v2, %v2067_v31  ;;  %2334 = vmatprep.subr.mxu0 %v2304_v28  ;;  %v2300_v31 = vld [vmem:[#allocation3 + $0x2a0] sm:$0xff]  ;;  %v2279_v61 = vld [vmem:[#allocation3 + $0x1f8] sm:$0xff]  ;;  %v2277_v63 = vld [vmem:[#allocation3 + $0x1e8] sm:$0xff] }
 0x933   :  { %2211 = vmatmul.mubr.f32.vlgmr.msra.gmra.mxu1 %v2103_v1  ;;  %2335 = vmatpush1.msra.mxu0 %v2303_v30  ;;  %v2284_v0 = vld [vmem:[#allocation3 + $0x220] sm:$0xff]  ;;  %v2274_v2 = vld [vmem:[#allocation3 + $0x1d0] sm:$0xff] }
 0x934   :  { %v2106_v4 = vmul.f32 %v2102_v3, %v2069_v38  ;;  %5101 = vmatpush3.msra.mxu1 %v2311_v27  ;;  %v2276_v1 = vld [vmem:[#allocation3 + $0x1e0] sm:$0xff]  ;;  %v2281_v3 = vld [vmem:[#allocation3 + $0x208] sm:$0xff] }
 0x935   :  { %5102 = vmatprep.subr.mxu1 %v2308_v29 }
 0x936   :  { %2215 = vmatprep.mubr.f32.mxu1 %v2106_v4  ;;  %5103 = vmatpush3.msra.mxu1 %v2308_v29  ;;  %v2273_v4 = vld [vmem:[#allocation3 + $0x1c8] sm:$0xff]  ;;  %v4644_v29 = vld [vmem:[%s6445_s16] ss:$0 sm:$0xff] }
 0x937   :  { %2216 = vmatmul.mubr.f32.gmra.mxu1 %v2105_v5  ;;  %5104 = vmatprep.subr.mxu1 %v2305_v42  ;;  %v2271_v5 = vld [vmem:[#allocation3 + $0x1b8] sm:$0xff] }
 0x938   :  { %5105 = vmatpush3.msra.mxu1 %v2305_v42 }
 0x939   :  { %5106 = vmatprep.subr.mxu1 %v2302_v47 }
 0x93a   :  { %5107 = vmatpush3.msra.mxu1 %v2302_v47 }
 0x93b   :  { %5108 = vmatprep.subr.mxu1 %v2299_v50 }
 0x93c   :  { %5109 = vmatpush3.msra.mxu1 %v2299_v50 }
 0x93d   :  { %5110 = vmatprep.subr.mxu1 %v2296_v52 }
 0x93e   :  { %5111 = vmatpush3.msra.mxu1 %v2296_v52 }
 0x93f   :  { %5112 = vmatprep.subr.mxu1 %v2293_v13 }
 0x940   :  { %5113 = vmatpush3.msra.mxu1 %v2293_v13 }
 0x941   :  { %5114 = vmatprep.subr.mxu1 %v2290_v57 }
 0x942   :  { %5115 = vmatpush3.msra.mxu1 %v2290_v57 }
 0x943   :  { %5116 = vmatprep.subr.mxu1 %v2287_v60 }
 0x944   :  { %5117 = vmatpush3.msra.mxu1 %v2287_v60 }
 0x945   :  { %5118 = vmatprep.subr.mxu1 %v2284_v0 }
 0x946   :  { %5119 = vmatpush3.msra.mxu1 %v2284_v0 }
 0x947   :  { %5120 = vmatprep.subr.mxu1 %v2281_v3 }
 0x948   :  { %5121 = vmatpush3.msra.mxu1 %v2281_v3 }
 0x9f3   :  { %v4787_v6 = vpop.f32.mrf.mxu1 }
 0x9f5   :  { %v4788_v34 = vpop.f32.mrf.mxu1 }
 0x9f6   :  { %v4789_v8 = vadd.f32 %v4788_v34, %v4787_v6  ;;  %v2278_v6 = vld [vmem:[#allocation3 + $0x1f0] sm:$0xff]  ;;  %v2268_v34 = vld [vmem:[#allocation3 + $0x1a0] sm:$0xff] }
 0x9f7   :  { %v4790_v10 = vpop.f32.mrf.mxu1  ;;  %5122 = vmatprep.subr.mxu1 %v2278_v6 }
 0x9f8   :  { %v2213_v11 = vadd.f32 %v4789_v8, %v4643_v7  ;;  %v2275_v8 = vld [vmem:[#allocation3 + $0x1d8] sm:$0xff]  ;;  %5123 = vmatpush3.msra.mxu1 %v2278_v6 }
 0x9f9   :  { %v4791_v12 = vpop.f32.mrf.mxu1  ;;  %5124 = vmatprep.subr.mxu1 %v2275_v8 }
 0x9fa   :  { %v4792_v14 = vadd.f32 %v4791_v12, %v4790_v10  ;;  %v2221_v15 = vadd.f32 %v2213_v11, %v6038_v43  ;;  %v2301_v43 = vld [vmem:[#allocation3 + $0x2a8] sm:$0xff]  ;;  %v2267_v10 = vld [vmem:[#allocation3 + $0x198] sm:$0xff]  ;;  %v2272_v12 = vld [vmem:[#allocation3 + $0x1c0] sm:$0xff]  ;;  %5125 = vmatpush3.msra.mxu1 %v2275_v8 }
 0x9fb   :  { %2336 = vmatprep.subr.mxu0 %v2301_v43  ;;  %v2265_v11 = vld [vmem:[#allocation3 + $0x188] sm:$0xff]  ;;  %5126 = vmatprep.subr.mxu1 %v2272_v12  ;;  %v4645_v43 = vld [vmem:[%s6446_s17] ss:$0 sm:$0xff] }
 0x9fc   :  { %v2218_v17 = vadd.f32 %v4792_v14, %v4643_v7  ;;  %2225 = vadd.xlane.f32.xlu0 %v2221_v15  ;;  %2337 = vmatpush1.msra.mxu0 %v2300_v31  ;;  %v2270_v7 = vld [vmem:[#allocation3 + $0x1b0] sm:$0xff]  ;;  %v2264_v14 = vld [vmem:[#allocation3 + $0x180] sm:$0xff] }
 0x9fd   :  { %2338 = vmatprep.subr.mxu0 %v2298_v41  ;;  %5127 = vmatpush3.msra.mxu1 %v2272_v12 }
 0x9fe   :  { %v2222_v20 = vadd.f32 %v2218_v17, %v6043_v46  ;;  %2339 = vmatpush1.msra.mxu0 %v2297_v44  ;;  %v2266_v17 = vld [vmem:[#allocation3 + $0x190] sm:$0xff] }
 0x9ff   :  { %2340 = vmatprep.subr.mxu0 %v2295_v45 }
 0xa00   :  { %2227 = vadd.xlane.f32.xlu0 %v2222_v20  ;;  %2341 = vmatpush1.msra.mxu0 %v2294_v48 }
 0xa01   :  { %2342 = vmatprep.subr.mxu0 %v2292_v49 }
 0xa02   :  { %2343 = vmatpush1.msra.mxu0 %v2291_v51 }
 0xa03   :  { %2344 = vmatprep.subr.mxu0 %v2289_v32 }
 0xa04   :  { %2345 = vmatpush1.msra.mxu0 %v2288_v54 }
 0xa05   :  { %2346 = vmatprep.subr.mxu0 %v2286_v55 }
 0xa06   :  { %2347 = vmatpush1.msra.mxu0 %v2285_v56 }
 0xa07   :  { %2348 = vmatprep.subr.mxu0 %v2283_v16 }
 0xa08   :  { %2349 = vmatpush1.msra.mxu0 %v2282_v58 }
 0xa09   :  { %2350 = vmatprep.subr.mxu0 %v2280_v59 }
 0xa0a   :  { %2351 = vmatpush1.msra.mxu0 %v2279_v61 }
 0xa0b   :  { %2352 = vmatprep.subr.mxu0 %v2277_v63 }
 0xa0c   :  { %2353 = vmatpush1.msra.mxu0 %v2276_v1 }
 0xa0d   :  { %2354 = vmatprep.subr.mxu0 %v2274_v2 }
 0xa0e   :  { %2355 = vmatpush1.msra.mxu0 %v2273_v4 }
 0xa0f   :  { %2356 = vmatprep.subr.mxu0 %v2271_v5 }
 0xa10   :  { %2357 = vmatpush1.msra.mxu0 %v2270_v7 }
 0xa11   :  { %2358 = vmatprep.subr.mxu0 %v2268_v34 }
 0xa12   :  { %2359 = vmatpush1.msra.mxu0 %v2267_v10 }
 0xa13   :  { %2360 = vmatprep.subr.mxu0 %v2265_v11 }
 0xa14   :  { %2361 = vmatpush1.msra.mxu0 %v2264_v14 }
 0xa15   :  { %5135 = vmatprep.subr.mxu0 %v5637_v62 }
 0xa85   :  { %v2226_v46 = vpop.xlane.xlu0 %2225 }
 0xa86   :  { %v2229_v33 = vmul.f32 0.0078125, %v2226_v46 }
 0xa88   :  { %v6057_v35 = vsub.f32 %v2221_v15, %v2229_v33  ;;  %v2269_v15 = vld [vmem:[#allocation3 + $0x1a8] sm:$0xff] }
 0xa89   :  { %v2228_v36 = vpop.xlane.xlu0 %2227  ;;  %5128 = vmatprep.subr.mxu1 %v2269_v15 }
 0xa8a   :  { %v2230_v37 = vmul.f32 0.0078125, %v2228_v36  ;;  %v2233_v38 = vmul.f32 %v6057_v35, %v6057_v35  ;;  %5129 = vmatpush3.msra.mxu1 %v2269_v15 }
 0xa8b   :  { %5130 = vmatprep.subr.mxu1 %v2266_v17 }
 0xa8c   :  { %v6061_v39 = vsub.f32 %v2222_v20, %v2230_v37  ;;  %2235 = vadd.xlane.f32.xlu1 %v2233_v38  ;;  %5131 = vmatpush3.msra.mxu1 %v2266_v17 }
 0xa8d   :  { %5170 = vmatprep.subr.mxu1 %v5637_v62 }
 0xa8e   :  { %v2234_v40 = vmul.f32 %v6061_v39, %v6061_v39 }
 0xa90   :  { %2237 = vadd.xlane.f32.xlu1 %v2234_v40 }
 0xb15   :  { %v2236_v20 = vpop.xlane.xlu1 %2235 }
 0xb16   :  { %v2239_v22 = vmul.f32 0.0078125, %v2236_v20 }
 0xb18   :  { %v2241_v24 = vadd.f32 1e-12, %v2239_v22 }
 0xb19   :  { %v2238_v25 = vpop.xlane.xlu1 %2237 }
 0xb1a   :  { %5421 = vrsqrt.f32 %v2241_v24  ;;  %v2240_v26 = vmul.f32 0.0078125, %v2238_v25 }
 0xb1c   :  { %v2242_v27 = vadd.f32 1e-12, %v2240_v26 }
 0xb1e   :  { %5423 = vrsqrt.f32 %v2242_v27 }
 0xb27   :  { %v5422_v28 = vpop.eup %5421 }
 0xb28   :  { %v2245_v30 = vmul.f32 %v5422_v28, %v6057_v35  ;;  %v4646_v35 = vld [vmem:[%s6475_s20 + $0x3] sm:$0x7]  ;;  %s5642_s20 = smov [#allocation14]  }
 0xb29   :  { %v2326_v41 = vrot.slane %v4646_v35, %v278_v23  ;;  %v2318_v42 = vrot.slane %v4646_v35, %v5845_v19 }
 0xb2a   :  { %v2253_v31 = vmul.f32 %v4644_v29, %v2245_v30 }
 0xb2b   :  { %v5424_v46 = vpop.eup %5423 }
 0xb2c   :  { %v6074_v33 = vadd.f32 %v4645_v43, %v2253_v31  ;;  %v2246_v36 = vmul.f32 %v5424_v46, %v6061_v39  ;;  %v6092_v39 = vrot.slane %v4646_v35, %v5851_v21 }
 0xb2e   :  { %2395 = vmatmul.mubr.f32.vlgmr.msra.gmra.mxu0 %v6074_v33  ;;  %5132 = vmatprep.mubr.f32.mxu1 %v6074_v33  ;;  %v2254_v37 = vmul.f32 %v4644_v29, %v2246_v36 }
 0xb2f   :  { %2400 = vmatprep.mubr.f32.mxu0 %v5637_v62 }
 0xb30   :  { %v6080_v38 = vadd.f32 %v4645_v43, %v2254_v37 }
 0xb32   :  { %2401 = vmatmul.mubr.f32.gmra.mxu0 %v6080_v38  ;;  %5133 = vmatmul.mubr.f32.vlgmr.msra.gmra.mxu1 %v6080_v38 }
 0xb33   :  { %5137 = vmatprep.mubr.msk.f32.mxu0 %vm5638_vm0, %v5637_v62  ;;  %5172 = vmatprep.mubr.msk.f32.mxu1 %vm5638_vm0, %v5637_v62 }
 0xbee   :  { %v2396_v40 = vpop.f32.mrf.mxu0 }
 0xbef   :  { %v6106_v51 = vadd.f32 %v2396_v40, %v2318_v42 }
 0xbf0   :  { %v2398_v44 = vpop.f32.mrf.mxu0 }
 0xbf1   :  { %v6098_v45 = vadd.f32 %v2398_v44, %v6092_v39 }
 0xbf2   :  { %v2402_v47 = vpop.f32.mrf.mxu0  ;;  %v5134_v48 = vpop.f32.mrf.mxu1 }
 0xbf3   :  { %v6100_v49 = vadd.f32 %v2402_v47, %v2318_v42  ;;  %v6102_v50 = vadd.f32 %v5134_v48, %v2326_v41  ;;  %5136 = vmatpush3.xpose.msk.msra.mxu0 %vm435_vm1, %v6098_v45 }
 0xbf4   :  { %v2473_v32 = vpop.f32.mrf.mxu1  ;;  %5140 = vmatprep.subr.mxu0 %v5637_v62  ;;  %v6117_v23 = vpop.f32.mrf.mxu0 }
 0xbf5   :  { %v6109_v18 = vadd.f32 %v2473_v32, %v2326_v41  ;;  %v2405_v42 = vadd.f32 %v6117_v23, %v6092_v39 }
 0xbf6   :  { %5138 = vmatmul.mubr.msk.f32.vlgmr.msra.gmra.mxu0 %vm435_vm1, %v6106_v51 }
 0xbf7   :  { %5141 = vmatpush3.msra.mxu0 %v6109_v18  ;;  %5142 = vmatprep.mubr.msk.f32.mxu0 %vm5638_vm0, %v5637_v62 }
 0xbf8   :  { %5145 = vmatprep.subr.mxu0 %v5637_v62 }
 0xcb6   :  { %v2554_v52 = vpop.f32.mrf.mxu0 }
 0xcb7   :  { %v2558_v54 = vmul.f32 0.17677669, %v2554_v52 }
 0xcb8   :  { %v5139_v55 = vpop.f32.mrf.mxu0 }
 0xcb9   :  { %v2559_v13 = vadd.f32 %v2558_v54, %v5917_v53 }
 0xcbb   :  { %v2560_v56 = vsel %vm518_vm2, %v2559_v13, -inf }
 0xcbc   :  { %2561 = vmax.xlane.f32.xlu0 %v2560_v56 }
 0xcd2   :  { %2647 = vrot.lane.b32.xlu0 %v6098_v45, %s5639_s28 }
 0xd45   :  { %v2562_v16 = vpop.xlane.xlu0 %2561 }
 0xd46   :  { %v2563_v57 = vsub.f32 %v2559_v13, %v2562_v16 }
 0xd48   :  { %v2564_v58 = vmul.f32 1.442695, %v2563_v57 }
 0xd49   :  { %v2648_v1 = vpop.permute.xlu0 %2647 }
 0xd4a   :  { %5425 = vpow2.f32 %v2564_v58 }
 0xd57   :  { %v5426_v59 = vpop.eup %5425 }
 0xd58   :  { %v2566_v60 = vsel %vm518_vm2, %v5426_v59, 0.0 }
 0xd59   :  { %2567 = vadd.xlane.f32.xlu1 %v2566_v60 }
 0xd6a   :  { %2645 = vrot.lane.b32.xlu1 %v6106_v51, %s5639_s28 }
 0xde2   :  { %v2568_v61 = vpop.xlane.xlu1 %2567 }
 0xde3   :  { %5427 = vrcp.f32 %v2568_v61 }
 0xde6   :  { %v2646_v2 = vpop.permute.xlu1 %2645 }
 0xdf0   :  { %v5428_v63 = vpop.eup %5427 }
 0xdf1   :  { %v2570_v0 = vmul.f32 %v5428_v63, %v5426_v59 }
 0xdf3   :  { %5143 = vmatmul.mubr.msk.f32.vlgmr.msra.gmra.mxu0 %vm518_vm2, %v2570_v0 }
 0xdf4   :  { %5146 = vmatpush3.xpose.msk.msra.mxu0 %vm435_vm1, %v2648_v1  ;;  %5147 = vmatprep.mubr.msk.f32.mxu0 %vm5638_vm0, %v5637_v62 }
 0xdf5   :  { %5150 = vmatprep.subr.mxu0 %v5637_v62 }
 0xdf7   :  { %5148 = vmatmul.mubr.msk.f32.vlgmr.msra.gmra.mxu0 %vm435_vm1, %v2646_v2 }
 0xdf8   :  { %5152 = vmatprep.mubr.msk.f32.mxu0 %vm5638_vm0, %v5637_v62 }
 0xeb3   :  { %v2640_v3 = vpop.f32.mrf.mxu0 }
 0xeb4   :  { %2644 = vst.msk [vmem:[#allocation2] sm:$0xff] %vm435_vm1, %v2640_v3 }
 0xeb5   :  { %v5144_v4 = vpop.f32.mrf.mxu0 }
 0xeb7   :  { %v2719_v5 = vpop.f32.mrf.mxu0 }
 0xeb8   :  { %v2723_v6 = vmul.f32 0.17677669, %v2719_v5 }
 0xeb9   :  { %v5149_v7 = vpop.f32.mrf.mxu0 }
 0xeba   :  { %v2724_v34 = vadd.f32 %v2723_v6, %v5917_v53 }
 0xebc   :  { %v2725_v8 = vsel %vm518_vm2, %v2724_v34, -inf }
 0xebd   :  { %2726 = vmax.xlane.f32.xlu1 %v2725_v8 }
 0xece   :  { %2820 = vrot.lane.b32.xlu1 %v6098_v45, %s5640_s8 }
 0xed2   :  { %2818 = vrot.lane.b32.xlu1 %v6106_v51, %s5640_s8 }
 0xf46   :  { %v2727_v10 = vpop.xlane.xlu1 %2726 }
 0xf47   :  { %v2728_v11 = vsub.f32 %v2724_v34, %v2727_v10 }
 0xf49   :  { %v2729_v12 = vmul.f32 1.442695, %v2728_v11 }
 0xf4a   :  { %v2821_v24 = vpop.permute.xlu1 %2820 }
 0xf4b   :  { %5429 = vpow2.f32 %v2729_v12 }
 0xf4e   :  { %v2819_v26 = vpop.permute.xlu1 %2818 }
 0xf58   :  { %v5430_v14 = vpop.eup %5429 }
 0xf59   :  { %v2731_v15 = vsel %vm518_vm2, %v5430_v14, 0.0 }
 0xf5a   :  { %2732 = vadd.xlane.f32.xlu0 %v2731_v15 }
 0xf70   :  { %2737 = vrot.lane.b32.xlu0 %v6109_v18, %s5639_s28 }
 0xfe3   :  { %v2733_v17 = vpop.xlane.xlu0 %2732 }
 0xfe4   :  { %5431 = vrcp.f32 %v2733_v17 }
 0xfe7   :  { %v2738_v20 = vpop.permute.xlu0 %2737 }
 0xfe8   :  { %5151 = vmatpush3.msra.mxu0 %v2738_v20 }
 0xfe9   :  { %5155 = vmatprep.subr.mxu0 %v5637_v62 }
 0xff1   :  { %v5432_v22 = vpop.eup %5431 }
 0xff2   :  { %v2735_v25 = vmul.f32 %v5432_v22, %v5430_v14 }
 0xff4   :  { %5153 = vmatmul.mubr.msk.f32.vlgmr.msra.gmra.mxu0 %vm518_vm2, %v2735_v25 }
 0xff5   :  { %5156 = vmatpush3.xpose.msk.msra.mxu0 %vm435_vm1, %v2821_v24  ;;  %5157 = vmatprep.mubr.msk.f32.mxu0 %vm5638_vm0, %v5637_v62 }
 0xff6   :  { %5160 = vmatprep.subr.mxu0 %v5637_v62 }
 0xff8   :  { %5158 = vmatmul.mubr.msk.f32.vlgmr.msra.gmra.mxu0 %vm435_vm1, %v2819_v26 }
 0xff9   :  { %5162 = vmatprep.mubr.msk.f32.mxu0 %vm5638_vm0, %v5637_v62 }
0x10b4   :  { %v6153_v27 = vpop.f32.mrf.mxu0 }
0x10b6   :  { %v5154_v28 = vpop.f32.mrf.mxu0 }
0x10b8   :  { %v2892_v29 = vpop.f32.mrf.mxu0 }
0x10b9   :  { %v2896_v30 = vmul.f32 0.17677669, %v2892_v29 }
0x10ba   :  { %v5159_v43 = vpop.f32.mrf.mxu0 }
0x10bb   :  { %v2897_v31 = vadd.f32 %v2896_v30, %v5917_v53 }
0x10bd   :  { %v2898_v46 = vsel %vm518_vm2, %v2897_v31, -inf }
0x10be   :  { %2899 = vmax.xlane.f32.xlu1 %v2898_v46 }
0x10cf   :  { %2992 = vrot.lane.b32.xlu1 %v6098_v45, %s5641_s14 }
0x10d3   :  { %2990 = vrot.lane.b32.xlu1 %v6106_v51, %s5641_s14 }
0x10d7   :  { %3325 = vrot.lane.b32.xlu1 %v6100_v49, %s5639_s28 }
0x10db   :  { %3498 = vrot.lane.b32.xlu1 %v6100_v49, %s5640_s8 }
0x10df   :  { %3670 = vrot.lane.b32.xlu1 %v6100_v49, %s5641_s14 }
0x1147   :  { %v2900_v36 = vpop.xlane.xlu1 %2899 }
0x1148   :  { %v2901_v37 = vsub.f32 %v2897_v31, %v2900_v36 }
0x114a   :  { %v2902_v35 = vmul.f32 1.442695, %v2901_v37 }
0x114b   :  { %v2993_v47 = vpop.permute.xlu1 %2992 }
0x114c   :  { %5433 = vpow2.f32 %v2902_v35 }
0x114f   :  { %v2991_v32 = vpop.permute.xlu1 %2990 }
0x1153   :  { %v3326_v23 = vpop.permute.xlu1 %3325 }
0x1157   :  { %v3499_v54 = vpop.permute.xlu1 %3498 }
0x1159   :  { %v5434_v40 = vpop.eup %5433 }
0x115a   :  { %v2904_v41 = vsel %vm518_vm2, %v5434_v40, 0.0 }
0x115b   :  { %2905 = vadd.xlane.f32.xlu0 %v2904_v41 }
0x1171   :  { %2909 = vrot.lane.b32.xlu0 %v6109_v18, %s5640_s8 }
0x1175   :  { %3327 = vrot.lane.b32.xlu0 %v2405_v42, %s5639_s28 }
0x1179   :  { %3500 = vrot.lane.b32.xlu0 %v2405_v42, %s5640_s8 }
0x117d   :  { %3672 = vrot.lane.b32.xlu0 %v2405_v42, %s5641_s14 }
0x11e4   :  { %v2906_v44 = vpop.xlane.xlu0 %2905 }
0x11e5   :  { %5435 = vrcp.f32 %v2906_v44 }
0x11e8   :  { %v2910_v45 = vpop.permute.xlu0 %2909 }
0x11e9   :  { %5161 = vmatpush3.msra.mxu0 %v2910_v45 }
0x11ea   :  { %5165 = vmatprep.subr.mxu0 %v5637_v62 }
0x11ec   :  { %v3328_v39 = vpop.permute.xlu0 %3327 }
0x11f0   :  { %v3501_v52 = vpop.permute.xlu0 %3500 }
0x11f2   :  { %v5436_v48 = vpop.eup %5435 }
0x11f3   :  { %v2908_v51 = vmul.f32 %v5436_v48, %v5434_v40 }
0x11f4   :  { %v3673_v55 = vpop.permute.xlu0 %3672 }
0x11f5   :  { %5163 = vmatmul.mubr.msk.f32.vlgmr.msra.gmra.mxu0 %vm518_vm2, %v2908_v51 }
0x11f6   :  { %5166 = vmatpush3.xpose.msk.msra.mxu0 %vm435_vm1, %v2993_v47  ;;  %5167 = vmatprep.mubr.msk.f32.mxu0 %vm5638_vm0, %v5637_v62 }
0x11f7   :  { %5175 = vmatprep.subr.mxu0 %v5637_v62 }
0x11f9   :  { %5168 = vmatmul.mubr.msk.f32.vlgmr.msra.gmra.mxu0 %vm435_vm1, %v2991_v32 }
0x11fa   :  { %5176 = vmatpush3.xpose.msk.msra.mxu0 %vm435_vm1, %v2405_v42  ;;  %5177 = vmatprep.mubr.msk.f32.mxu0 %vm5638_vm0, %v5637_v62 }
0x11fb   :  { %5185 = vmatprep.subr.mxu0 %v5637_v62 }
0x11fd   :  { %5178 = vmatmul.mubr.msk.f32.vlgmr.msra.gmra.mxu0 %vm435_vm1, %v6100_v49  ;;  %v3671_v49 = vpop.permute.xlu1 %3670 }
0x11fe   :  { %5186 = vmatpush3.xpose.msk.msra.mxu0 %vm435_vm1, %v3328_v39  ;;  %5187 = vmatprep.mubr.msk.f32.mxu0 %vm5638_vm0, %v5637_v62 }
0x11ff   :  { %5195 = vmatprep.subr.mxu0 %v5637_v62 }
0x1201   :  { %5188 = vmatmul.mubr.msk.f32.vlgmr.msra.gmra.mxu0 %vm435_vm1, %v3326_v23 }
0x1202   :  { %5196 = vmatpush3.xpose.msk.msra.mxu0 %vm435_vm1, %v3501_v52  ;;  %5197 = vmatprep.mubr.msk.f32.mxu0 %vm5638_vm0, %v5637_v62 }
0x1203   :  { %5205 = vmatprep.subr.mxu0 %v5637_v62 }
0x1205   :  { %5198 = vmatmul.mubr.msk.f32.vlgmr.msra.gmra.mxu0 %vm435_vm1, %v3499_v54 }
0x1206   :  { %5206 = vmatpush3.xpose.msk.msra.mxu0 %vm435_vm1, %v3673_v55  ;;  %5207 = vmatprep.mubr.msk.f32.mxu0 %vm5638_vm0, %v5637_v62 }
0x1209   :  { %5208 = vmatmul.mubr.msk.f32.vlgmr.msra.gmra.mxu0 %vm435_vm1, %v3671_v49 }
0x12b5   :  { %v6202_v13 = vpop.f32.mrf.mxu0 }
0x12b7   :  { %v5164_v56 = vpop.f32.mrf.mxu0 }
0x12b9   :  { %v3064_v16 = vpop.f32.mrf.mxu0 }
0x12ba   :  { %v3068_v57 = vmul.f32 0.17677669, %v3064_v16 }
0x12bb   :  { %v5169_v58 = vpop.f32.mrf.mxu0 }
0x12bc   :  { %v3069_v59 = vadd.f32 %v3068_v57, %v5917_v53 }
0x12bd   :  { %v3234_v60 = vpop.f32.mrf.mxu0 }
0x12be   :  { %v3238_v61 = vmul.f32 0.17677669, %v3234_v60  ;;  %v3070_v63 = vsel %vm518_vm2, %v3069_v59, -inf }
0x12bf   :  { %3071 = vmax.xlane.f32.xlu0 %v3070_v63  ;;  %v5179_v0 = vpop.f32.mrf.mxu0 }
0x12c0   :  { %v3239_v1 = vadd.f32 %v3238_v61, %v5926_v9 }
0x12c1   :  { %v3399_v2 = vpop.f32.mrf.mxu0 }
0x12c2   :  { %v3403_v3 = vmul.f32 0.17677669, %v3399_v2  ;;  %v3240_v4 = vsel %vm518_vm2, %v3239_v1, -inf }
0x12c3   :  { %3241 = vmax.xlane.f32.xlu1 %v3240_v4  ;;  %v5189_v5 = vpop.f32.mrf.mxu0 }
0x12c4   :  { %v3404_v6 = vadd.f32 %v3403_v3, %v5926_v9 }
0x12c5   :  { %v3572_v7 = vpop.f32.mrf.mxu0 }
0x12c6   :  { %v3576_v34 = vmul.f32 0.17677669, %v3572_v7  ;;  %v3405_v53 = vsel %vm518_vm2, %v3404_v6, -inf  ;;  %v3859_v7 = vld [vmem:[#allocation6 + $0xf0] sm:$0xff] }
0x12c7   :  { %3406 = vmax.xlane.f32.xlu0 %v3405_v53  ;;  %v5199_v8 = vpop.f32.mrf.mxu0  ;;  %v3858_v53 = vld [vmem:[#allocation6 + $0xe8] sm:$0xff] }
0x12c8   :  { %v3577_v10 = vadd.f32 %v3576_v34, %v5926_v9 }
0x12c9   :  { %v3744_v11 = vpop.f32.mrf.mxu0 }
0x12ca   :  { %v3748_v12 = vmul.f32 0.17677669, %v3744_v11  ;;  %v3578_v14 = vsel %vm518_vm2, %v3577_v10, -inf }
0x12cb   :  { %3579 = vmax.xlane.f32.xlu0 %v3578_v14  ;;  %v5209_v15 = vpop.f32.mrf.mxu0 }
0x12cc   :  { %v3749_v17 = vadd.f32 %v3748_v12, %v5926_v9  ;;  %v3856_v12 = vld [vmem:[#allocation6 + $0xd8] sm:$0xff]  ;;  %v3855_v15 = vld [vmem:[#allocation6 + $0xd0] sm:$0xff] }
0x12ce   :  { %v3750_v20 = vsel %vm518_vm2, %v3749_v17, -inf }
0x12cf   :  { %3751 = vmax.xlane.f32.xlu0 %v3750_v20  ;;  %v3854_v20 = vld [vmem:[#allocation6 + $0xc8] sm:$0xff] }
0x1348   :  { %v3072_v22 = vpop.xlane.xlu0 %3071 }
0x1349   :  { %v3073_v24 = vsub.f32 %v3069_v59, %v3072_v22 }
0x134b   :  { %v3074_v25 = vmul.f32 1.442695, %v3073_v24  ;;  %v3853_v24 = vld [vmem:[#allocation6 + $0xc0] sm:$0xff] }
0x134c   :  { %v3242_v26 = vpop.xlane.xlu1 %3241 }
0x134d   :  { %5437 = vpow2.f32 %v3074_v25  ;;  %v3243_v28 = vsub.f32 %v3239_v1, %v3242_v26  ;;  %v3852_v26 = vld [vmem:[#allocation6 + $0xb8] sm:$0xff] }
0x134f   :  { %v3244_v29 = vmul.f32 1.442695, %v3243_v28  ;;  %v3851_v28 = vld [vmem:[#allocation6 + $0xb0] sm:$0xff] }
0x1350   :  { %v3407_v30 = vpop.xlane.xlu0 %3406 }
0x1351   :  { %5439 = vpow2.f32 %v3244_v29  ;;  %v3408_v43 = vsub.f32 %v3404_v6, %v3407_v30  ;;  %v3860_v6 = vld [vmem:[#allocation6 + $0xf8] sm:$0xff]  ;;  %v3850_v29 = vld [vmem:[#allocation6 + $0xa8] sm:$0xff]  ;;  %v3849_v30 = vld [vmem:[#allocation6 + $0xa0] sm:$0xff] }
0x1352   :  { %5215 = vmatprep.subr.mxu0 %v3860_v6 }
0x1353   :  { %v3409_v31 = vmul.f32 1.442695, %v3408_v43  ;;  %5216 = vmatpush3.msra.mxu0 %v3860_v6  ;;  %v3848_v43 = vld [vmem:[#allocation6 + $0x98] sm:$0xff]  ;;  %v4005_v6 = vld [vmem:[#allocation8 + $0x180] sm:$0xff] }
0x1354   :  { %v3580_v46 = vpop.xlane.xlu0 %3579  ;;  %5217 = vmatprep.subr.mxu0 %v3859_v7 }
0x1355   :  { %5441 = vpow2.f32 %v3409_v31  ;;  %v3581_v36 = vsub.f32 %v3577_v10, %v3580_v46  ;;  %5218 = vmatpush3.msra.mxu0 %v3859_v7  ;;  %v3857_v10 = vld [vmem:[#allocation6 + $0xe0] sm:$0xff]  ;;  %v3847_v31 = vld [vmem:[#allocation6 + $0x90] sm:$0xff]  ;;  %v3846_v46 = vld [vmem:[#allocation6 + $0x88] sm:$0xff] }
0x1356   :  { %5219 = vmatprep.subr.mxu0 %v3858_v53  ;;  %v4004_v7 = vld [vmem:[#allocation8 + $0x178] sm:$0xff] }
0x1357   :  { %v3582_v37 = vmul.f32 1.442695, %v3581_v36  ;;  %5220 = vmatpush3.msra.mxu0 %v3858_v53  ;;  %v3845_v36 = vld [vmem:[#allocation6 + $0x80] sm:$0xff]  ;;  %v4002_v53 = vld [vmem:[#allocation8 + $0x168] sm:$0xff] }
0x1358   :  { %v3752_v48 = vpop.xlane.xlu0 %3751  ;;  %5221 = vmatprep.subr.mxu0 %v3857_v10 }
0x1359   :  { %5443 = vpow2.f32 %v3582_v37  ;;  %v3753_v51 = vsub.f32 %v3749_v17, %v3752_v48  ;;  %5222 = vmatpush3.msra.mxu0 %v3857_v10  ;;  %v4000_v10 = vld [vmem:[#allocation8 + $0x158] sm:$0xff] }
0x135a   :  { %v5438_v9 = vpop.eup %5437  ;;  %5223 = vmatprep.subr.mxu0 %v3856_v12 }
0x135b   :  { %v3076_v35 = vsel %vm518_vm2, %v5438_v9, 0.0  ;;  %v3754_v32 = vmul.f32 1.442695, %v3753_v51  ;;  %5224 = vmatpush3.msra.mxu0 %v3856_v12  ;;  %v3998_v12 = vld [vmem:[#allocation8 + $0x148] sm:$0xff] }
0x135c   :  { %3077 = vadd.xlane.f32.xlu1 %v3076_v35  ;;  %5225 = vmatprep.subr.mxu0 %v3855_v15 }
0x135d   :  { %5445 = vpow2.f32 %v3754_v32  ;;  %5226 = vmatpush3.msra.mxu0 %v3855_v15  ;;  %v3996_v15 = vld [vmem:[#allocation8 + $0x138] sm:$0xff] }
0x135e   :  { %v5440_v40 = vpop.eup %5439  ;;  %5227 = vmatprep.subr.mxu0 %v3854_v20 }
0x135f   :  { %v3246_v41 = vsel %vm518_vm2, %v5440_v40, 0.0  ;;  %5228 = vmatpush3.msra.mxu0 %v3854_v20  ;;  %v3994_v20 = vld [vmem:[#allocation8 + $0x128] sm:$0xff] }
0x1360   :  { %3247 = vadd.xlane.f32.xlu0 %v3246_v41  ;;  %5229 = vmatprep.subr.mxu0 %v3853_v24 }
0x1361   :  { %5230 = vmatpush3.msra.mxu0 %v3853_v24  ;;  %v3992_v24 = vld [vmem:[#allocation8 + $0x118] sm:$0xff] }
0x1362   :  { %v5442_v42 = vpop.eup %5441  ;;  %5231 = vmatprep.subr.mxu0 %v3852_v26 }
0x1363   :  { %v3411_v44 = vsel %vm518_vm2, %v5442_v42, 0.0  ;;  %5232 = vmatpush3.msra.mxu0 %v3852_v26  ;;  %v3990_v26 = vld [vmem:[#allocation8 + $0x108] sm:$0xff] }
0x1364   :  { %3412 = vadd.xlane.f32.xlu1 %v3411_v44  ;;  %5233 = vmatprep.subr.mxu0 %v3851_v28 }
0x1365   :  { %5234 = vmatpush3.msra.mxu0 %v3851_v28  ;;  %v3989_v28 = vld [vmem:[#allocation8 + $0x100] sm:$0xff] }
0x1366   :  { %v5444_v45 = vpop.eup %5443  ;;  %5235 = vmatprep.subr.mxu0 %v3850_v29 }
0x1367   :  { %v3584_v47 = vsel %vm518_vm2, %v5444_v45, 0.0  ;;  %5236 = vmatpush3.msra.mxu0 %v3850_v29 }
0x1368   :  { %3585 = vadd.xlane.f32.xlu0 %v3584_v47  ;;  %5237 = vmatprep.subr.mxu0 %v3849_v30  ;;  %v4672_v47 = vld [vmem:[%s6438_s9 + $0x1] ss:$0 sm:$0xff] }
0x1369   :  { %5238 = vmatpush3.msra.mxu0 %v3849_v30 }
0x136a   :  { %v5446_v39 = vpop.eup %5445  ;;  %5239 = vmatprep.subr.mxu0 %v3848_v43 }
0x136b   :  { %v3756_v23 = vsel %vm518_vm2, %v5446_v39, 0.0  ;;  %5240 = vmatpush3.msra.mxu0 %v3848_v43 }
0x136c   :  { %5241 = vmatprep.subr.mxu0 %v3847_v31 }
0x136d   :  { %5242 = vmatpush3.msra.mxu0 %v3847_v31 }
0x136e   :  { %5243 = vmatprep.subr.mxu0 %v3846_v46 }
0x136f   :  { %5244 = vmatpush3.msra.mxu0 %v3846_v46 }
0x1370   :  { %5245 = vmatprep.subr.mxu0 %v3845_v36 }
0x1371   :  { %5246 = vmatpush3.msra.mxu0 %v3845_v36 }
0x1375   :  { %3417 = vrot.lane.b32.xlu1 %v6102_v50, %s5639_s28 }
0x1379   :  { %3589 = vrot.lane.b32.xlu1 %v6102_v50, %s5640_s8 }
0x137e   :  { %3081 = vrot.lane.b32.xlu0 %v6109_v18, %s5641_s14 }
0x1382   :  { %2814 = vrot.lane.b32.xlu0 %v6153_v27, %s5641_s14 }
0x139d   :  { %3757 = vadd.xlane.f32.xlu1 %v3756_v23 }
0x13ae   :  { %3761 = vrot.lane.b32.xlu1 %v6102_v50, %s5641_s14 }
0x13b2   :  { %2986 = vrot.lane.b32.xlu1 %v6202_v13, %s5640_s8 }
0x13e5   :  { %v3078_v52 = vpop.xlane.xlu1 %3077 }
0x13e6   :  { %5447 = vrcp.f32 %v3078_v52 }
0x13e9   :  { %v3248_v18 = vpop.xlane.xlu0 %3247 }
0x13ea   :  { %5449 = vrcp.f32 %v3248_v18  ;;  %v4020_v18 = vld [vmem:[#allocation8 + $0x1f8] sm:$0xff] }
0x13ed   :  { %v3413_v54 = vpop.xlane.xlu1 %3412 }
0x13ee   :  { %5451 = vrcp.f32 %v3413_v54  ;;  %v4019_v54 = vld [vmem:[#allocation8 + $0x1f0] sm:$0xff] }
0x13f1   :  { %v3586_v27 = vpop.xlane.xlu0 %3585  ;;  %v3418_v57 = vpop.permute.xlu1 %3417 }
0x13f2   :  { %5453 = vrcp.f32 %v3586_v27  ;;  %v4018_v27 = vld [vmem:[#allocation8 + $0x1e8] sm:$0xff] }
0x13f3   :  { %v5448_v55 = vpop.eup %5447 }
0x13f4   :  { %v3080_v49 = vmul.f32 %v5448_v55, %v5438_v9  ;;  %v4017_v55 = vld [vmem:[#allocation8 + $0x1e0] sm:$0xff] }
0x13f5   :  { %v3082_v56 = vpop.permute.xlu0 %3081  ;;  %v3590_v61 = vpop.permute.xlu1 %3589 }
0x13f6   :  { %5171 = vmatpush3.msra.mxu1 %v3082_v56  ;;  %v4015_v56 = vld [vmem:[#allocation8 + $0x1d0] sm:$0xff] }
0x13f7   :  { %v5450_v16 = vpop.eup %5449  ;;  %5173 = vmatmul.mubr.msk.f32.vlgmr.msra.gmra.mxu1 %vm518_vm2, %v3080_v49  ;;  %5180 = vmatprep.subr.mxu1 %v5637_v62  ;;  %v4016_v49 = vld [vmem:[#allocation8 + $0x1d8] sm:$0xff] }
0x13f8   :  { %5181 = vmatpush3.msra.mxu1 %v6102_v50  ;;  %5182 = vmatprep.mubr.msk.f32.mxu1 %vm5638_vm0, %v5637_v62  ;;  %v3250_v13 = vmul.f32 %v5450_v16, %v5440_v40  ;;  %v4014_v16 = vld [vmem:[#allocation8 + $0x1c8] sm:$0xff] }
0x13f9   :  { %v2815_v58 = vpop.permute.xlu0 %2814  ;;  %5190 = vmatprep.subr.mxu1 %v5637_v62 }
0x13fa   :  { %2817 = vst.msk [vmem:[#allocation2] sm:$0xff] %vm776_vm3, %v2815_v58 }
0x13fb   :  { %v5452_v59 = vpop.eup %5451  ;;  %5183 = vmatmul.mubr.msk.f32.vlgmr.msra.gmra.mxu1 %vm518_vm2, %v3250_v13  ;;  %v4013_v13 = vld [vmem:[#allocation8 + $0x1c0] sm:$0xff] }
0x13fc   :  { %5191 = vmatpush3.msra.mxu1 %v3418_v57  ;;  %5192 = vmatprep.mubr.msk.f32.mxu1 %vm5638_vm0, %v5637_v62  ;;  %v3415_v60 = vmul.f32 %v5452_v59, %v5442_v42 }
0x13fd   :  { %5200 = vmatprep.subr.mxu1 %v5637_v62 }
0x13ff   :  { %v5454_v50 = vpop.eup %5453  ;;  %5193 = vmatmul.mubr.msk.f32.vlgmr.msra.gmra.mxu1 %vm518_vm2, %v3415_v60 }
0x1400   :  { %5201 = vmatpush3.msra.mxu1 %v3590_v61  ;;  %5202 = vmatprep.mubr.msk.f32.mxu1 %vm5638_vm0, %v5637_v62  ;;  %v3588_v63 = vmul.f32 %v5454_v50, %v5444_v45 }
0x1401   :  { %5210 = vmatprep.subr.mxu1 %v5637_v62 }
0x1403   :  { %5203 = vmatmul.mubr.msk.f32.vlgmr.msra.gmra.mxu1 %vm518_vm2, %v3588_v63  ;;  %v4012_v63 = vld [vmem:[#allocation8 + $0x1b8] sm:$0xff] }
0x1404   :  { %5212 = vmatprep.mubr.msk.f32.mxu1 %vm5638_vm0, %v5637_v62 }
0x1426   :  { %v3758_v0 = vpop.xlane.xlu1 %3757 }
0x1427   :  { %5455 = vrcp.f32 %v3758_v0  ;;  %v4011_v0 = vld [vmem:[#allocation8 + $0x1b0] sm:$0xff] }
0x142a   :  { %v3762_v1 = vpop.permute.xlu1 %3761 }
0x142b   :  { %5211 = vmatpush3.msra.mxu1 %v3762_v1  ;;  %v4010_v1 = vld [vmem:[#allocation8 + $0x1a8] sm:$0xff] }
0x142c   :  { %4034 = vmatprep.subr.mxu1 %v4020_v18  ;;  %v4161_v18 = vld [vmem:[#allocation9 + $0x168] sm:$0xff] }
0x142e   :  { %v2987_v2 = vpop.permute.xlu1 %2986 }
0x142f   :  { %2989 = vst.msk [vmem:[#allocation2] sm:$0xff] %vm949_vm4, %v2987_v2  ;;  %v4009_v2 = vld [vmem:[#allocation8 + $0x1a0] sm:$0xff] }
0x1434   :  { %v5456_v3 = vpop.eup %5455 }
0x1435   :  { %v3760_v4 = vmul.f32 %v5456_v3, %v5446_v39  ;;  %v4008_v3 = vld [vmem:[#allocation8 + $0x198] sm:$0xff] }
0x1437   :  { %5213 = vmatmul.mubr.msk.f32.vlgmr.msra.gmra.mxu1 %vm518_vm2, %v3760_v4  ;;  %v4007_v4 = vld [vmem:[#allocation8 + $0x190] sm:$0xff] }
0x1438   :  { %4098 = vmatprep.mubr.f32.mxu1 %v5637_v62  ;;  %4035 = vmatpush1.msra.mxu1 %v4019_v54  ;;  %v4176_v54 = vld [vmem:[#allocation9 + $0x1e0] sm:$0xff] }
0x1439   :  { %4036 = vmatprep.subr.mxu1 %v4018_v27  ;;  %v4160_v27 = vld [vmem:[#allocation9 + $0x160] sm:$0xff] }
0x143a   :  { %4037 = vmatpush1.msra.mxu1 %v4017_v55  ;;  %v4175_v55 = vld [vmem:[#allocation9 + $0x1d8] sm:$0xff] }
0x143b   :  { %4038 = vmatprep.subr.mxu1 %v4016_v49  ;;  %v4159_v49 = vld [vmem:[#allocation9 + $0x158] sm:$0xff] }
0x143c   :  { %4039 = vmatpush1.msra.mxu1 %v4015_v56  ;;  %v4174_v56 = vld [vmem:[#allocation9 + $0x1d0] sm:$0xff] }
0x143d   :  { %4040 = vmatprep.subr.mxu1 %v4014_v16  ;;  %v4158_v16 = vld [vmem:[#allocation9 + $0x150] sm:$0xff] }
0x143e   :  { %4041 = vmatpush1.msra.mxu1 %v4013_v13  ;;  %v4173_v13 = vld [vmem:[#allocation9 + $0x1c8] sm:$0xff] }
0x143f   :  { %4042 = vmatprep.subr.mxu1 %v4012_v63  ;;  %v4153_v63 = vld [vmem:[#allocation9 + $0x128] sm:$0xff] }
0x1440   :  { %4043 = vmatpush1.msra.mxu1 %v4011_v0  ;;  %v4168_v0 = vld [vmem:[#allocation9 + $0x1a0] sm:$0xff] }
0x1441   :  { %4044 = vmatprep.subr.mxu1 %v4010_v1  ;;  %v4152_v1 = vld [vmem:[#allocation9 + $0x120] sm:$0xff] }
0x1442   :  { %4045 = vmatpush1.msra.mxu1 %v4009_v2  ;;  %v4167_v2 = vld [vmem:[#allocation9 + $0x198] sm:$0xff] }
0x1443   :  { %4046 = vmatprep.subr.mxu1 %v4008_v3  ;;  %v4151_v3 = vld [vmem:[#allocation9 + $0x118] sm:$0xff] }
0x1444   :  { %4047 = vmatpush1.msra.mxu1 %v4007_v4  ;;  %v4166_v4 = vld [vmem:[#allocation9 + $0x190] sm:$0xff] }
0x14b7   :  { %v3153_v5 = vpop.f32.mrf.mxu1 }
0x14b8   :  { %3158 = vrot.lane.b32.xlu1 %v3153_v5, %s5639_s28  ;;  %v4006_v5 = vld [vmem:[#allocation8 + $0x188] sm:$0xff] }
0x14b9   :  { %v5174_v34 = vpop.f32.mrf.mxu1  ;;  %4048 = vmatprep.subr.mxu1 %v4006_v5  ;;  %v4150_v5 = vld [vmem:[#allocation9 + $0x110] sm:$0xff] }
0x14ba   :  { %4049 = vmatpush1.msra.mxu1 %v4005_v6  ;;  %v4003_v34 = vld [vmem:[#allocation8 + $0x170] sm:$0xff]  ;;  %v4165_v6 = vld [vmem:[#allocation9 + $0x188] sm:$0xff] }
0x14bb   :  { %v3320_v8 = vpop.f32.mrf.mxu1  ;;  %4050 = vmatprep.subr.mxu1 %v4004_v7  ;;  %v4149_v7 = vld [vmem:[#allocation9 + $0x108] sm:$0xff] }
0x14bc   :  { %3324 = vst.msk [vmem:[#allocation2 + $0x8] sm:$0xff] %vm435_vm1, %v3320_v8  ;;  %v4001_v8 = vld [vmem:[#allocation8 + $0x160] sm:$0xff]  ;;  %4051 = vmatpush1.msra.mxu1 %v4003_v34 }
0x14bd   :  { %v5184_v11 = vpop.f32.mrf.mxu1  ;;  %4052 = vmatprep.subr.mxu1 %v4002_v53  ;;  %v4164_v34 = vld [vmem:[#allocation9 + $0x180] sm:$0xff] }
0x14be   :  { %v3999_v11 = vld [vmem:[#allocation8 + $0x150] sm:$0xff]  ;;  %4053 = vmatpush1.msra.mxu1 %v4001_v8  ;;  %v4148_v53 = vld [vmem:[#allocation9 + $0x100] sm:$0xff] }
0x14bf   :  { %v3489_v14 = vpop.f32.mrf.mxu1  ;;  %4054 = vmatprep.subr.mxu1 %v4000_v10  ;;  %v4677_v8 = vld [vmem:[%s6442_s13 + $0x2] sm:$0x3] }
0x14c0   :  { %3494 = vrot.lane.b32.xlu0 %v3489_v14, %s5641_s14  ;;  %v3997_v14 = vld [vmem:[#allocation8 + $0x140] sm:$0xff]  ;;  %4055 = vmatpush1.msra.mxu1 %v3999_v11  ;;  %v4027_v10 = vrot.slane %v4677_v8, %v5845_v19  ;;  %v4031_v11 = vrot.slane %v4677_v8, %v5851_v21 }
0x14c1   :  { %v5194_v17 = vpop.f32.mrf.mxu1  ;;  %4056 = vmatprep.subr.mxu1 %v3998_v12 }
0x14c2   :  { %v3995_v17 = vld [vmem:[#allocation8 + $0x130] sm:$0xff]  ;;  %4057 = vmatpush1.msra.mxu1 %v3997_v14 }
0x14c3   :  { %v3661_v22 = vpop.f32.mrf.mxu1  ;;  %4058 = vmatprep.subr.mxu1 %v3996_v15 }
0x14c4   :  { %3666 = vrot.lane.b32.xlu0 %v3661_v22, %s5640_s8  ;;  %v3993_v22 = vld [vmem:[#allocation8 + $0x120] sm:$0xff]  ;;  %4059 = vmatpush1.msra.mxu1 %v3995_v17  ;;  %s4601_s8 = sshll.u32 %s5642_s20, 4  ;;  %s4602_s8 = int_to_ptr.vmem [resolvable:$true] %s4601_s8 }
0x14c5   :  { %v5204_v25 = vpop.f32.mrf.mxu1  ;;  %4060 = vmatprep.subr.mxu1 %v3994_v20  ;;  %s5595_s9 = scalar_lea.vmem %s4602_s8, 32  ;;  %p5600_p3 = scmp.lt.s32.totalorder %s4602_s8, %s4602_s8 }
0x14c6   :  { %v3991_v25 = vld [vmem:[#allocation8 + $0x110] sm:$0xff]  ;;  %4061 = vmatpush1.msra.mxu1 %v3993_v22  ;;  %p5596_p2 = scmp.ne.s32.totalorder %s4602_s8, %s5595_s9  ;;  %p5601_p4 = scmp.lt.s32.totalorder %s5595_s9, %s5595_s9 }
0x14c7   :  { %4062 = vmatprep.subr.mxu1 %v3992_v24 }
0x14c8   :  { %4063 = vmatpush1.msra.mxu1 %v3991_v25  ;;  %p5602_p5 = por %p5601_p4, %p5600_p3 }
0x14c9   :  { %4064 = vmatprep.subr.mxu1 %v3990_v26 }
0x14ca   :  { %4065 = vmatpush1.msra.mxu1 %v3989_v28  ;;  %p5603_p6 = pnand %p5602_p5, %p5596_p2 }
0x14cb   :  { %5250 = vmatprep.subr.mxu1 %v5637_v62 }
0x14f7   :  { %v3833_v37 = vpop.f32.mrf.mxu1 }
0x14f8   :  { %3838 = vrot.lane.b32.xlu1 %v3833_v37, %s5639_s28 }
0x14f9   :  { %v5214_v9 = vpop.f32.mrf.mxu1 }
0x14fa   :  { %v4675_v9 = vld [vmem:[%s6439_s10 + $0x1] ss:$0 sm:$0xff] }
0x152a   :  { %v3159_v35 = vpop.permute.xlu1 %3158 }
0x152b   :  { %3161 = vst.msk [vmem:[#allocation2] sm:$0xff] %vm1122_vm5, %v3159_v35 }
0x1532   :  { %v3495_v40 = vpop.permute.xlu0 %3494  ;;  %v3842_v41 = vld [vmem:[#allocation2] sm:$0xff] }
0x1533   :  { %3497 = vst.msk [vmem:[#allocation2 + $0x8] sm:$0xff] %vm776_vm3, %v3495_v40  ;;  %5247 = vmatprep.mubr.f32.mxu0 %v3842_v41  ;;  %v4676_v40 = vld [vmem:[%s6440_s11 + $0x1] ss:$0 sm:$0xff] }
0x1536   :  { %v3667_v42 = vpop.permute.xlu0 %3666 }
0x1537   :  { %3669 = vst.msk [vmem:[#allocation2 + $0x8] sm:$0xff] %vm949_vm4, %v3667_v42 }
0x156a   :  { %v3839_v44 = vpop.permute.xlu1 %3838 }
0x156b   :  { %3841 = vst.msk [vmem:[#allocation2 + $0x8] sm:$0xff] %vm1122_vm5, %v3839_v44 }
0x1572   :  { %v3843_v45 = vld [vmem:[#allocation2 + $0x8] sm:$0xff] }
0x1573   :  { %5248 = vmatmul.mubr.f32.vlgmr.msra.gmra.mxu0 %v3843_v45 }
0x1633   :  { %v5249_v48 = vpop.f32.mrf.mxu0 }
0x1634   :  { %v3941_v51 = vadd.f32 %v5249_v48, %v4672_v47 }
0x1635   :  { %v3935_v32 = vpop.f32.mrf.mxu0 }
0x1636   :  { %v3936_v39 = vadd.f32 %v4672_v47, %v3935_v32  ;;  %v3945_v23 = vadd.f32 %v3941_v51, %v6080_v38  ;;  %v4179_v51 = vld [vmem:[#allocation9 + $0x1f8] sm:$0xff] }
0x1637   :  { %4861 = vmatprep.subr.mxu0 %v4179_v51  ;;  %v4163_v32 = vld [vmem:[#allocation9 + $0x178] sm:$0xff] }
0x1638   :  { %3952 = vadd.xlane.f32.xlu1 %v3945_v23  ;;  %v3944_v52 = vadd.f32 %v3936_v39, %v6074_v33  ;;  %4862 = vmatpush3.msra.mxu0 %v4163_v32  ;;  %v4178_v39 = vld [vmem:[#allocation9 + $0x1f0] sm:$0xff] }
0x1639   :  { %4863 = vmatprep.subr.mxu0 %v4178_v39 }
0x163a   :  { %3950 = vadd.xlane.f32.xlu0 %v3944_v52 }
0x16c1   :  { %v3953_v38 = vpop.xlane.xlu1 %3952 }
0x16c2   :  { %v3955_v33 = vmul.f32 0.0078125, %v3953_v38  ;;  %v4157_v38 = vld [vmem:[#allocation9 + $0x148] sm:$0xff] }
0x16c3   :  { %v3951_v57 = vpop.xlane.xlu0 %3950 }
0x16c4   :  { %v3954_v58 = vmul.f32 0.0078125, %v3951_v57  ;;  %v6268_v60 = vsub.f32 %v3945_v23, %v3955_v33  ;;  %v4162_v23 = vld [vmem:[#allocation9 + $0x170] sm:$0xff]  ;;  %v4172_v57 = vld [vmem:[#allocation9 + $0x1c0] sm:$0xff] }
0x16c5   :  { %4864 = vmatpush3.msra.mxu0 %v4162_v23  ;;  %v4156_v33 = vld [vmem:[#allocation9 + $0x140] sm:$0xff] }
0x16c6   :  { %v6266_v59 = vsub.f32 %v3944_v52, %v3954_v58  ;;  %v3959_v61 = vmul.f32 %v6268_v60, %v6268_v60  ;;  %v4177_v52 = vld [vmem:[#allocation9 + $0x1e8] sm:$0xff]  ;;  %v4171_v58 = vld [vmem:[#allocation9 + $0x1b8] sm:$0xff] }
0x16c7   :  { %4865 = vmatprep.subr.mxu0 %v4177_v52 }
0x16c8   :  { %v3958_v50 = vmul.f32 %v6266_v59, %v6266_v59  ;;  %4866 = vmatpush3.msra.mxu0 %v4161_v18 }
0x16c9   :  { %4867 = vmatprep.subr.mxu0 %v4176_v54 }
0x16ca   :  { %3960 = vadd.xlane.f32.xlu0 %v3958_v50  ;;  %4868 = vmatpush3.msra.mxu0 %v4160_v27  ;;  %v4154_v50 = vld [vmem:[#allocation9 + $0x130] sm:$0xff] }
0x16cb   :  { %4869 = vmatprep.subr.mxu0 %v4175_v55 }
0x16cc   :  { %4870 = vmatpush3.msra.mxu0 %v4159_v49 }
0x16cd   :  { %4871 = vmatprep.subr.mxu0 %v4174_v56 }
0x16ce   :  { %3962 = vadd.xlane.f32.xlu0 %v3959_v61  ;;  %4872 = vmatpush3.msra.mxu0 %v4158_v16  ;;  %v4169_v61 = vld [vmem:[#allocation9 + $0x1a8] sm:$0xff] }
0x16cf   :  { %4873 = vmatprep.subr.mxu0 %v4173_v13 }
0x16d0   :  { %4874 = vmatpush3.msra.mxu0 %v4157_v38 }
0x16d1   :  { %4875 = vmatprep.subr.mxu0 %v4172_v57 }
0x16d2   :  { %4876 = vmatpush3.msra.mxu0 %v4156_v33 }
0x16d3   :  { %4877 = vmatprep.subr.mxu0 %v4171_v58 }
0x1753   :  { %v3961_v29 = vpop.xlane.xlu0 %3960 }
0x1754   :  { %v3964_v30 = vmul.f32 0.0078125, %v3961_v29 }
0x1756   :  { %v3966_v43 = vadd.f32 1e-12, %v3964_v30 }
0x1757   :  { %v3963_v31 = vpop.xlane.xlu0 %3962 }
0x1758   :  { %5457 = vrsqrt.f32 %v3966_v43  ;;  %v3965_v46 = vmul.f32 0.0078125, %v3963_v31 }
0x175a   :  { %v3967_v36 = vadd.f32 1e-12, %v3965_v46 }
0x175c   :  { %5459 = vrsqrt.f32 %v3967_v36 }
0x1765   :  { %v5458_v37 = vpop.eup %5457 }
0x1766   :  { %v3970_v35 = vmul.f32 %v5458_v37, %v6266_v59  ;;  %v4155_v59 = vld [vmem:[#allocation9 + $0x138] sm:$0xff] }
0x1767   :  { %4878 = vmatpush3.msra.mxu0 %v4155_v59 }
0x1768   :  { %v3978_v41 = vmul.f32 %v4675_v9, %v3970_v35 }
0x1769   :  { %v5460_v42 = vpop.eup %5459 }
0x176a   :  { %v6282_v44 = vadd.f32 %v4676_v40, %v3978_v41  ;;  %v3971_v45 = vmul.f32 %v5460_v42, %v6268_v60  ;;  %v4170_v60 = vld [vmem:[#allocation9 + $0x1b0] sm:$0xff] }
0x176b   :  { %4879 = vmatprep.subr.mxu0 %v4170_v60 }
0x176c   :  { %4099 = vmatmul.mubr.f32.vlgmr.msra.gmra.mxu1 %v6282_v44  ;;  %v3979_v47 = vmul.f32 %v4675_v9, %v3971_v45  ;;  %4880 = vmatpush3.msra.mxu0 %v4154_v50  ;;  %v4679_v50 = vld [vmem:[%s6444_s15 + $0x1] ss:$0 sm:$0xff] }
0x176d   :  { %4104 = vmatprep.mubr.f32.mxu1 %v5637_v62  ;;  %4881 = vmatprep.subr.mxu0 %v4169_v61 }
0x176e   :  { %v6287_v48 = vadd.f32 %v4676_v40, %v3979_v47  ;;  %4882 = vmatpush3.msra.mxu0 %v4153_v63 }
0x176f   :  { %4883 = vmatprep.subr.mxu0 %v4168_v0 }
0x1770   :  { %4105 = vmatmul.mubr.f32.gmra.mxu1 %v6287_v48  ;;  %4884 = vmatpush3.msra.mxu0 %v4152_v1 }
0x1771   :  { %5282 = vmatprep.mubr.msk.f32.mxu1 %vm5638_vm0, %v5637_v62  ;;  %4885 = vmatprep.subr.mxu0 %v4167_v2 }
0x1772   :  { %4886 = vmatpush3.msra.mxu0 %v4151_v3 }
0x1773   :  { %4887 = vmatprep.subr.mxu0 %v4166_v4 }
0x1774   :  { %4888 = vmatpush3.msra.mxu0 %v4150_v5 }
0x1775   :  { %4889 = vmatprep.subr.mxu0 %v4165_v6 }
0x1776   :  { %4890 = vmatpush3.msra.mxu0 %v4149_v7 }
0x1777   :  { %4891 = vmatprep.subr.mxu0 %v4164_v34 }
0x1778   :  { %4892 = vmatpush3.msra.mxu0 %v4148_v53 }
0x1779   :  { %5285 = vmatprep.subr.mxu0 %v5637_v62 }
0x182c   :  { %v4100_v12 = vpop.f32.mrf.mxu1 }
0x182d   :  { %v4101_v14 = vadd.f32 %v4100_v12, %v4027_v10 }
0x182e   :  { %v4102_v15 = vpop.f32.mrf.mxu1 }
0x182f   :  { %v4111_v17 = vmul.f32 %v4101_v14, %v4101_v14  ;;  %v4103_v20 = vadd.f32 %v4102_v15, %v4031_v11  ;;  %v4325_v15 = vld [vmem:[%s6447_s18 + $0x68] sm:$0xff] }
0x1830   :  { %v4106_v22 = vpop.f32.mrf.mxu1 }
0x1831   :  { %v4115_v24 = vmul.f32 %v4111_v17, %v4101_v14  ;;  %v4112_v25 = vmul.f32 %v4103_v20, %v4103_v20  ;;  %v4107_v26 = vadd.f32 %v4106_v22, %v4027_v10  ;;  %v4324_v17 = vld [vmem:[%s6447_s18 + $0x60] sm:$0xff]  ;;  %v4322_v22 = vld [vmem:[%s6447_s18 + $0x50] sm:$0xff] }
0x1832   :  { %v4108_v28 = vpop.f32.mrf.mxu1 }
0x1833   :  { %v4119_v29 = vmul.f32 0.044715, %v4115_v24  ;;  %v4116_v30 = vmul.f32 %v4112_v25, %v4103_v20  ;;  %v4113_v43 = vmul.f32 %v4107_v26, %v4107_v26  ;;  %v4109_v31 = vadd.f32 %v4108_v28, %v4031_v11  ;;  %v4321_v24 = vld [vmem:[%s6447_s18 + $0x48] sm:$0xff]  ;;  %v4320_v25 = vld [vmem:[%s6447_s18 + $0x40] sm:$0xff]  ;;  %v4318_v28 = vld [vmem:[%s6447_s18 + $0x30] sm:$0xff] }
0x1835   :  { %v4123_v46 = vadd.f32 %v4119_v29, %v4101_v14  ;;  %v4120_v36 = vmul.f32 0.044715, %v4116_v30  ;;  %v4117_v37 = vmul.f32 %v4113_v43, %v4107_v26  ;;  %v4114_v19 = vmul.f32 %v4109_v31, %v4109_v31  ;;  %v4317_v29 = vld [vmem:[%s6447_s18 + $0x28] sm:$0xff]  ;;  %v4316_v30 = vld [vmem:[%s6447_s18 + $0x20] sm:$0xff]  ;;  %v4315_v43 = vld [vmem:[%s6447_s18 + $0x18] sm:$0xff] }
0x1837   :  { %v4127_v9 = vmul.f32 0.7978846, %v4123_v46  ;;  %v4124_v21 = vadd.f32 %v4120_v36, %v4103_v20  ;;  %v4121_v35 = vmul.f32 0.044715, %v4117_v37  ;;  %v4118_v40 = vmul.f32 %v4114_v19, %v4109_v31  ;;  %v4313_v46 = vld [vmem:[%s6447_s18 + $0x8] sm:$0xff]  ;;  %v4312_v36 = vld [vmem:[%s6447_s18] sm:$0xff] }
0x1838   :  { %v4421_v37 = vld [vmem:[#allocation11 + $0x78] sm:$0xff]  ;;  %v4420_v19 = vld [vmem:[#allocation11 + $0x70] sm:$0xff] }
0x1839   :  { %5461 = vtanh.f32 %v4127_v9  ;;  %v4128_v41 = vmul.f32 0.7978846, %v4124_v21  ;;  %v4125_v42 = vadd.f32 %v4121_v35, %v4107_v26  ;;  %v4122_v45 = vmul.f32 0.044715, %v4118_v40  ;;  %v4419_v9 = vld [vmem:[#allocation11 + $0x68] sm:$0xff]  ;;  %v4418_v21 = vld [vmem:[#allocation11 + $0x60] sm:$0xff] }
0x183a   :  { %v4417_v35 = vld [vmem:[#allocation11 + $0x58] sm:$0xff]  ;;  %v4416_v40 = vld [vmem:[#allocation11 + $0x50] sm:$0xff] }
0x183b   :  { %5463 = vtanh.f32 %v4128_v41  ;;  %v4129_v47 = vmul.f32 0.7978846, %v4125_v42  ;;  %v4126_v51 = vadd.f32 %v4122_v45, %v4109_v31  ;;  %v4415_v41 = vld [vmem:[#allocation11 + $0x48] sm:$0xff] }
0x183d   :  { %5465 = vtanh.f32 %v4129_v47  ;;  %v4130_v32 = vmul.f32 0.7978846, %v4126_v51 }
0x183f   :  { %5467 = vtanh.f32 %v4130_v32 }
0x1846   :  { %v5462_v39 = vpop.eup %5461 }
0x1847   :  { %v4135_v23 = vadd.f32 1.0, %v5462_v39 }
0x1848   :  { %v5464_v52 = vpop.eup %5463 }
0x1849   :  { %v4136_v18 = vadd.f32 1.0, %v5464_v52  ;;  %v4139_v27 = vmul.f32 0.5, %v4135_v23 }
0x184a   :  { %v5466_v54 = vpop.eup %5465 }
0x184b   :  { %v4140_v55 = vmul.f32 0.5, %v4136_v18  ;;  %v4137_v49 = vadd.f32 1.0, %v5466_v54  ;;  %v4143_v38 = vmul.f32 %v4139_v27, %v4101_v14  ;;  %v4326_v14 = vld [vmem:[%s6447_s18 + $0x70] sm:$0xff]  ;;  %v4682_v54 = vld [vmem:[%s6445_s16 + $0x1] ss:$0 sm:$0xff] }
0x184c   :  { %v5468_v56 = vpop.eup %5467 }
0x184d   :  { %v4144_v16 = vmul.f32 %v4140_v55, %v4103_v20  ;;  %v4138_v13 = vadd.f32 1.0, %v5468_v56  ;;  %v4141_v57 = vmul.f32 0.5, %v4137_v49  ;;  %v4323_v20 = vld [vmem:[%s6447_s18 + $0x58] sm:$0xff]  ;;  %v4683_v56 = vld [vmem:[%s6446_s17 + $0x1] ss:$0 sm:$0xff] }
0x184f   :  { %4252 = vmatprep.mubr.f32.mxu0 %v4144_v16  ;;  %v4142_v33 = vmul.f32 0.5, %v4138_v13  ;;  %v4145_v59 = vmul.f32 %v4141_v57, %v4107_v26  ;;  %v4319_v26 = vld [vmem:[%s6447_s18 + $0x38] sm:$0xff] }
0x1850   :  { %4253 = vmatmul.mubr.f32.vlgmr.msra.gmra.mxu0 %v4143_v38 }
0x1851   :  { %v4146_v58 = vmul.f32 %v4142_v33, %v4109_v31  ;;  %v4314_v31 = vld [vmem:[%s6447_s18 + $0x10] sm:$0xff]  ;;  %5286 = vmatpush3.msra.mxu0 %v4421_v37 }
0x1852   :  { %5287 = vmatprep.subr.mxu0 %v5637_v62  ;;  %v4414_v33 = vld [vmem:[#allocation11 + $0x40] sm:$0xff] }
0x1853   :  { %4257 = vmatprep.mubr.f32.mxu0 %v4146_v58  ;;  %5288 = vmatpush3.msra.mxu0 %v4420_v19  ;;  %v4413_v58 = vld [vmem:[#allocation11 + $0x38] sm:$0xff] }
0x1854   :  { %4258 = vmatmul.mubr.f32.gmra.mxu0 %v4145_v59  ;;  %5289 = vmatprep.subr.mxu0 %v5637_v62  ;;  %v4412_v59 = vld [vmem:[#allocation11 + $0x30] sm:$0xff] }
0x1855   :  { %5317 = vmatprep.mubr.msk.f32.mxu0 %vm5638_vm0, %v5637_v62  ;;  %5290 = vmatpush3.msra.mxu0 %v4419_v9 }
0x1856   :  { %5291 = vmatprep.subr.mxu0 %v5637_v62 }
0x1857   :  { %5292 = vmatpush3.msra.mxu0 %v4418_v21 }
0x1858   :  { %5293 = vmatprep.subr.mxu0 %v5637_v62 }
0x1859   :  { %5294 = vmatpush3.msra.mxu0 %v4417_v35 }
0x185a   :  { %5295 = vmatprep.subr.mxu0 %v5637_v62 }
0x185b   :  { %5296 = vmatpush3.msra.mxu0 %v4416_v40 }
0x185c   :  { %5297 = vmatprep.subr.mxu0 %v5637_v62 }
0x185d   :  { %5298 = vmatpush3.msra.mxu0 %v4415_v41 }
0x185e   :  { %5299 = vmatprep.subr.mxu0 %v5637_v62 }
0x185f   :  { %5300 = vmatpush3.msra.mxu0 %v4414_v33 }
0x1860   :  { %5301 = vmatprep.subr.mxu0 %v5637_v62 }
0x1861   :  { %5302 = vmatpush3.msra.mxu0 %v4413_v58 }
0x1862   :  { %5303 = vmatprep.subr.mxu0 %v5637_v62 }
0x1863   :  { %5304 = vmatpush3.msra.mxu0 %v4412_v59 }
0x1864   :  { %5305 = vmatprep.subr.mxu0 %v5637_v62 }
0x1910   :  { %v4893_v60 = vpop.f32.mrf.mxu0 }
0x1912   :  { %v4894_v61 = vpop.f32.mrf.mxu0 }
0x1913   :  { %v4895_v63 = vadd.f32 %v4894_v61, %v4893_v60  ;;  %v4411_v60 = vld [vmem:[#allocation11 + $0x28] sm:$0xff]  ;;  %v4409_v61 = vld [vmem:[#allocation11 + $0x18] sm:$0xff] }
0x1914   :  { %v4896_v0 = vpop.f32.mrf.mxu0  ;;  %5306 = vmatpush3.msra.mxu0 %v4411_v60 }
0x1915   :  { %v4255_v1 = vadd.f32 %v4895_v63, %v4679_v50  ;;  %5307 = vmatprep.subr.mxu0 %v5637_v62  ;;  %v4408_v63 = vld [vmem:[#allocation11 + $0x10] sm:$0xff] }
0x1916   :  { %v4897_v2 = vpop.f32.mrf.mxu0 }
0x1917   :  { %v4898_v3 = vadd.f32 %v4897_v2, %v4896_v0  ;;  %v4263_v4 = vadd.f32 %v4255_v1, %v6282_v44  ;;  %v4407_v0 = vld [vmem:[#allocation11 + $0x8] sm:$0xff]  ;;  %v4406_v1 = vld [vmem:[#allocation11] sm:$0xff]  ;;  %v4515_v2 = vld [vmem:[#allocation12 + $0x78] sm:$0xff] }
0x1919   :  { %v4260_v5 = vadd.f32 %v4898_v3, %v4679_v50  ;;  %4269 = vadd.xlane.f32.xlu1 %v4263_v4  ;;  %v4410_v50 = vld [vmem:[#allocation11 + $0x20] sm:$0xff]  ;;  %v4514_v3 = vld [vmem:[#allocation12 + $0x70] sm:$0xff] }
0x191a   :  { %5308 = vmatpush3.msra.mxu0 %v4410_v50 }
0x191b   :  { %v4264_v6 = vadd.f32 %v4260_v5, %v6287_v48  ;;  %v4327_v48 = vld [vmem:[%s6447_s18 + $0x78] sm:$0xff]  ;;  %5309 = vmatprep.subr.mxu0 %v5637_v62  ;;  %v4512_v5 = vld [vmem:[#allocation12 + $0x60] sm:$0xff] }
0x191c   :  { %5251 = vmatpush3.msra.mxu1 %v4327_v48  ;;  %5310 = vmatpush3.msra.mxu0 %v4409_v61  ;;  %v4684_v48 = vld [vmem:[%s6448_s19] ss:$0 sm:$0xff] }
0x191d   :  { %4271 = vadd.xlane.f32.xlu0 %v4264_v6  ;;  %5252 = vmatprep.subr.mxu1 %v5637_v62 }
0x191e   :  { %5253 = vmatpush3.msra.mxu1 %v4326_v14  ;;  %5311 = vmatprep.subr.mxu0 %v5637_v62 }
0x191f   :  { %5254 = vmatprep.subr.mxu1 %v5637_v62  ;;  %5312 = vmatpush3.msra.mxu0 %v4408_v63 }
0x1920   :  { %5255 = vmatpush3.msra.mxu1 %v4325_v15  ;;  %5313 = vmatprep.subr.mxu0 %v5637_v62 }
0x1921   :  { %5256 = vmatprep.subr.mxu1 %v5637_v62  ;;  %5314 = vmatpush3.msra.mxu0 %v4407_v0 }
0x1922   :  { %5257 = vmatpush3.msra.mxu1 %v4324_v17  ;;  %5315 = vmatprep.subr.mxu0 %v5637_v62 }
0x1923   :  { %5258 = vmatprep.subr.mxu1 %v5637_v62  ;;  %5316 = vmatpush3.msra.mxu0 %v4406_v1 }
0x1924   :  { %5259 = vmatpush3.msra.mxu1 %v4323_v20 }
0x1925   :  { %5260 = vmatprep.subr.mxu1 %v5637_v62 }
0x1926   :  { %5261 = vmatpush3.msra.mxu1 %v4322_v22  ;;  %v4502_v22 = vld [vmem:[#allocation12 + $0x10] sm:$0xff] }
0x1927   :  { %5262 = vmatprep.subr.mxu1 %v5637_v62 }
0x1928   :  { %5263 = vmatpush3.msra.mxu1 %v4321_v24  ;;  %v4501_v24 = vld [vmem:[#allocation12 + $0x8] sm:$0xff] }
0x1929   :  { %5264 = vmatprep.subr.mxu1 %v5637_v62 }
0x192a   :  { %5265 = vmatpush3.msra.mxu1 %v4320_v25  ;;  %v4500_v25 = vld [vmem:[#allocation12] sm:$0xff] }
0x192b   :  { %5266 = vmatprep.subr.mxu1 %v5637_v62 }
0x192c   :  { %5267 = vmatpush3.msra.mxu1 %v4319_v26  ;;  %v4685_v26 = vld [vmem:[%s6450_s21] ss:$0 sm:$0xff] }
0x192d   :  { %5268 = vmatprep.subr.mxu1 %v5637_v62 }
0x192e   :  { %5269 = vmatpush3.msra.mxu1 %v4318_v28 }
0x192f   :  { %5270 = vmatprep.subr.mxu1 %v5637_v62 }
0x1930   :  { %5271 = vmatpush3.msra.mxu1 %v4317_v29 }
0x1931   :  { %5272 = vmatprep.subr.mxu1 %v5637_v62 }
0x1932   :  { %5273 = vmatpush3.msra.mxu1 %v4316_v30 }
0x1933   :  { %5274 = vmatprep.subr.mxu1 %v5637_v62 }
0x1934   :  { %5275 = vmatpush3.msra.mxu1 %v4315_v43 }
0x1935   :  { %5276 = vmatprep.subr.mxu1 %v5637_v62 }
0x1936   :  { %5277 = vmatpush3.msra.mxu1 %v4314_v31  ;;  %v4686_v31 = vld [vmem:[%s6452_s23] ss:$0 sm:$0xff] }
0x1937   :  { %5278 = vmatprep.subr.mxu1 %v5637_v62 }
0x1938   :  { %5279 = vmatpush3.msra.mxu1 %v4313_v46 }
0x1939   :  { %5280 = vmatprep.subr.mxu1 %v5637_v62 }
0x193a   :  { %5281 = vmatpush3.msra.mxu1 %v4312_v36 }
0x193b   :  { %5320 = vmatprep.subr.mxu1 %v5637_v62 }
0x19a2   :  { %v4270_v7 = vpop.xlane.xlu1 %4269 }
0x19a3   :  { %v4273_v34 = vmul.f32 0.0078125, %v4270_v7  ;;  %v4510_v7 = vld [vmem:[#allocation12 + $0x50] sm:$0xff] }
0x19a5   :  { %v6305_v53 = vsub.f32 %v4263_v4, %v4273_v34  ;;  %v4513_v4 = vld [vmem:[#allocation12 + $0x68] sm:$0xff] }
0x19a6   :  { %v4272_v8 = vpop.xlane.xlu0 %4271  ;;  %v4509_v34 = vld [vmem:[#allocation12 + $0x48] sm:$0xff] }
0x19a7   :  { %v4274_v10 = vmul.f32 0.0078125, %v4272_v8  ;;  %v4277_v11 = vmul.f32 %v6305_v53, %v6305_v53  ;;  %v4507_v8 = vld [vmem:[#allocation12 + $0x38] sm:$0xff] }
0x19a9   :  { %v6309_v12 = vsub.f32 %v4264_v6, %v4274_v10  ;;  %4279 = vadd.xlane.f32.xlu1 %v4277_v11  ;;  %v4511_v6 = vld [vmem:[#allocation12 + $0x58] sm:$0xff]  ;;  %v4506_v10 = vld [vmem:[#allocation12 + $0x30] sm:$0xff]  ;;  %v4505_v11 = vld [vmem:[#allocation12 + $0x28] sm:$0xff] }
0x19ab   :  { %v4278_v44 = vmul.f32 %v6309_v12, %v6309_v12 }
0x19ad   :  { %4281 = vadd.xlane.f32.xlu0 %v4278_v44  ;;  %v4503_v44 = vld [vmem:[#allocation12 + $0x18] sm:$0xff] }
0x1a32   :  { %v4280_v42 = vpop.xlane.xlu1 %4279 }
0x1a33   :  { %v4283_v45 = vmul.f32 0.0078125, %v4280_v42 }
0x1a35   :  { %v4285_v47 = vadd.f32 1e-12, %v4283_v45 }
0x1a36   :  { %v4282_v51 = vpop.xlane.xlu0 %4281 }
0x1a37   :  { %5469 = vrsqrt.f32 %v4285_v47  ;;  %v4284_v32 = vmul.f32 0.0078125, %v4282_v51 }
0x1a39   :  { %v4286_v39 = vadd.f32 1e-12, %v4284_v32 }
0x1a3b   :  { %5471 = vrsqrt.f32 %v4286_v39 }
0x1a44   :  { %v5470_v23 = vpop.eup %5469 }
0x1a45   :  { %v4289_v52 = vmul.f32 %v5470_v23, %v6305_v53  ;;  %v4508_v53 = vld [vmem:[#allocation12 + $0x40] sm:$0xff] }
0x1a47   :  { %v4297_v55 = vmul.f32 %v4682_v54, %v4289_v52 }
0x1a48   :  { %v5472_v18 = vpop.eup %5471 }
0x1a49   :  { %v4290_v27 = vmul.f32 %v5472_v18, %v6309_v12  ;;  %v4305_v13 = vadd.f32 %v4683_v56, %v4297_v55  ;;  %v4504_v12 = vld [vmem:[#allocation12 + $0x20] sm:$0xff] }
0x1a4b   :  { %v4298_v49 = vmul.f32 %v4682_v54, %v4290_v27 }
0x1a4d   :  { %v4306_v16 = vadd.f32 %v4683_v56, %v4298_v49 }
0x1a4f   :  { %v4308_v38 = vrot.slane %v4306_v16, 7 }
0x1a51   :  { %v4311_v57 = vsel %vm4310_vm6, %v4305_v13, %v4308_v38 }
0x1a52   :  { %5283 = vmatmul.mubr.f32.vlgmr.msra.gmra.mxu1 %v4311_v57 }
0x1a53   :  { %5352 = vmatprep.mubr.msk.f32.mxu1 %vm5638_vm0, %v5637_v62  ;;  %5321 = vmatpush3.msra.mxu1 %v4515_v2 }
0x1a54   :  { %5322 = vmatprep.subr.mxu1 %v5637_v62 }
0x1a55   :  { %5323 = vmatpush3.msra.mxu1 %v4514_v3 }
0x1a56   :  { %5324 = vmatprep.subr.mxu1 %v5637_v62 }
0x1a57   :  { %5325 = vmatpush3.msra.mxu1 %v4513_v4 }
0x1a58   :  { %5326 = vmatprep.subr.mxu1 %v5637_v62 }
0x1a59   :  { %5327 = vmatpush3.msra.mxu1 %v4512_v5 }
0x1a5a   :  { %5328 = vmatprep.subr.mxu1 %v5637_v62 }
0x1a5b   :  { %5329 = vmatpush3.msra.mxu1 %v4511_v6 }
0x1a5c   :  { %5330 = vmatprep.subr.mxu1 %v5637_v62 }
0x1a5d   :  { %5331 = vmatpush3.msra.mxu1 %v4510_v7 }
0x1a5e   :  { %5332 = vmatprep.subr.mxu1 %v5637_v62 }
0x1a5f   :  { %5333 = vmatpush3.msra.mxu1 %v4509_v34 }
0x1a60   :  { %5334 = vmatprep.subr.mxu1 %v5637_v62 }
0x1a61   :  { %5335 = vmatpush3.msra.mxu1 %v4508_v53 }
0x1a62   :  { %5336 = vmatprep.subr.mxu1 %v5637_v62 }
0x1a63   :  { %5337 = vmatpush3.msra.mxu1 %v4507_v8 }
0x1a64   :  { %5338 = vmatprep.subr.mxu1 %v5637_v62 }
0x1a65   :  { %5339 = vmatpush3.msra.mxu1 %v4506_v10 }
0x1a66   :  { %5340 = vmatprep.subr.mxu1 %v5637_v62 }
0x1a67   :  { %5341 = vmatpush3.msra.mxu1 %v4505_v11 }
0x1a68   :  { %5342 = vmatprep.subr.mxu1 %v5637_v62 }
0x1a69   :  { %5343 = vmatpush3.msra.mxu1 %v4504_v12 }
0x1a6a   :  { %5344 = vmatprep.subr.mxu1 %v5637_v62 }
0x1a6b   :  { %5345 = vmatpush3.msra.mxu1 %v4503_v44 }
0x1a6c   :  { %5346 = vmatprep.subr.mxu1 %v5637_v62 }
0x1a6d   :  { %5347 = vmatpush3.msra.mxu1 %v4502_v22 }
0x1a6e   :  { %5348 = vmatprep.subr.mxu1 %v5637_v62 }
0x1a6f   :  { %5349 = vmatpush3.msra.mxu1 %v4501_v24 }
0x1a70   :  { %5350 = vmatprep.subr.mxu1 %v5637_v62 }
0x1a71   :  { %5351 = vmatpush3.msra.mxu1 %v4500_v25 }
0x1b12   :  { %v4401_v14 = vpop.f32.mrf.mxu1 }
0x1b13   :  { %v4402_v15 = vadd.f32 %v4684_v48, %v4401_v14 }
0x1b14   :  { %v5284_v17 = vpop.f32.mrf.mxu1 }
0x1b15   :  { %5473 = vtanh.f32 %v4402_v15 }
0x1b22   :  { %v5474_v20 = vpop.eup %5473 }
0x1b23   :  { %5318 = vmatmul.mubr.f32.vlgmr.msra.gmra.mxu0 %v5474_v20 }
0x1be3   :  { %v4495_v28 = vpop.f32.mrf.mxu0 }
0x1be4   :  { %v4496_v29 = vadd.f32 %v4685_v26, %v4495_v28 }
0x1be5   :  { %v5319_v30 = vpop.f32.mrf.mxu0 }
0x1be6   :  { %v4499_v43 = vmax.f32 %v4496_v29, 0.0 }
0x1be8   :  { %5353 = vmatmul.mubr.f32.vlgmr.msra.gmra.mxu1 %v4499_v43 }
0x1ca8   :  { %v4589_v46 = vpop.f32.mrf.mxu1 }
0x1ca9   :  { %v4590_v36 = vadd.f32 %v4686_v31, %v4589_v46 }
0x1caa   :  { %v5354_v62 = vpop.f32.mrf.mxu1 }
0x1cab   :  { %4594 = vst.msk [vmem:[#allocation14] sm:$0x3] %vm4593_vm7, %v4590_v36 }
0x1cac   :  { %5606 = shalt.err (!%p5603_p6)
}
0x1cad   :  { %4604 = dma.vmem_to_hbm [thread:$0]  %s4602_s8, 32, %s6453_s24, [#allocation5]  }
0x1cae   :  { %5623 = dma.done.wait [#allocation5], 32  }
0x1caf   :  { %5624 = vsyncadd [#allocation5], 4294967264 }
0x1cb0   :  { %4608 = vsyncpa [#allocation4], 1 }
0x1cb1   :  { %4609 = vsyncpa [#allocation7], 1 }
0x1cb2   :  { %4610 = vsyncpa [#allocation10], 1 }
0x1cb3   :  { %4611 = vsyncpa [#allocation13], 1 }
0x1cb4   :  { %4612 = vsyncpa [#allocation5], 1 }

</bundles_post_ra>
